<compile_context>
chip_gen: v5e
topology: v5e:2x2
jax: 0.10.0
libtpu: 0.0.40
codegen_flags: <defaults>
</compile_context>

<pallas_src>
import functools

import jax
import jax.numpy as jnp
from jax.experimental import pallas as pl
from jax.experimental.pallas import tpu as pltpu


def _round_up(x, mult):
    return (x + mult - 1) // mult * mult


def _pillar_kernel(feat_ref, npts_ref, coors_ref, params_ref, out_ref, *,
                   vx, vy, vz, xo, yo, zo, num_real_points):
    # Per grid step (TN pillars on the lane axis):
    #   feat_ref   : (4, M_pad, TN)   channel-major points, rows = x, y, z, r
    #   npts_ref   : (1, TN)          points per pillar
    #   coors_ref  : (4, TN)          rows = (batch, z, y, x)
    #   params_ref : (U, 8)           cols = [wx, wy, wz, wr, wcx, wcy, wcz, shift]
    #   out_ref    : (U, TN)
    f32 = jnp.float32
    m_pad = feat_ref.shape[1]
    tn = feat_ref.shape[2]

    npts = npts_ref[...]                                    # (1, TN)
    coors = coors_ref[...]                                  # (4, TN)
    p = params_ref[...]                                     # (U, 8)

    x = feat_ref[0]                                         # (M_pad, TN)
    y = feat_ref[1]
    z = feat_ref[2]
    r = feat_ref[3]

    # Padding mask (get_paddings_indicator): point index < num_points.  In-kernel iota —
    # no pidx input stream needed.
    pidx = jax.lax.broadcasted_iota(jnp.int32, (m_pad, tn), 0).astype(f32)
    mask = (pidx < npts).astype(f32)                        # (M_pad, TN)

    # Masked raw channels (self-contained even if padded point rows carry garbage).
    mx = x * mask
    my = y * mask
    mz = z * mask
    mr = r * mask

    # Cluster mean over the ORIGINAL xyz; clamp num_points to >= 1 so empty / wrapper-pad
    # pillars do not produce NaN (they are fully masked anyway; PyTorch would emit NaN).
    inv_n = 1.0 / jnp.maximum(npts, 1.0)                    # (1, TN)
    mean_x = jnp.sum(mx, axis=0, keepdims=True) * inv_n
    mean_y = jnp.sum(my, axis=0, keepdims=True) * inv_n
    mean_z = jnp.sum(mz, axis=0, keepdims=True) * inv_n

    # Voxel centers per pillar.
    ctr_x = coors[3:4] * vx + xo                            # (1, TN)
    ctr_y = coors[2:3] * vy + yo
    ctr_z = coors[1:2] * vz + zo

    # Masked, voxel-centered per-point channels (legacy=True also replaces raw xyz).
    mcx = mx - ctr_x * mask                                 # (M_pad, TN)
    mcy = my - ctr_y * mask
    mcz = mz - ctr_z * mask

    # Deduped, BN-folded weights / BN shift, aligned to the U (sublane) axis.
    w_x, w_y, w_z, w_r = p[:, 0:1], p[:, 1:2], p[:, 2:3], p[:, 3:4]   # (U, 1)
    wc_x, wc_y, wc_z = p[:, 4:5], p[:, 5:6], p[:, 6:7]
    shift = p[:, 7:8]

    # Cluster channels folded into a per-pillar bias (constant across points):
    #   cluster = (x - ctr) + (ctr - mean); the centered part is merged into w_x/y/z.
    bias = (wc_x * (ctr_x - mean_x)
            + wc_y * (ctr_y - mean_y)
            + wc_z * (ctr_z - mean_z))                      # (U, TN)

    # Running max over the module's M points (static, small).  Masked rows contribute
    # exactly 0 — same as PyTorch's max over masked rows; wrapper-pad rows beyond
    # num_real_points are never visited.  Keeps the live set at (U, TN) instead of
    # materializing (M, U, TN).
    def contrib(m):
        return (mcx[m:m + 1, :] * w_x
                + mcy[m:m + 1, :] * w_y
                + mcz[m:m + 1, :] * w_z
                + mr[m:m + 1, :] * w_r
                + mask[m:m + 1, :] * bias)                  # (U, TN)

    run_max = contrib(0)
    for m in range(1, num_real_points):
        run_max = jnp.maximum(run_max, contrib(m))

    # BN shift + ReLU after the max (shift is constant across points and ReLU is
    # monotone, so this equals the original per-point shift -> ReLU -> max).
    out_ref[...] = jnp.maximum(run_max + shift, 0.0).astype(out_ref.dtype)


def _auto_tile_n(m_pad, units):
    """Pick the pillar-lane tile (multiple of 128) from a per-lane VMEM estimate."""
    per_lane_bytes = 4 * (2 * 4 * m_pad   # feature block, double-buffered
                          + 2 * units     # output block, double-buffered
                          + 5 * m_pad     # mcx/mcy/mcz/mr/mask temporaries
                          + 3 * units     # bias / running max / contribution
                          + 16)           # npts, coors, slack
    try:
        vmem_bytes = int(getattr(pltpu.get_tpu_info(), "vmem_capacity_bytes",
                                 64 * 1024 * 1024))
    except Exception:
        vmem_bytes = 64 * 1024 * 1024
    # Stay well inside every generation's scoped-VMEM default (16/32/32 MiB) without
    # needing an explicit vmem_limit_bytes; 2048 lanes already amortizes the ~0.35us
    # per-step overhead to a few percent.
    budget = min(vmem_bytes // 8, 12 * 1024 * 1024)
    return max(128, min(2048, (budget // per_lane_bytes) // 128 * 128))


def pillar_feature_net(features, num_points, coors, w, bn_gamma, bn_beta, bn_mean, bn_var,
                       *, voxel_size=(0.2, 0.2, 4.0),
                       point_cloud_range=(0.0, -40.0, -3.0, 70.4, 40.0, 1.0),
                       eps=1e-3, tile_n=None, vmem_limit_bytes=None):
    n, m, c = features.shape
    assert c == 4, "expects (x, y, z, r) point features"
    assert w.shape[0] == 10, "Linear expects the 10 augmented channels"
    units = w.shape[1]
    f32 = jnp.float32

    # ---- parameter folding (glue, traced once per call) -----------------------------
    scale = bn_gamma.astype(f32) / jnp.sqrt(bn_var.astype(f32) + eps)          # (U,)
    shift = bn_beta.astype(f32) - bn_mean.astype(f32) * scale                  # (U,)
    ws = w.astype(f32) * scale[None, :]                                        # BN folded
    # Channel order (legacy=True): [cx, cy, cz, r, clx, cly, clz, cx, cy, cz].
    # Duplicated centered-xyz rows are summed; the cluster rows split into a centered
    # part (merged here) plus the per-pillar bias handled in the kernel.
    params = jnp.stack([ws[0] + ws[4] + ws[7],
                        ws[1] + ws[5] + ws[8],
                        ws[2] + ws[6] + ws[9],
                        ws[3],
                        ws[4], ws[5], ws[6],
                        shift], axis=1)                                        # (U, 8)

    # ---- tile sizing -----------------------------------------------------------------
    m_pad = _round_up(m, 8)
    if tile_n is None:
        tile_n = _auto_tile_n(m_pad, units)
    tn = max(128, _round_up(int(tile_n), 128))
    n128 = _round_up(n, 128)
    if tn >= n128:
        # A single grid step would idle one of v7x's two TensorCores; split when possible.
        tn = _round_up(n128 // 2, 128) if n128 >= 256 else n128
    n_pad = _round_up(n, tn)
    pad_m = m_pad - m
    pad_n = n_pad - n

    # ---- lane-dense, channel-major layout: (4, M_pad, N_pad), pillars on lanes --------
    # TODO(synk): the voxelizer could emit channel-major features and the BEV scatter
    # could consume the (U, N) kernel output directly; both transposes here are pure
    # interface plumbing and each costs an extra HBM pass.
    feat_t = jnp.pad(jnp.transpose(features.astype(f32), (2, 1, 0)),
                     ((0, 0), (0, pad_m), (0, pad_n)))                         # (4, M_pad, N_pad)
    npts_t = jnp.pad(num_points.astype(f32).reshape(1, n), ((0, 0), (0, pad_n)))
    coors_t = jnp.pad(jnp.transpose(coors.astype(f32), (1, 0)), ((0, 0), (0, pad_n)))

    vx, vy, vz = (float(v) for v in voxel_size)
    xo = vx / 2.0 + float(point_cloud_range[0])
    yo = vy / 2.0 + float(point_cloud_range[1])
    zo = vz / 2.0 + float(point_cloud_range[2])
    kernel = functools.partial(_pillar_kernel, vx=vx, vy=vy, vz=vz, xo=xo, yo=yo, zo=zo,
                               num_real_points=m)

    cp_kwargs = dict(dimension_semantics=("parallel",))    # both v7x TCs share the grid
    if vmem_limit_bytes is not None:
        cp_kwargs["vmem_limit_bytes"] = int(vmem_limit_bytes)

    out_t = pl.pallas_call(
        kernel,
        out_shape=jax.ShapeDtypeStruct((units, n_pad), f32),
        grid_spec=pltpu.PrefetchScalarGridSpec(
            num_scalar_prefetch=0,
            grid=(n_pad // tn,),
            in_specs=[
                pl.BlockSpec((4, m_pad, tn), lambda i: (0, 0, i)),   # features
                pl.BlockSpec((1, tn), lambda i: (0, i)),             # num_points
                pl.BlockSpec((4, tn), lambda i: (0, i)),             # coors
                pl.BlockSpec((units, 8), lambda i: (0, 0)),          # folded params
            ],
            out_specs=pl.BlockSpec((units, tn), lambda i: (0, i)),   # lane-dense output
        ),
        compiler_params=pltpu.CompilerParams(**cp_kwargs),
    )(feat_t, npts_t, coors_t, params)

    # back to the PyTorch module's (N, 64) = features.squeeze() layout
    return jnp.transpose(out_t[:, :n], (1, 0))


def _reference(features, num_points, coors, w, bn_gamma, bn_beta, bn_mean, bn_var,
               voxel_size=(0.2, 0.2, 4.0),
               point_cloud_range=(0.0, -40.0, -3.0, 70.4, 40.0, 1.0), eps=1e-3):
    # pure-JAX mirror of the PyTorch forward (legacy=True) for verification
    f = features.astype(jnp.float32)
    n, m, _ = f.shape
    vx, vy, vz = voxel_size
    xo = vx / 2.0 + point_cloud_range[0]
    yo = vy / 2.0 + point_cloud_range[1]
    zo = vz / 2.0 + point_cloud_range[2]
    npts = num_points.astype(jnp.float32)[:, None, None]
    mean = jnp.sum(f[:, :, :3], axis=1, keepdims=True) / npts
    f_cluster = f[:, :, :3] - mean
    c = coors.astype(jnp.float32)
    centered = jnp.stack(
        [f[:, :, 0] - (c[:, 3:4] * vx + xo),
         f[:, :, 1] - (c[:, 2:3] * vy + yo),
         f[:, :, 2] - (c[:, 1:2] * vz + zo)], axis=-1)
    aug = jnp.concatenate([centered, f[:, :, 3:4], f_cluster, centered], axis=-1)
    mask = (jnp.arange(m)[None, :] < num_points[:, None]).astype(jnp.float32)[:, :, None]
    aug = aug * mask
    x = aug @ w.astype(jnp.float32)
    scale = bn_gamma / jnp.sqrt(bn_var + eps)
    shift = bn_beta - bn_mean * scale
    x = x * scale[None, None, :] + shift[None, None, :]
    x = jnp.maximum(x, 0.0)
    return jnp.max(x, axis=1)


if __name__ == "__main__":
    key = jax.random.PRNGKey(0)
    N, M, C, UNITS = 32, 20, 4, 64   # N pillars, M max points/pillar, (x,y,z,r), 64 out feats

    k_feat, k_np, k_cx, k_cy, k_w, k_g, k_b, k_rm, k_rv = jax.random.split(key, 9)

    num_points = jax.random.randint(k_np, (N,), 1, M + 1, dtype=jnp.int32)
    pts = jax.random.uniform(
        k_feat, (N, M, C), dtype=jnp.float32,
        minval=jnp.array([0.0, -40.0, -3.0, 0.0]),
        maxval=jnp.array([70.4, 40.0, 1.0, 1.0]))
    # zero out padded point rows (as a voxelizer would)
    valid = (jnp.arange(M)[None, :] < num_points[:, None]).astype(jnp.float32)[:, :, None]
    features = pts * valid

    cx = jax.random.randint(k_cx, (N,), 0, 352, dtype=jnp.int32)
    cy = jax.random.randint(k_cy, (N,), 0, 400, dtype=jnp.int32)
    coors = jnp.stack([jnp.zeros((N,), jnp.int32), jnp.zeros((N,), jnp.int32), cy, cx], axis=1)

    # deterministic synthetic parameters (Linear 10->64 no bias, BN1d(64) eval stats)
    w = 0.1 * jax.random.normal(k_w, (10, UNITS), dtype=jnp.float32)
    bn_gamma = 1.0 + 0.1 * jax.random.normal(k_g, (UNITS,), dtype=jnp.float32)
    bn_beta = 0.1 * jax.random.normal(k_b, (UNITS,), dtype=jnp.float32)
    bn_mean = 0.05 * jax.random.normal(k_rm, (UNITS,), dtype=jnp.float32)
    bn_var = jax.random.uniform(k_rv, (UNITS,), dtype=jnp.float32, minval=0.5, maxval=1.5)

    out = pillar_feature_net(features, num_points, coors, w, bn_gamma, bn_beta, bn_mean, bn_var)
    out = jax.block_until_ready(out)

    ref = _reference(features, num_points, coors, w, bn_gamma, bn_beta, bn_mean, bn_var)
    max_err = float(jnp.max(jnp.abs(out - ref)))
    assert out.shape == (N, UNITS), out.shape
    assert max_err < 1e-3, f"max abs error {max_err}"
    print("KERNEL_OK")
</pallas_src>

<mosaic_0001>
module attributes {stable_mosaic.version = 11 : i64} {
  func.func @_pillar_kernel(%arg0: i32, %arg1: memref<4x24x128xf32, #tpu.memory_space<vmem>>, %arg2: memref<1x128xf32, #tpu.memory_space<vmem>>, %arg3: memref<4x128xf32, #tpu.memory_space<vmem>>, %arg4: memref<64x8xf32, #tpu.memory_space<vmem>>, %arg5: memref<64x128xf32, #tpu.memory_space<vmem>>) attributes {dimension_semantics = [#tpu.dimension_semantics<parallel>], iteration_bounds = array<i64: 1>, scalar_prefetch = 0 : i64, scratch_operands = 0 : i64, tpu.core_type = #tpu.core_type<tc>, window_params = [{transform_indices = @transform_0, window_bounds = array<i64: 4, 24, 128>}, {transform_indices = @transform_1, window_bounds = array<i64: 1, 128>}, {transform_indices = @transform_2, window_bounds = array<i64: 4, 128>}, {pipeline_mode = #tpu.pipeline_mode<synchronous>, transform_indices = @transform_3, window_bounds = array<i64: 64, 8>}, {transform_indices = @transform_4, window_bounds = array<i64: 64, 128>}]} {
    %c0 = arith.constant 0 : index
    %c0_0 = arith.constant 0 : index
    %0 = vector.load %arg2[%c0, %c0_0] : memref<1x128xf32, #tpu.memory_space<vmem>>, vector<1x128xf32>
    %c0_1 = arith.constant 0 : index
    %c0_2 = arith.constant 0 : index
    %1 = vector.load %arg3[%c0_1, %c0_2] : memref<4x128xf32, #tpu.memory_space<vmem>>, vector<4x128xf32>
    %c0_3 = arith.constant 0 : index
    %c0_4 = arith.constant 0 : index
    %2 = vector.load %arg4[%c0_3, %c0_4] : memref<64x8xf32, #tpu.memory_space<vmem>>, vector<64x8xf32>
    %c0_5 = arith.constant 0 : index
    %c0_6 = arith.constant 0 : index
    %c0_7 = arith.constant 0 : index
    %3 = vector.load %arg1[%c0_5, %c0_6, %c0_7] : memref<4x24x128xf32, #tpu.memory_space<vmem>>, vector<1x24x128xf32>
    %4 = vector.shape_cast %3 : vector<1x24x128xf32> to vector<24x128xf32>
    %c1 = arith.constant 1 : index
    %c0_8 = arith.constant 0 : index
    %c0_9 = arith.constant 0 : index
    %5 = vector.load %arg1[%c1, %c0_8, %c0_9] : memref<4x24x128xf32, #tpu.memory_space<vmem>>, vector<1x24x128xf32>
    %6 = vector.shape_cast %5 : vector<1x24x128xf32> to vector<24x128xf32>
    %c2 = arith.constant 2 : index
    %c0_10 = arith.constant 0 : index
    %c0_11 = arith.constant 0 : index
    %7 = vector.load %arg1[%c2, %c0_10, %c0_11] : memref<4x24x128xf32, #tpu.memory_space<vmem>>, vector<1x24x128xf32>
    %8 = vector.shape_cast %7 : vector<1x24x128xf32> to vector<24x128xf32>
    %c3 = arith.constant 3 : index
    %c0_12 = arith.constant 0 : index
    %c0_13 = arith.constant 0 : index
    %9 = vector.load %arg1[%c3, %c0_12, %c0_13] : memref<4x24x128xf32, #tpu.memory_space<vmem>>, vector<1x24x128xf32>
    %10 = vector.shape_cast %9 : vector<1x24x128xf32> to vector<24x128xf32>
    %11 = tpu.iota {dimensions = array<i32: 0>} : vector<24x128xi32>
    %12 = arith.sitofp %11 : vector<24x128xi32> to vector<24x128xf32>
    %13 = vector.broadcast %0 : vector<1x128xf32> to vector<24x128xf32>
    %14 = arith.cmpf olt, %12, %13 : vector<24x128xf32>
    %15 = arith.extui %14 : vector<24x128xi1> to vector<24x128xi32>
    %16 = arith.sitofp %15 : vector<24x128xi32> to vector<24x128xf32>
    %17 = arith.mulf %4, %16 : vector<24x128xf32>
    %18 = arith.mulf %6, %16 : vector<24x128xf32>
    %19 = arith.mulf %8, %16 : vector<24x128xf32>
    %20 = arith.mulf %10, %16 : vector<24x128xf32>
    %cst = arith.constant 1.000000e+00 : f32
    %21 = vector.broadcast %cst : f32 to vector<1x128xf32>
    %22 = arith.maximumf %0, %21 : vector<1x128xf32>
    %cst_14 = arith.constant 1.000000e+00 : f32
    %23 = vector.broadcast %cst_14 : f32 to vector<1x128xf32>
    %24 = arith.divf %23, %22 : vector<1x128xf32>
    %cst_15 = arith.constant dense<0.000000e+00> : vector<128xf32>
    %25 = vector.multi_reduction <add>, %17, %cst_15 [0] : vector<24x128xf32> to vector<128xf32>
    %26 = vector.shape_cast %25 : vector<128xf32> to vector<1x128xf32>
    %27 = arith.mulf %26, %24 : vector<1x128xf32>
    %cst_16 = arith.constant dense<0.000000e+00> : vector<128xf32>
    %28 = vector.multi_reduction <add>, %18, %cst_16 [0] : vector<24x128xf32> to vector<128xf32>
    %29 = vector.shape_cast %28 : vector<128xf32> to vector<1x128xf32>
    %30 = arith.mulf %29, %24 : vector<1x128xf32>
    %cst_17 = arith.constant dense<0.000000e+00> : vector<128xf32>
    %31 = vector.multi_reduction <add>, %19, %cst_17 [0] : vector<24x128xf32> to vector<128xf32>
    %32 = vector.shape_cast %31 : vector<128xf32> to vector<1x128xf32>
    %33 = arith.mulf %32, %24 : vector<1x128xf32>
    %34 = vector.extract_strided_slice %1 {offsets = [3, 0], sizes = [1, 128], strides = [1, 1]} : vector<4x128xf32> to vector<1x128xf32>
    %cst_18 = arith.constant 2.000000e-01 : f32
    %35 = vector.broadcast %cst_18 : f32 to vector<1x128xf32>
    %36 = arith.mulf %34, %35 : vector<1x128xf32>
    %cst_19 = arith.constant 1.000000e-01 : f32
    %37 = vector.broadcast %cst_19 : f32 to vector<1x128xf32>
    %38 = arith.addf %36, %37 : vector<1x128xf32>
    %39 = vector.extract_strided_slice %1 {offsets = [2, 0], sizes = [1, 128], strides = [1, 1]} : vector<4x128xf32> to vector<1x128xf32>
    %cst_20 = arith.constant 2.000000e-01 : f32
    %40 = vector.broadcast %cst_20 : f32 to vector<1x128xf32>
    %41 = arith.mulf %39, %40 : vector<1x128xf32>
    %cst_21 = arith.constant -3.990000e+01 : f32
    %42 = vector.broadcast %cst_21 : f32 to vector<1x128xf32>
    %43 = arith.addf %41, %42 : vector<1x128xf32>
    %44 = vector.extract_strided_slice %1 {offsets = [1, 0], sizes = [1, 128], strides = [1, 1]} : vector<4x128xf32> to vector<1x128xf32>
    %cst_22 = arith.constant 4.000000e+00 : f32
    %45 = vector.broadcast %cst_22 : f32 to vector<1x128xf32>
    %46 = arith.mulf %44, %45 : vector<1x128xf32>
    %cst_23 = arith.constant -1.000000e+00 : f32
    %47 = vector.broadcast %cst_23 : f32 to vector<1x128xf32>
    %48 = arith.addf %46, %47 : vector<1x128xf32>
    %49 = vector.broadcast %38 : vector<1x128xf32> to vector<24x128xf32>
    %50 = arith.mulf %49, %16 : vector<24x128xf32>
    %51 = arith.subf %17, %50 : vector<24x128xf32>
    %52 = vector.broadcast %43 : vector<1x128xf32> to vector<24x128xf32>
    %53 = arith.mulf %52, %16 : vector<24x128xf32>
    %54 = arith.subf %18, %53 : vector<24x128xf32>
    %55 = vector.broadcast %48 : vector<1x128xf32> to vector<24x128xf32>
    %56 = arith.mulf %55, %16 : vector<24x128xf32>
    %57 = arith.subf %19, %56 : vector<24x128xf32>
    %58 = vector.extract_strided_slice %2 {offsets = [0, 0], sizes = [64, 1], strides = [1, 1]} : vector<64x8xf32> to vector<64x1xf32>
    %59 = vector.extract_strided_slice %2 {offsets = [0, 1], sizes = [64, 1], strides = [1, 1]} : vector<64x8xf32> to vector<64x1xf32>
    %60 = vector.extract_strided_slice %2 {offsets = [0, 2], sizes = [64, 1], strides = [1, 1]} : vector<64x8xf32> to vector<64x1xf32>
    %61 = vector.extract_strided_slice %2 {offsets = [0, 3], sizes = [64, 1], strides = [1, 1]} : vector<64x8xf32> to vector<64x1xf32>
    %62 = vector.extract_strided_slice %2 {offsets = [0, 4], sizes = [64, 1], strides = [1, 1]} : vector<64x8xf32> to vector<64x1xf32>
    %63 = vector.extract_strided_slice %2 {offsets = [0, 5], sizes = [64, 1], strides = [1, 1]} : vector<64x8xf32> to vector<64x1xf32>
    %64 = vector.extract_strided_slice %2 {offsets = [0, 6], sizes = [64, 1], strides = [1, 1]} : vector<64x8xf32> to vector<64x1xf32>
    %65 = vector.extract_strided_slice %2 {offsets = [0, 7], sizes = [64, 1], strides = [1, 1]} : vector<64x8xf32> to vector<64x1xf32>
    %66 = arith.subf %38, %27 : vector<1x128xf32>
    %67 = vector.broadcast %62 : vector<64x1xf32> to vector<64x128xf32>
    %68 = vector.broadcast %66 : vector<1x128xf32> to vector<64x128xf32>
    %69 = arith.mulf %67, %68 : vector<64x128xf32>
    %70 = arith.subf %43, %30 : vector<1x128xf32>
    %71 = vector.broadcast %63 : vector<64x1xf32> to vector<64x128xf32>
    %72 = vector.broadcast %70 : vector<1x128xf32> to vector<64x128xf32>
    %73 = arith.mulf %71, %72 : vector<64x128xf32>
    %74 = arith.addf %69, %73 : vector<64x128xf32>
    %75 = arith.subf %48, %33 : vector<1x128xf32>
    %76 = vector.broadcast %64 : vector<64x1xf32> to vector<64x128xf32>
    %77 = vector.broadcast %75 : vector<1x128xf32> to vector<64x128xf32>
    %78 = arith.mulf %76, %77 : vector<64x128xf32>
    %79 = arith.addf %74, %78 : vector<64x128xf32>
    %80 = vector.extract_strided_slice %51 {offsets = [0, 0], sizes = [1, 128], strides = [1, 1]} : vector<24x128xf32> to vector<1x128xf32>
    %81 = vector.broadcast %80 : vector<1x128xf32> to vector<64x128xf32>
    %82 = vector.broadcast %58 : vector<64x1xf32> to vector<64x128xf32>
    %83 = arith.mulf %81, %82 : vector<64x128xf32>
    %84 = vector.extract_strided_slice %54 {offsets = [0, 0], sizes = [1, 128], strides = [1, 1]} : vector<24x128xf32> to vector<1x128xf32>
    %85 = vector.broadcast %84 : vector<1x128xf32> to vector<64x128xf32>
    %86 = vector.broadcast %59 : vector<64x1xf32> to vector<64x128xf32>
    %87 = arith.mulf %85, %86 : vector<64x128xf32>
    %88 = arith.addf %83, %87 : vector<64x128xf32>
    %89 = vector.extract_strided_slice %57 {offsets = [0, 0], sizes = [1, 128], strides = [1, 1]} : vector<24x128xf32> to vector<1x128xf32>
    %90 = vector.broadcast %89 : vector<1x128xf32> to vector<64x128xf32>
    %91 = vector.broadcast %60 : vector<64x1xf32> to vector<64x128xf32>
    %92 = arith.mulf %90, %91 : vector<64x128xf32>
    %93 = arith.addf %88, %92 : vector<64x128xf32>
    %94 = vector.extract_strided_slice %20 {offsets = [0, 0], sizes = [1, 128], strides = [1, 1]} : vector<24x128xf32> to vector<1x128xf32>
    %95 = vector.broadcast %94 : vector<1x128xf32> to vector<64x128xf32>
    %96 = vector.broadcast %61 : vector<64x1xf32> to vector<64x128xf32>
    %97 = arith.mulf %95, %96 : vector<64x128xf32>
    %98 = arith.addf %93, %97 : vector<64x128xf32>
    %99 = vector.extract_strided_slice %16 {offsets = [0, 0], sizes = [1, 128], strides = [1, 1]} : vector<24x128xf32> to vector<1x128xf32>
    %100 = vector.broadcast %99 : vector<1x128xf32> to vector<64x128xf32>
    %101 = arith.mulf %100, %79 : vector<64x128xf32>
    %102 = arith.addf %98, %101 : vector<64x128xf32>
    %103 = vector.extract_strided_slice %51 {offsets = [1, 0], sizes = [1, 128], strides = [1, 1]} : vector<24x128xf32> to vector<1x128xf32>
    %104 = vector.broadcast %103 : vector<1x128xf32> to vector<64x128xf32>
    %105 = vector.broadcast %58 : vector<64x1xf32> to vector<64x128xf32>
    %106 = arith.mulf %104, %105 : vector<64x128xf32>
    %107 = vector.extract_strided_slice %54 {offsets = [1, 0], sizes = [1, 128], strides = [1, 1]} : vector<24x128xf32> to vector<1x128xf32>
    %108 = vector.broadcast %107 : vector<1x128xf32> to vector<64x128xf32>
    %109 = vector.broadcast %59 : vector<64x1xf32> to vector<64x128xf32>
    %110 = arith.mulf %108, %109 : vector<64x128xf32>
    %111 = arith.addf %106, %110 : vector<64x128xf32>
    %112 = vector.extract_strided_slice %57 {offsets = [1, 0], sizes = [1, 128], strides = [1, 1]} : vector<24x128xf32> to vector<1x128xf32>
    %113 = vector.broadcast %112 : vector<1x128xf32> to vector<64x128xf32>
    %114 = vector.broadcast %60 : vector<64x1xf32> to vector<64x128xf32>
    %115 = arith.mulf %113, %114 : vector<64x128xf32>
    %116 = arith.addf %111, %115 : vector<64x128xf32>
    %117 = vector.extract_strided_slice %20 {offsets = [1, 0], sizes = [1, 128], strides = [1, 1]} : vector<24x128xf32> to vector<1x128xf32>
    %118 = vector.broadcast %117 : vector<1x128xf32> to vector<64x128xf32>
    %119 = vector.broadcast %61 : vector<64x1xf32> to vector<64x128xf32>
    %120 = arith.mulf %118, %119 : vector<64x128xf32>
    %121 = arith.addf %116, %120 : vector<64x128xf32>
    %122 = vector.extract_strided_slice %16 {offsets = [1, 0], sizes = [1, 128], strides = [1, 1]} : vector<24x128xf32> to vector<1x128xf32>
    %123 = vector.broadcast %122 : vector<1x128xf32> to vector<64x128xf32>
    %124 = arith.mulf %123, %79 : vector<64x128xf32>
    %125 = arith.addf %121, %124 : vector<64x128xf32>
    %126 = arith.maximumf %102, %125 : vector<64x128xf32>
    %127 = vector.extract_strided_slice %51 {offsets = [2, 0], sizes = [1, 128], strides = [1, 1]} : vector<24x128xf32> to vector<1x128xf32>
    %128 = vector.broadcast %127 : vector<1x128xf32> to vector<64x128xf32>
    %129 = vector.broadcast %58 : vector<64x1xf32> to vector<64x128xf32>
    %130 = arith.mulf %128, %129 : vector<64x128xf32>
    %131 = vector.extract_strided_slice %54 {offsets = [2, 0], sizes = [1, 128], strides = [1, 1]} : vector<24x128xf32> to vector<1x128xf32>
    %132 = vector.broadcast %131 : vector<1x128xf32> to vector<64x128xf32>
    %133 = vector.broadcast %59 : vector<64x1xf32> to vector<64x128xf32>
    %134 = arith.mulf %132, %133 : vector<64x128xf32>
    %135 = arith.addf %130, %134 : vector<64x128xf32>
    %136 = vector.extract_strided_slice %57 {offsets = [2, 0], sizes = [1, 128], strides = [1, 1]} : vector<24x128xf32> to vector<1x128xf32>
    %137 = vector.broadcast %136 : vector<1x128xf32> to vector<64x128xf32>
    %138 = vector.broadcast %60 : vector<64x1xf32> to vector<64x128xf32>
    %139 = arith.mulf %137, %138 : vector<64x128xf32>
    %140 = arith.addf %135, %139 : vector<64x128xf32>
    %141 = vector.extract_strided_slice %20 {offsets = [2, 0], sizes = [1, 128], strides = [1, 1]} : vector<24x128xf32> to vector<1x128xf32>
    %142 = vector.broadcast %141 : vector<1x128xf32> to vector<64x128xf32>
    %143 = vector.broadcast %61 : vector<64x1xf32> to vector<64x128xf32>
    %144 = arith.mulf %142, %143 : vector<64x128xf32>
    %145 = arith.addf %140, %144 : vector<64x128xf32>
    %146 = vector.extract_strided_slice %16 {offsets = [2, 0], sizes = [1, 128], strides = [1, 1]} : vector<24x128xf32> to vector<1x128xf32>
    %147 = vector.broadcast %146 : vector<1x128xf32> to vector<64x128xf32>
    %148 = arith.mulf %147, %79 : vector<64x128xf32>
    %149 = arith.addf %145, %148 : vector<64x128xf32>
    %150 = arith.maximumf %126, %149 : vector<64x128xf32>
    %151 = vector.extract_strided_slice %51 {offsets = [3, 0], sizes = [1, 128], strides = [1, 1]} : vector<24x128xf32> to vector<1x128xf32>
    %152 = vector.broadcast %151 : vector<1x128xf32> to vector<64x128xf32>
    %153 = vector.broadcast %58 : vector<64x1xf32> to vector<64x128xf32>
    %154 = arith.mulf %152, %153 : vector<64x128xf32>
    %155 = vector.extract_strided_slice %54 {offsets = [3, 0], sizes = [1, 128], strides = [1, 1]} : vector<24x128xf32> to vector<1x128xf32>
    %156 = vector.broadcast %155 : vector<1x128xf32> to vector<64x128xf32>
    %157 = vector.broadcast %59 : vector<64x1xf32> to vector<64x128xf32>
    %158 = arith.mulf %156, %157 : vector<64x128xf32>
    %159 = arith.addf %154, %158 : vector<64x128xf32>
    %160 = vector.extract_strided_slice %57 {offsets = [3, 0], sizes = [1, 128], strides = [1, 1]} : vector<24x128xf32> to vector<1x128xf32>
    %161 = vector.broadcast %160 : vector<1x128xf32> to vector<64x128xf32>
    %162 = vector.broadcast %60 : vector<64x1xf32> to vector<64x128xf32>
    %163 = arith.mulf %161, %162 : vector<64x128xf32>
    %164 = arith.addf %159, %163 : vector<64x128xf32>
    %165 = vector.extract_strided_slice %20 {offsets = [3, 0], sizes = [1, 128], strides = [1, 1]} : vector<24x128xf32> to vector<1x128xf32>
    %166 = vector.broadcast %165 : vector<1x128xf32> to vector<64x128xf32>
    %167 = vector.broadcast %61 : vector<64x1xf32> to vector<64x128xf32>
    %168 = arith.mulf %166, %167 : vector<64x128xf32>
    %169 = arith.addf %164, %168 : vector<64x128xf32>
    %170 = vector.extract_strided_slice %16 {offsets = [3, 0], sizes = [1, 128], strides = [1, 1]} : vector<24x128xf32> to vector<1x128xf32>
    %171 = vector.broadcast %170 : vector<1x128xf32> to vector<64x128xf32>
    %172 = arith.mulf %171, %79 : vector<64x128xf32>
    %173 = arith.addf %169, %172 : vector<64x128xf32>
    %174 = arith.maximumf %150, %173 : vector<64x128xf32>
    %175 = vector.extract_strided_slice %51 {offsets = [4, 0], sizes = [1, 128], strides = [1, 1]} : vector<24x128xf32> to vector<1x128xf32>
    %176 = vector.broadcast %175 : vector<1x128xf32> to vector<64x128xf32>
    %177 = vector.broadcast %58 : vector<64x1xf32> to vector<64x128xf32>
    %178 = arith.mulf %176, %177 : vector<64x128xf32>
    %179 = vector.extract_strided_slice %54 {offsets = [4, 0], sizes = [1, 128], strides = [1, 1]} : vector<24x128xf32> to vector<1x128xf32>
    %180 = vector.broadcast %179 : vector<1x128xf32> to vector<64x128xf32>
    %181 = vector.broadcast %59 : vector<64x1xf32> to vector<64x128xf32>
    %182 = arith.mulf %180, %181 : vector<64x128xf32>
    %183 = arith.addf %178, %182 : vector<64x128xf32>
    %184 = vector.extract_strided_slice %57 {offsets = [4, 0], sizes = [1, 128], strides = [1, 1]} : vector<24x128xf32> to vector<1x128xf32>
    %185 = vector.broadcast %184 : vector<1x128xf32> to vector<64x128xf32>
    %186 = vector.broadcast %60 : vector<64x1xf32> to vector<64x128xf32>
    %187 = arith.mulf %185, %186 : vector<64x128xf32>
    %188 = arith.addf %183, %187 : vector<64x128xf32>
    %189 = vector.extract_strided_slice %20 {offsets = [4, 0], sizes = [1, 128], strides = [1, 1]} : vector<24x128xf32> to vector<1x128xf32>
    %190 = vector.broadcast %189 : vector<1x128xf32> to vector<64x128xf32>
    %191 = vector.broadcast %61 : vector<64x1xf32> to vector<64x128xf32>
    %192 = arith.mulf %190, %191 : vector<64x128xf32>
    %193 = arith.addf %188, %192 : vector<64x128xf32>
    %194 = vector.extract_strided_slice %16 {offsets = [4, 0], sizes = [1, 128], strides = [1, 1]} : vector<24x128xf32> to vector<1x128xf32>
    %195 = vector.broadcast %194 : vector<1x128xf32> to vector<64x128xf32>
    %196 = arith.mulf %195, %79 : vector<64x128xf32>
    %197 = arith.addf %193, %196 : vector<64x128xf32>
    %198 = arith.maximumf %174, %197 : vector<64x128xf32>
    %199 = vector.extract_strided_slice %51 {offsets = [5, 0], sizes = [1, 128], strides = [1, 1]} : vector<24x128xf32> to vector<1x128xf32>
    %200 = vector.broadcast %199 : vector<1x128xf32> to vector<64x128xf32>
    %201 = vector.broadcast %58 : vector<64x1xf32> to vector<64x128xf32>
    %202 = arith.mulf %200, %201 : vector<64x128xf32>
    %203 = vector.extract_strided_slice %54 {offsets = [5, 0], sizes = [1, 128], strides = [1, 1]} : vector<24x128xf32> to vector<1x128xf32>
    %204 = vector.broadcast %203 : vector<1x128xf32> to vector<64x128xf32>
    %205 = vector.broadcast %59 : vector<64x1xf32> to vector<64x128xf32>
    %206 = arith.mulf %204, %205 : vector<64x128xf32>
    %207 = arith.addf %202, %206 : vector<64x128xf32>
    %208 = vector.extract_strided_slice %57 {offsets = [5, 0], sizes = [1, 128], strides = [1, 1]} : vector<24x128xf32> to vector<1x128xf32>
    %209 = vector.broadcast %208 : vector<1x128xf32> to vector<64x128xf32>
    %210 = vector.broadcast %60 : vector<64x1xf32> to vector<64x128xf32>
    %211 = arith.mulf %209, %210 : vector<64x128xf32>
    %212 = arith.addf %207, %211 : vector<64x128xf32>
    %213 = vector.extract_strided_slice %20 {offsets = [5, 0], sizes = [1, 128], strides = [1, 1]} : vector<24x128xf32> to vector<1x128xf32>
    %214 = vector.broadcast %213 : vector<1x128xf32> to vector<64x128xf32>
    %215 = vector.broadcast %61 : vector<64x1xf32> to vector<64x128xf32>
    %216 = arith.mulf %214, %215 : vector<64x128xf32>
    %217 = arith.addf %212, %216 : vector<64x128xf32>
    %218 = vector.extract_strided_slice %16 {offsets = [5, 0], sizes = [1, 128], strides = [1, 1]} : vector<24x128xf32> to vector<1x128xf32>
    %219 = vector.broadcast %218 : vector<1x128xf32> to vector<64x128xf32>
    %220 = arith.mulf %219, %79 : vector<64x128xf32>
    %221 = arith.addf %217, %220 : vector<64x128xf32>
    %222 = arith.maximumf %198, %221 : vector<64x128xf32>
    %223 = vector.extract_strided_slice %51 {offsets = [6, 0], sizes = [1, 128], strides = [1, 1]} : vector<24x128xf32> to vector<1x128xf32>
    %224 = vector.broadcast %223 : vector<1x128xf32> to vector<64x128xf32>
    %225 = vector.broadcast %58 : vector<64x1xf32> to vector<64x128xf32>
    %226 = arith.mulf %224, %225 : vector<64x128xf32>
    %227 = vector.extract_strided_slice %54 {offsets = [6, 0], sizes = [1, 128], strides = [1, 1]} : vector<24x128xf32> to vector<1x128xf32>
    %228 = vector.broadcast %227 : vector<1x128xf32> to vector<64x128xf32>
    %229 = vector.broadcast %59 : vector<64x1xf32> to vector<64x128xf32>
    %230 = arith.mulf %228, %229 : vector<64x128xf32>
    %231 = arith.addf %226, %230 : vector<64x128xf32>
    %232 = vector.extract_strided_slice %57 {offsets = [6, 0], sizes = [1, 128], strides = [1, 1]} : vector<24x128xf32> to vector<1x128xf32>
    %233 = vector.broadcast %232 : vector<1x128xf32> to vector<64x128xf32>
    %234 = vector.broadcast %60 : vector<64x1xf32> to vector<64x128xf32>
    %235 = arith.mulf %233, %234 : vector<64x128xf32>
    %236 = arith.addf %231, %235 : vector<64x128xf32>
    %237 = vector.extract_strided_slice %20 {offsets = [6, 0], sizes = [1, 128], strides = [1, 1]} : vector<24x128xf32> to vector<1x128xf32>
    %238 = vector.broadcast %237 : vector<1x128xf32> to vector<64x128xf32>
    %239 = vector.broadcast %61 : vector<64x1xf32> to vector<64x128xf32>
    %240 = arith.mulf %238, %239 : vector<64x128xf32>
    %241 = arith.addf %236, %240 : vector<64x128xf32>
    %242 = vector.extract_strided_slice %16 {offsets = [6, 0], sizes = [1, 128], strides = [1, 1]} : vector<24x128xf32> to vector<1x128xf32>
    %243 = vector.broadcast %242 : vector<1x128xf32> to vector<64x128xf32>
    %244 = arith.mulf %243, %79 : vector<64x128xf32>
    %245 = arith.addf %241, %244 : vector<64x128xf32>
    %246 = arith.maximumf %222, %245 : vector<64x128xf32>
    %247 = vector.extract_strided_slice %51 {offsets = [7, 0], sizes = [1, 128], strides = [1, 1]} : vector<24x128xf32> to vector<1x128xf32>
    %248 = vector.broadcast %247 : vector<1x128xf32> to vector<64x128xf32>
    %249 = vector.broadcast %58 : vector<64x1xf32> to vector<64x128xf32>
    %250 = arith.mulf %248, %249 : vector<64x128xf32>
    %251 = vector.extract_strided_slice %54 {offsets = [7, 0], sizes = [1, 128], strides = [1, 1]} : vector<24x128xf32> to vector<1x128xf32>
    %252 = vector.broadcast %251 : vector<1x128xf32> to vector<64x128xf32>
    %253 = vector.broadcast %59 : vector<64x1xf32> to vector<64x128xf32>
    %254 = arith.mulf %252, %253 : vector<64x128xf32>
    %255 = arith.addf %250, %254 : vector<64x128xf32>
    %256 = vector.extract_strided_slice %57 {offsets = [7, 0], sizes = [1, 128], strides = [1, 1]} : vector<24x128xf32> to vector<1x128xf32>
    %257 = vector.broadcast %256 : vector<1x128xf32> to vector<64x128xf32>
    %258 = vector.broadcast %60 : vector<64x1xf32> to vector<64x128xf32>
    %259 = arith.mulf %257, %258 : vector<64x128xf32>
    %260 = arith.addf %255, %259 : vector<64x128xf32>
    %261 = vector.extract_strided_slice %20 {offsets = [7, 0], sizes = [1, 128], strides = [1, 1]} : vector<24x128xf32> to vector<1x128xf32>
    %262 = vector.broadcast %261 : vector<1x128xf32> to vector<64x128xf32>
    %263 = vector.broadcast %61 : vector<64x1xf32> to vector<64x128xf32>
    %264 = arith.mulf %262, %263 : vector<64x128xf32>
    %265 = arith.addf %260, %264 : vector<64x128xf32>
    %266 = vector.extract_strided_slice %16 {offsets = [7, 0], sizes = [1, 128], strides = [1, 1]} : vector<24x128xf32> to vector<1x128xf32>
    %267 = vector.broadcast %266 : vector<1x128xf32> to vector<64x128xf32>
    %268 = arith.mulf %267, %79 : vector<64x128xf32>
    %269 = arith.addf %265, %268 : vector<64x128xf32>
    %270 = arith.maximumf %246, %269 : vector<64x128xf32>
    %271 = vector.extract_strided_slice %51 {offsets = [8, 0], sizes = [1, 128], strides = [1, 1]} : vector<24x128xf32> to vector<1x128xf32>
    %272 = vector.broadcast %271 : vector<1x128xf32> to vector<64x128xf32>
    %273 = vector.broadcast %58 : vector<64x1xf32> to vector<64x128xf32>
    %274 = arith.mulf %272, %273 : vector<64x128xf32>
    %275 = vector.extract_strided_slice %54 {offsets = [8, 0], sizes = [1, 128], strides = [1, 1]} : vector<24x128xf32> to vector<1x128xf32>
    %276 = vector.broadcast %275 : vector<1x128xf32> to vector<64x128xf32>
    %277 = vector.broadcast %59 : vector<64x1xf32> to vector<64x128xf32>
    %278 = arith.mulf %276, %277 : vector<64x128xf32>
    %279 = arith.addf %274, %278 : vector<64x128xf32>
    %280 = vector.extract_strided_slice %57 {offsets = [8, 0], sizes = [1, 128], strides = [1, 1]} : vector<24x128xf32> to vector<1x128xf32>
    %281 = vector.broadcast %280 : vector<1x128xf32> to vector<64x128xf32>
    %282 = vector.broadcast %60 : vector<64x1xf32> to vector<64x128xf32>
    %283 = arith.mulf %281, %282 : vector<64x128xf32>
    %284 = arith.addf %279, %283 : vector<64x128xf32>
    %285 = vector.extract_strided_slice %20 {offsets = [8, 0], sizes = [1, 128], strides = [1, 1]} : vector<24x128xf32> to vector<1x128xf32>
    %286 = vector.broadcast %285 : vector<1x128xf32> to vector<64x128xf32>
    %287 = vector.broadcast %61 : vector<64x1xf32> to vector<64x128xf32>
    %288 = arith.mulf %286, %287 : vector<64x128xf32>
    %289 = arith.addf %284, %288 : vector<64x128xf32>
    %290 = vector.extract_strided_slice %16 {offsets = [8, 0], sizes = [1, 128], strides = [1, 1]} : vector<24x128xf32> to vector<1x128xf32>
    %291 = vector.broadcast %290 : vector<1x128xf32> to vector<64x128xf32>
    %292 = arith.mulf %291, %79 : vector<64x128xf32>
    %293 = arith.addf %289, %292 : vector<64x128xf32>
    %294 = arith.maximumf %270, %293 : vector<64x128xf32>
    %295 = vector.extract_strided_slice %51 {offsets = [9, 0], sizes = [1, 128], strides = [1, 1]} : vector<24x128xf32> to vector<1x128xf32>
    %296 = vector.broadcast %295 : vector<1x128xf32> to vector<64x128xf32>
    %297 = vector.broadcast %58 : vector<64x1xf32> to vector<64x128xf32>
    %298 = arith.mulf %296, %297 : vector<64x128xf32>
    %299 = vector.extract_strided_slice %54 {offsets = [9, 0], sizes = [1, 128], strides = [1, 1]} : vector<24x128xf32> to vector<1x128xf32>
    %300 = vector.broadcast %299 : vector<1x128xf32> to vector<64x128xf32>
    %301 = vector.broadcast %59 : vector<64x1xf32> to vector<64x128xf32>
    %302 = arith.mulf %300, %301 : vector<64x128xf32>
    %303 = arith.addf %298, %302 : vector<64x128xf32>
    %304 = vector.extract_strided_slice %57 {offsets = [9, 0], sizes = [1, 128], strides = [1, 1]} : vector<24x128xf32> to vector<1x128xf32>
    %305 = vector.broadcast %304 : vector<1x128xf32> to vector<64x128xf32>
    %306 = vector.broadcast %60 : vector<64x1xf32> to vector<64x128xf32>
    %307 = arith.mulf %305, %306 : vector<64x128xf32>
    %308 = arith.addf %303, %307 : vector<64x128xf32>
    %309 = vector.extract_strided_slice %20 {offsets = [9, 0], sizes = [1, 128], strides = [1, 1]} : vector<24x128xf32> to vector<1x128xf32>
    %310 = vector.broadcast %309 : vector<1x128xf32> to vector<64x128xf32>
    %311 = vector.broadcast %61 : vector<64x1xf32> to vector<64x128xf32>
    %312 = arith.mulf %310, %311 : vector<64x128xf32>
    %313 = arith.addf %308, %312 : vector<64x128xf32>
    %314 = vector.extract_strided_slice %16 {offsets = [9, 0], sizes = [1, 128], strides = [1, 1]} : vector<24x128xf32> to vector<1x128xf32>
    %315 = vector.broadcast %314 : vector<1x128xf32> to vector<64x128xf32>
    %316 = arith.mulf %315, %79 : vector<64x128xf32>
    %317 = arith.addf %313, %316 : vector<64x128xf32>
    %318 = arith.maximumf %294, %317 : vector<64x128xf32>
    %319 = vector.extract_strided_slice %51 {offsets = [10, 0], sizes = [1, 128], strides = [1, 1]} : vector<24x128xf32> to vector<1x128xf32>
    %320 = vector.broadcast %319 : vector<1x128xf32> to vector<64x128xf32>
    %321 = vector.broadcast %58 : vector<64x1xf32> to vector<64x128xf32>
    %322 = arith.mulf %320, %321 : vector<64x128xf32>
    %323 = vector.extract_strided_slice %54 {offsets = [10, 0], sizes = [1, 128], strides = [1, 1]} : vector<24x128xf32> to vector<1x128xf32>
    %324 = vector.broadcast %323 : vector<1x128xf32> to vector<64x128xf32>
    %325 = vector.broadcast %59 : vector<64x1xf32> to vector<64x128xf32>
    %326 = arith.mulf %324, %325 : vector<64x128xf32>
    %327 = arith.addf %322, %326 : vector<64x128xf32>
    %328 = vector.extract_strided_slice %57 {offsets = [10, 0], sizes = [1, 128], strides = [1, 1]} : vector<24x128xf32> to vector<1x128xf32>
    %329 = vector.broadcast %328 : vector<1x128xf32> to vector<64x128xf32>
    %330 = vector.broadcast %60 : vector<64x1xf32> to vector<64x128xf32>
    %331 = arith.mulf %329, %330 : vector<64x128xf32>
    %332 = arith.addf %327, %331 : vector<64x128xf32>
    %333 = vector.extract_strided_slice %20 {offsets = [10, 0], sizes = [1, 128], strides = [1, 1]} : vector<24x128xf32> to vector<1x128xf32>
    %334 = vector.broadcast %333 : vector<1x128xf32> to vector<64x128xf32>
    %335 = vector.broadcast %61 : vector<64x1xf32> to vector<64x128xf32>
    %336 = arith.mulf %334, %335 : vector<64x128xf32>
    %337 = arith.addf %332, %336 : vector<64x128xf32>
    %338 = vector.extract_strided_slice %16 {offsets = [10, 0], sizes = [1, 128], strides = [1, 1]} : vector<24x128xf32> to vector<1x128xf32>
    %339 = vector.broadcast %338 : vector<1x128xf32> to vector<64x128xf32>
    %340 = arith.mulf %339, %79 : vector<64x128xf32>
    %341 = arith.addf %337, %340 : vector<64x128xf32>
    %342 = arith.maximumf %318, %341 : vector<64x128xf32>
    %343 = vector.extract_strided_slice %51 {offsets = [11, 0], sizes = [1, 128], strides = [1, 1]} : vector<24x128xf32> to vector<1x128xf32>
    %344 = vector.broadcast %343 : vector<1x128xf32> to vector<64x128xf32>
    %345 = vector.broadcast %58 : vector<64x1xf32> to vector<64x128xf32>
    %346 = arith.mulf %344, %345 : vector<64x128xf32>
    %347 = vector.extract_strided_slice %54 {offsets = [11, 0], sizes = [1, 128], strides = [1, 1]} : vector<24x128xf32> to vector<1x128xf32>
    %348 = vector.broadcast %347 : vector<1x128xf32> to vector<64x128xf32>
    %349 = vector.broadcast %59 : vector<64x1xf32> to vector<64x128xf32>
    %350 = arith.mulf %348, %349 : vector<64x128xf32>
    %351 = arith.addf %346, %350 : vector<64x128xf32>
    %352 = vector.extract_strided_slice %57 {offsets = [11, 0], sizes = [1, 128], strides = [1, 1]} : vector<24x128xf32> to vector<1x128xf32>
    %353 = vector.broadcast %352 : vector<1x128xf32> to vector<64x128xf32>
    %354 = vector.broadcast %60 : vector<64x1xf32> to vector<64x128xf32>
    %355 = arith.mulf %353, %354 : vector<64x128xf32>
    %356 = arith.addf %351, %355 : vector<64x128xf32>
    %357 = vector.extract_strided_slice %20 {offsets = [11, 0], sizes = [1, 128], strides = [1, 1]} : vector<24x128xf32> to vector<1x128xf32>
    %358 = vector.broadcast %357 : vector<1x128xf32> to vector<64x128xf32>
    %359 = vector.broadcast %61 : vector<64x1xf32> to vector<64x128xf32>
    %360 = arith.mulf %358, %359 : vector<64x128xf32>
    %361 = arith.addf %356, %360 : vector<64x128xf32>
    %362 = vector.extract_strided_slice %16 {offsets = [11, 0], sizes = [1, 128], strides = [1, 1]} : vector<24x128xf32> to vector<1x128xf32>
    %363 = vector.broadcast %362 : vector<1x128xf32> to vector<64x128xf32>
    %364 = arith.mulf %363, %79 : vector<64x128xf32>
    %365 = arith.addf %361, %364 : vector<64x128xf32>
    %366 = arith.maximumf %342, %365 : vector<64x128xf32>
    %367 = vector.extract_strided_slice %51 {offsets = [12, 0], sizes = [1, 128], strides = [1, 1]} : vector<24x128xf32> to vector<1x128xf32>
    %368 = vector.broadcast %367 : vector<1x128xf32> to vector<64x128xf32>
    %369 = vector.broadcast %58 : vector<64x1xf32> to vector<64x128xf32>
    %370 = arith.mulf %368, %369 : vector<64x128xf32>
    %371 = vector.extract_strided_slice %54 {offsets = [12, 0], sizes = [1, 128], strides = [1, 1]} : vector<24x128xf32> to vector<1x128xf32>
    %372 = vector.broadcast %371 : vector<1x128xf32> to vector<64x128xf32>
    %373 = vector.broadcast %59 : vector<64x1xf32> to vector<64x128xf32>
    %374 = arith.mulf %372, %373 : vector<64x128xf32>
    %375 = arith.addf %370, %374 : vector<64x128xf32>
    %376 = vector.extract_strided_slice %57 {offsets = [12, 0], sizes = [1, 128], strides = [1, 1]} : vector<24x128xf32> to vector<1x128xf32>
    %377 = vector.broadcast %376 : vector<1x128xf32> to vector<64x128xf32>
    %378 = vector.broadcast %60 : vector<64x1xf32> to vector<64x128xf32>
    %379 = arith.mulf %377, %378 : vector<64x128xf32>
    %380 = arith.addf %375, %379 : vector<64x128xf32>
    %381 = vector.extract_strided_slice %20 {offsets = [12, 0], sizes = [1, 128], strides = [1, 1]} : vector<24x128xf32> to vector<1x128xf32>
    %382 = vector.broadcast %381 : vector<1x128xf32> to vector<64x128xf32>
    %383 = vector.broadcast %61 : vector<64x1xf32> to vector<64x128xf32>
    %384 = arith.mulf %382, %383 : vector<64x128xf32>
    %385 = arith.addf %380, %384 : vector<64x128xf32>
    %386 = vector.extract_strided_slice %16 {offsets = [12, 0], sizes = [1, 128], strides = [1, 1]} : vector<24x128xf32> to vector<1x128xf32>
    %387 = vector.broadcast %386 : vector<1x128xf32> to vector<64x128xf32>
    %388 = arith.mulf %387, %79 : vector<64x128xf32>
    %389 = arith.addf %385, %388 : vector<64x128xf32>
    %390 = arith.maximumf %366, %389 : vector<64x128xf32>
    %391 = vector.extract_strided_slice %51 {offsets = [13, 0], sizes = [1, 128], strides = [1, 1]} : vector<24x128xf32> to vector<1x128xf32>
    %392 = vector.broadcast %391 : vector<1x128xf32> to vector<64x128xf32>
    %393 = vector.broadcast %58 : vector<64x1xf32> to vector<64x128xf32>
    %394 = arith.mulf %392, %393 : vector<64x128xf32>
    %395 = vector.extract_strided_slice %54 {offsets = [13, 0], sizes = [1, 128], strides = [1, 1]} : vector<24x128xf32> to vector<1x128xf32>
    %396 = vector.broadcast %395 : vector<1x128xf32> to vector<64x128xf32>
    %397 = vector.broadcast %59 : vector<64x1xf32> to vector<64x128xf32>
    %398 = arith.mulf %396, %397 : vector<64x128xf32>
    %399 = arith.addf %394, %398 : vector<64x128xf32>
    %400 = vector.extract_strided_slice %57 {offsets = [13, 0], sizes = [1, 128], strides = [1, 1]} : vector<24x128xf32> to vector<1x128xf32>
    %401 = vector.broadcast %400 : vector<1x128xf32> to vector<64x128xf32>
    %402 = vector.broadcast %60 : vector<64x1xf32> to vector<64x128xf32>
    %403 = arith.mulf %401, %402 : vector<64x128xf32>
    %404 = arith.addf %399, %403 : vector<64x128xf32>
    %405 = vector.extract_strided_slice %20 {offsets = [13, 0], sizes = [1, 128], strides = [1, 1]} : vector<24x128xf32> to vector<1x128xf32>
    %406 = vector.broadcast %405 : vector<1x128xf32> to vector<64x128xf32>
    %407 = vector.broadcast %61 : vector<64x1xf32> to vector<64x128xf32>
    %408 = arith.mulf %406, %407 : vector<64x128xf32>
    %409 = arith.addf %404, %408 : vector<64x128xf32>
    %410 = vector.extract_strided_slice %16 {offsets = [13, 0], sizes = [1, 128], strides = [1, 1]} : vector<24x128xf32> to vector<1x128xf32>
    %411 = vector.broadcast %410 : vector<1x128xf32> to vector<64x128xf32>
    %412 = arith.mulf %411, %79 : vector<64x128xf32>
    %413 = arith.addf %409, %412 : vector<64x128xf32>
    %414 = arith.maximumf %390, %413 : vector<64x128xf32>
    %415 = vector.extract_strided_slice %51 {offsets = [14, 0], sizes = [1, 128], strides = [1, 1]} : vector<24x128xf32> to vector<1x128xf32>
    %416 = vector.broadcast %415 : vector<1x128xf32> to vector<64x128xf32>
    %417 = vector.broadcast %58 : vector<64x1xf32> to vector<64x128xf32>
    %418 = arith.mulf %416, %417 : vector<64x128xf32>
    %419 = vector.extract_strided_slice %54 {offsets = [14, 0], sizes = [1, 128], strides = [1, 1]} : vector<24x128xf32> to vector<1x128xf32>
    %420 = vector.broadcast %419 : vector<1x128xf32> to vector<64x128xf32>
    %421 = vector.broadcast %59 : vector<64x1xf32> to vector<64x128xf32>
    %422 = arith.mulf %420, %421 : vector<64x128xf32>
    %423 = arith.addf %418, %422 : vector<64x128xf32>
    %424 = vector.extract_strided_slice %57 {offsets = [14, 0], sizes = [1, 128], strides = [1, 1]} : vector<24x128xf32> to vector<1x128xf32>
    %425 = vector.broadcast %424 : vector<1x128xf32> to vector<64x128xf32>
    %426 = vector.broadcast %60 : vector<64x1xf32> to vector<64x128xf32>
    %427 = arith.mulf %425, %426 : vector<64x128xf32>
    %428 = arith.addf %423, %427 : vector<64x128xf32>
    %429 = vector.extract_strided_slice %20 {offsets = [14, 0], sizes = [1, 128], strides = [1, 1]} : vector<24x128xf32> to vector<1x128xf32>
    %430 = vector.broadcast %429 : vector<1x128xf32> to vector<64x128xf32>
    %431 = vector.broadcast %61 : vector<64x1xf32> to vector<64x128xf32>
    %432 = arith.mulf %430, %431 : vector<64x128xf32>
    %433 = arith.addf %428, %432 : vector<64x128xf32>
    %434 = vector.extract_strided_slice %16 {offsets = [14, 0], sizes = [1, 128], strides = [1, 1]} : vector<24x128xf32> to vector<1x128xf32>
    %435 = vector.broadcast %434 : vector<1x128xf32> to vector<64x128xf32>
    %436 = arith.mulf %435, %79 : vector<64x128xf32>
    %437 = arith.addf %433, %436 : vector<64x128xf32>
    %438 = arith.maximumf %414, %437 : vector<64x128xf32>
    %439 = vector.extract_strided_slice %51 {offsets = [15, 0], sizes = [1, 128], strides = [1, 1]} : vector<24x128xf32> to vector<1x128xf32>
    %440 = vector.broadcast %439 : vector<1x128xf32> to vector<64x128xf32>
    %441 = vector.broadcast %58 : vector<64x1xf32> to vector<64x128xf32>
    %442 = arith.mulf %440, %441 : vector<64x128xf32>
    %443 = vector.extract_strided_slice %54 {offsets = [15, 0], sizes = [1, 128], strides = [1, 1]} : vector<24x128xf32> to vector<1x128xf32>
    %444 = vector.broadcast %443 : vector<1x128xf32> to vector<64x128xf32>
    %445 = vector.broadcast %59 : vector<64x1xf32> to vector<64x128xf32>
    %446 = arith.mulf %444, %445 : vector<64x128xf32>
    %447 = arith.addf %442, %446 : vector<64x128xf32>
    %448 = vector.extract_strided_slice %57 {offsets = [15, 0], sizes = [1, 128], strides = [1, 1]} : vector<24x128xf32> to vector<1x128xf32>
    %449 = vector.broadcast %448 : vector<1x128xf32> to vector<64x128xf32>
    %450 = vector.broadcast %60 : vector<64x1xf32> to vector<64x128xf32>
    %451 = arith.mulf %449, %450 : vector<64x128xf32>
    %452 = arith.addf %447, %451 : vector<64x128xf32>
    %453 = vector.extract_strided_slice %20 {offsets = [15, 0], sizes = [1, 128], strides = [1, 1]} : vector<24x128xf32> to vector<1x128xf32>
    %454 = vector.broadcast %453 : vector<1x128xf32> to vector<64x128xf32>
    %455 = vector.broadcast %61 : vector<64x1xf32> to vector<64x128xf32>
    %456 = arith.mulf %454, %455 : vector<64x128xf32>
    %457 = arith.addf %452, %456 : vector<64x128xf32>
    %458 = vector.extract_strided_slice %16 {offsets = [15, 0], sizes = [1, 128], strides = [1, 1]} : vector<24x128xf32> to vector<1x128xf32>
    %459 = vector.broadcast %458 : vector<1x128xf32> to vector<64x128xf32>
    %460 = arith.mulf %459, %79 : vector<64x128xf32>
    %461 = arith.addf %457, %460 : vector<64x128xf32>
    %462 = arith.maximumf %438, %461 : vector<64x128xf32>
    %463 = vector.extract_strided_slice %51 {offsets = [16, 0], sizes = [1, 128], strides = [1, 1]} : vector<24x128xf32> to vector<1x128xf32>
    %464 = vector.broadcast %463 : vector<1x128xf32> to vector<64x128xf32>
    %465 = vector.broadcast %58 : vector<64x1xf32> to vector<64x128xf32>
    %466 = arith.mulf %464, %465 : vector<64x128xf32>
    %467 = vector.extract_strided_slice %54 {offsets = [16, 0], sizes = [1, 128], strides = [1, 1]} : vector<24x128xf32> to vector<1x128xf32>
    %468 = vector.broadcast %467 : vector<1x128xf32> to vector<64x128xf32>
    %469 = vector.broadcast %59 : vector<64x1xf32> to vector<64x128xf32>
    %470 = arith.mulf %468, %469 : vector<64x128xf32>
    %471 = arith.addf %466, %470 : vector<64x128xf32>
    %472 = vector.extract_strided_slice %57 {offsets = [16, 0], sizes = [1, 128], strides = [1, 1]} : vector<24x128xf32> to vector<1x128xf32>
    %473 = vector.broadcast %472 : vector<1x128xf32> to vector<64x128xf32>
    %474 = vector.broadcast %60 : vector<64x1xf32> to vector<64x128xf32>
    %475 = arith.mulf %473, %474 : vector<64x128xf32>
    %476 = arith.addf %471, %475 : vector<64x128xf32>
    %477 = vector.extract_strided_slice %20 {offsets = [16, 0], sizes = [1, 128], strides = [1, 1]} : vector<24x128xf32> to vector<1x128xf32>
    %478 = vector.broadcast %477 : vector<1x128xf32> to vector<64x128xf32>
    %479 = vector.broadcast %61 : vector<64x1xf32> to vector<64x128xf32>
    %480 = arith.mulf %478, %479 : vector<64x128xf32>
    %481 = arith.addf %476, %480 : vector<64x128xf32>
    %482 = vector.extract_strided_slice %16 {offsets = [16, 0], sizes = [1, 128], strides = [1, 1]} : vector<24x128xf32> to vector<1x128xf32>
    %483 = vector.broadcast %482 : vector<1x128xf32> to vector<64x128xf32>
    %484 = arith.mulf %483, %79 : vector<64x128xf32>
    %485 = arith.addf %481, %484 : vector<64x128xf32>
    %486 = arith.maximumf %462, %485 : vector<64x128xf32>
    %487 = vector.extract_strided_slice %51 {offsets = [17, 0], sizes = [1, 128], strides = [1, 1]} : vector<24x128xf32> to vector<1x128xf32>
    %488 = vector.broadcast %487 : vector<1x128xf32> to vector<64x128xf32>
    %489 = vector.broadcast %58 : vector<64x1xf32> to vector<64x128xf32>
    %490 = arith.mulf %488, %489 : vector<64x128xf32>
    %491 = vector.extract_strided_slice %54 {offsets = [17, 0], sizes = [1, 128], strides = [1, 1]} : vector<24x128xf32> to vector<1x128xf32>
    %492 = vector.broadcast %491 : vector<1x128xf32> to vector<64x128xf32>
    %493 = vector.broadcast %59 : vector<64x1xf32> to vector<64x128xf32>
    %494 = arith.mulf %492, %493 : vector<64x128xf32>
    %495 = arith.addf %490, %494 : vector<64x128xf32>
    %496 = vector.extract_strided_slice %57 {offsets = [17, 0], sizes = [1, 128], strides = [1, 1]} : vector<24x128xf32> to vector<1x128xf32>
    %497 = vector.broadcast %496 : vector<1x128xf32> to vector<64x128xf32>
    %498 = vector.broadcast %60 : vector<64x1xf32> to vector<64x128xf32>
    %499 = arith.mulf %497, %498 : vector<64x128xf32>
    %500 = arith.addf %495, %499 : vector<64x128xf32>
    %501 = vector.extract_strided_slice %20 {offsets = [17, 0], sizes = [1, 128], strides = [1, 1]} : vector<24x128xf32> to vector<1x128xf32>
    %502 = vector.broadcast %501 : vector<1x128xf32> to vector<64x128xf32>
    %503 = vector.broadcast %61 : vector<64x1xf32> to vector<64x128xf32>
    %504 = arith.mulf %502, %503 : vector<64x128xf32>
    %505 = arith.addf %500, %504 : vector<64x128xf32>
    %506 = vector.extract_strided_slice %16 {offsets = [17, 0], sizes = [1, 128], strides = [1, 1]} : vector<24x128xf32> to vector<1x128xf32>
    %507 = vector.broadcast %506 : vector<1x128xf32> to vector<64x128xf32>
    %508 = arith.mulf %507, %79 : vector<64x128xf32>
    %509 = arith.addf %505, %508 : vector<64x128xf32>
    %510 = arith.maximumf %486, %509 : vector<64x128xf32>
    %511 = vector.extract_strided_slice %51 {offsets = [18, 0], sizes = [1, 128], strides = [1, 1]} : vector<24x128xf32> to vector<1x128xf32>
    %512 = vector.broadcast %511 : vector<1x128xf32> to vector<64x128xf32>
    %513 = vector.broadcast %58 : vector<64x1xf32> to vector<64x128xf32>
    %514 = arith.mulf %512, %513 : vector<64x128xf32>
    %515 = vector.extract_strided_slice %54 {offsets = [18, 0], sizes = [1, 128], strides = [1, 1]} : vector<24x128xf32> to vector<1x128xf32>
    %516 = vector.broadcast %515 : vector<1x128xf32> to vector<64x128xf32>
    %517 = vector.broadcast %59 : vector<64x1xf32> to vector<64x128xf32>
    %518 = arith.mulf %516, %517 : vector<64x128xf32>
    %519 = arith.addf %514, %518 : vector<64x128xf32>
    %520 = vector.extract_strided_slice %57 {offsets = [18, 0], sizes = [1, 128], strides = [1, 1]} : vector<24x128xf32> to vector<1x128xf32>
    %521 = vector.broadcast %520 : vector<1x128xf32> to vector<64x128xf32>
    %522 = vector.broadcast %60 : vector<64x1xf32> to vector<64x128xf32>
    %523 = arith.mulf %521, %522 : vector<64x128xf32>
    %524 = arith.addf %519, %523 : vector<64x128xf32>
    %525 = vector.extract_strided_slice %20 {offsets = [18, 0], sizes = [1, 128], strides = [1, 1]} : vector<24x128xf32> to vector<1x128xf32>
    %526 = vector.broadcast %525 : vector<1x128xf32> to vector<64x128xf32>
    %527 = vector.broadcast %61 : vector<64x1xf32> to vector<64x128xf32>
    %528 = arith.mulf %526, %527 : vector<64x128xf32>
    %529 = arith.addf %524, %528 : vector<64x128xf32>
    %530 = vector.extract_strided_slice %16 {offsets = [18, 0], sizes = [1, 128], strides = [1, 1]} : vector<24x128xf32> to vector<1x128xf32>
    %531 = vector.broadcast %530 : vector<1x128xf32> to vector<64x128xf32>
    %532 = arith.mulf %531, %79 : vector<64x128xf32>
    %533 = arith.addf %529, %532 : vector<64x128xf32>
    %534 = arith.maximumf %510, %533 : vector<64x128xf32>
    %535 = vector.extract_strided_slice %51 {offsets = [19, 0], sizes = [1, 128], strides = [1, 1]} : vector<24x128xf32> to vector<1x128xf32>
    %536 = vector.broadcast %535 : vector<1x128xf32> to vector<64x128xf32>
    %537 = vector.broadcast %58 : vector<64x1xf32> to vector<64x128xf32>
    %538 = arith.mulf %536, %537 : vector<64x128xf32>
    %539 = vector.extract_strided_slice %54 {offsets = [19, 0], sizes = [1, 128], strides = [1, 1]} : vector<24x128xf32> to vector<1x128xf32>
    %540 = vector.broadcast %539 : vector<1x128xf32> to vector<64x128xf32>
    %541 = vector.broadcast %59 : vector<64x1xf32> to vector<64x128xf32>
    %542 = arith.mulf %540, %541 : vector<64x128xf32>
    %543 = arith.addf %538, %542 : vector<64x128xf32>
    %544 = vector.extract_strided_slice %57 {offsets = [19, 0], sizes = [1, 128], strides = [1, 1]} : vector<24x128xf32> to vector<1x128xf32>
    %545 = vector.broadcast %544 : vector<1x128xf32> to vector<64x128xf32>
    %546 = vector.broadcast %60 : vector<64x1xf32> to vector<64x128xf32>
    %547 = arith.mulf %545, %546 : vector<64x128xf32>
    %548 = arith.addf %543, %547 : vector<64x128xf32>
    %549 = vector.extract_strided_slice %20 {offsets = [19, 0], sizes = [1, 128], strides = [1, 1]} : vector<24x128xf32> to vector<1x128xf32>
    %550 = vector.broadcast %549 : vector<1x128xf32> to vector<64x128xf32>
    %551 = vector.broadcast %61 : vector<64x1xf32> to vector<64x128xf32>
    %552 = arith.mulf %550, %551 : vector<64x128xf32>
    %553 = arith.addf %548, %552 : vector<64x128xf32>
    %554 = vector.extract_strided_slice %16 {offsets = [19, 0], sizes = [1, 128], strides = [1, 1]} : vector<24x128xf32> to vector<1x128xf32>
    %555 = vector.broadcast %554 : vector<1x128xf32> to vector<64x128xf32>
    %556 = arith.mulf %555, %79 : vector<64x128xf32>
    %557 = arith.addf %553, %556 : vector<64x128xf32>
    %558 = arith.maximumf %534, %557 : vector<64x128xf32>
    %559 = vector.broadcast %65 : vector<64x1xf32> to vector<64x128xf32>
    %560 = arith.addf %558, %559 : vector<64x128xf32>
    %cst_24 = arith.constant 0.000000e+00 : f32
    %561 = vector.broadcast %cst_24 : f32 to vector<64x128xf32>
    %562 = arith.maximumf %560, %561 : vector<64x128xf32>
    %c0_25 = arith.constant 0 : index
    %c0_26 = arith.constant 0 : index
    %563 = vector.load %arg5[%c0_25, %c0_26] : memref<64x128xf32, #tpu.memory_space<vmem>>, vector<64x128xf32>
    tpu.vector_store %arg5[%c0_25, %c0_26], %562 {strides = array<i32>} : memref<64x128xf32, #tpu.memory_space<vmem>>, vector<64x128xf32>,
    return
  }
  func.func @transform_0(%arg0: i32) -> (i32, i32, i32) {
    %c0_i32 = arith.constant 0 : i32
    %c0_i32_0 = arith.constant 0 : i32
    %c0_i32_1 = arith.constant 0 : i32
    return %c0_i32, %c0_i32_0, %arg0 : i32, i32, i32
  }
  func.func @transform_1(%arg0: i32) -> (i32, i32) {
    %c0_i32 = arith.constant 0 : i32
    %c0_i32_0 = arith.constant 0 : i32
    return %c0_i32, %arg0 : i32, i32
  }
  func.func @transform_2(%arg0: i32) -> (i32, i32) {
    %c0_i32 = arith.constant 0 : i32
    %c0_i32_0 = arith.constant 0 : i32
    return %c0_i32, %arg0 : i32, i32
  }
  func.func @transform_3(%arg0: i32) -> (i32, i32) {
    %c0_i32 = arith.constant 0 : i32
    %c0_i32_0 = arith.constant 0 : i32
    %c0_i32_1 = arith.constant 0 : i32
    return %c0_i32, %c0_i32_0 : i32, i32
  }
  func.func @transform_4(%arg0: i32) -> (i32, i32) {
    %c0_i32 = arith.constant 0 : i32
    %c0_i32_0 = arith.constant 0 : i32
    return %c0_i32, %arg0 : i32, i32
  }
}

</mosaic_0001>

<bundles_post_ra>
// kernel: tpu_custom_call.1
= control target key start
LH: loop header
LB: loop body
LE: loop exit
PB: predicated region body
PF: predicated region fallthrough
CT: control target
= control target key end

     0   :  { %9 = vsyncpa [#allocation3], 0  ;;  %s4843_s0 = inlined_call_operand.hbm [shape: f32[4,24,128], index: 0, kind: input, shape index: {}]   ;;  %s4844_s1 = inlined_call_operand.vmem [shape: f32[1,128], index: 1, kind: input, shape index: {}]   ;;  %s4845_s2 = inlined_call_operand.vmem [shape: f32[4,128], index: 2, kind: input, shape index: {}]   ;;  %s4846_s3 = inlined_call_operand.vmem [shape: f32[64,8], index: 3, kind: input, shape index: {}]   ;;  %s4847_s4 = inlined_call_operand.hbm [shape: f32[64,128], index: 4, kind: output, shape index: {}]  }
   0x1   :  { %10 = vsyncpa [#allocation4], 0  ;;  %s15_s17 = sshll.u32 %s4843_s0, 4  ;;  %s2308_s18 = smov [#allocation2]   ;;  %s16_s17 = int_to_ptr.hbm [resolvable:$true] %s15_s17 }
   0x2   :  { %s17_s19 = sshll.u32 %s2308_s18, 4  ;;  %s2309_s20 = smov 128   ;;  %s18_s19 = int_to_ptr.vmem [resolvable:$true] %s17_s19 }
   0x3   :  { %s2310_s21 = smov 8  }
   0x4   :  { %23 = dma.hbm_to_vmem [thread:$0]  %s16_s17, 1536, %s18_s19, [#allocation3], %s2309_s20, %s2309_s20, %s2310_s21  }
   0x5   :  { %2304 = dma.done.wait [#allocation3], 1536  }
   0x6   :  { %2305 = vsyncadd [#allocation3], 4294965760  ;;  %v2311_v0 = vmov 4   ;;  %v2355_v1 = vld [vmem:[%s4846_s3 + $0x20] sm:$0xff]  ;;  %v2360_v2 = vld [vmem:[%s4846_s3 + $0x10] sm:$0xff]  ;;  %v2312_v9 = vmov 5   ;;  %v59_v11 = vlaneseq }
   0x7   :  { %2231 = vset.pattern.permute.xlu2 %v2311_v0  ;;  %2230 = vset.pattern.permute.xlu1 %v2311_v0  ;;  %v2365_v3 = vld [vmem:[%s4846_s3] sm:$0xff]  ;;  %v2373_v4 = vld [vmem:[%s4846_s3 + $0x28] sm:$0xff]  ;;  %v2378_v5 = vld [vmem:[%s4846_s3 + $0x18] sm:$0xff]  ;;  %v2313_v10 = vmov 6   ;;  %v2314_v23 = vmov 0.0   ;;  %v2315_v29 = vmov 0  }
   0x8   :  { %2229 = vset.pattern.permute.xlu0 %v2311_v0  ;;  %185 = vperm.xlu2 %2231, %v2355_v1   ;;  %v2383_v6 = vld [vmem:[%s4846_s3 + $0x8] sm:$0xff]  ;;  %v2391_v7 = vld [vmem:[%s4846_s3 + $0x38] sm:$0xff]  ;;  %v2396_v8 = vld [vmem:[%s4846_s3 + $0x30] sm:$0xff]  ;;  %v60_v12 = vshrl.u32 %v59_v11, 7  ;;  %v2316_v59 = vmov 1   ;;  %s2200_s18 = sshll.u32 %s4847_s4, 4  ;;  %s2201_s18 = int_to_ptr.hbm [resolvable:$true] %s2200_s18 }
   0x9   :  { %175 = vperm.xlu1 %2230, %v2360_v2   ;;  %165 = vperm.xlu0 %2229, %v2365_v3   ;;  %v2253_v17 = vld [vmem:[%s4844_s1] ss:$0 sm:$0xff]  ;;  %v45_v19 = vld [vmem:[#allocation2 + $0x8] sm:$0xff]  ;;  %v46_v22 = vld [vmem:[#allocation2 + $0x10] sm:$0xff] }
   0xa   :  { %v61_v13 = vadd.s32 8, %v60_v12  ;;  %v62_v14 = vadd.s32 16, %v60_v12  ;;  %v63_v15 = vcvt.s32.f32 %v60_v12  ;;  %v44_v18 = vld [vmem:[#allocation2] sm:$0xff]  ;;  %v48_v36 = vld [vmem:[#allocation2 + $0x18] sm:$0xff]  ;;  %v50_v42 = vld [vmem:[#allocation2 + $0x28] sm:$0xff] }
   0xb   :  { %v34_v21 = vld [vmem:[%s4844_s1] sm:$0x1]  ;;  %v53_v11 = vld [vmem:[#allocation2 + $0x38] sm:$0xff] }
   0xc   :  { %v64_v16 = vcvt.s32.f32 %v61_v13  ;;  %v65_v20 = vcvt.s32.f32 %v62_v14  ;;  %vm69_vm0 = vcmp.lt.f32.partialorder %v63_v15, %v2253_v17  ;;  %v90_v26 = vmax.f32 %v34_v21, 1.0  ;;  %v49_v37 = vld [vmem:[#allocation2 + $0x20] sm:$0xff] }
   0xd   :  { %v2419_v24 = vsel %vm69_vm0, 1.0, %v2314_v23  ;;  %v2459_v55 = vld [vmem:[%s4845_s2] sm:$0xf]  ;;  %s2320_s2 = smov [#allocation5]  }
   0xe   :  { %vm70_vm1 = vcmp.lt.f32.partialorder %v64_v16, %v2253_v17  ;;  %5163 = vst [vmem:[#allocation8_spill] sm:$0xff] %v2419_v24  ;;  %vm71_vm2 = vcmp.lt.f32.partialorder %v65_v20, %v2253_v17  ;;  %v2425_v27 = vmul.f32 %v2419_v24, %v44_v18  ;;  %2254 = vrcp.f32 %v90_v26  ;;  %v54_v16 = vld [vmem:[#allocation2 + $0x40] sm:$0xff]  ;;  %s2198_s15 = sshll.u32 %s2320_s2, 4  ;;  %s2199_s15 = int_to_ptr.vmem [resolvable:$true] %s2198_s15 }
   0xf   :  { %v2421_v25 = vsel %vm70_vm1, 1.0, %v2314_v23  ;;  %v2431_v30 = vsel %vm71_vm2, 1.0, %v2314_v23  ;;  %vm96_vm3 = vweird.f32 %v90_v26  ;;  %v100_v40 = vand.u32 2147483647, %v90_v26 }
  0x10   :  { %190 = vperm.xlu2 %2231, %v2373_v4   ;;  %5164 = vst [vmem:[#allocation9_spill] sm:$0xff] %v2421_v25  ;;  %v2428_v28 = vmul.f32 %v2421_v25, %v45_v19  ;;  %v2435_v31 = vmul.f32 %v2431_v30, %v46_v22  ;;  %v102_v41 = vand.u32 2147483648, %v90_v26  ;;  %v2442_v43 = vmul.f32 %v2419_v24, %v48_v36 }
  0x11   :  { %180 = vperm.xlu1 %2230, %v2378_v5   ;;  %170 = vperm.xlu0 %2229, %v2383_v6   ;;  %5165 = vst [vmem:[#allocation10_spill] sm:$0xff] %v2431_v30  ;;  %v2445_v44 = vmul.f32 %v2421_v25, %v49_v37  ;;  %v2450_v47 = vmul.f32 %v2431_v30, %v50_v42  ;;  %vm101_vm6 = vcmp.eq.f32.partialorder %v100_v40, 8.507059e+37  ;;  %v133_v62 = vmul.f32 0.2, %v2459_v55 }
  0x12   :  { %v106_v32 = vadd.f32 %v2428_v28, %v2425_v27  ;;  %v103_v51 = vor.u32 1.1754944e-38, %v102_v41  ;;  %v2476_v14 = vmul.f32 %v2421_v25, %v53_v11  ;;  %v2481_v17 = vmul.f32 %v2431_v30, %v54_v16 }
  0x13   :  { %v115_v48 = vadd.f32 %v2445_v44, %v2442_v43  ;;  %v2468_v0 = vadd.f32 0.1, %v133_v62 }
  0x14   :  { %v107_v33 = vadd.f32 %v106_v32, %v2435_v31  ;;  %v2255_v35 = vpop.eup %2254 }
  0x15   :  { %v92_v38 = vmul.f32 %v2255_v35, %v90_v26  ;;  %vm97_vm4 = vweird.f32 %v2255_v35  ;;  %v116_v54 = vadd.f32 %v115_v48, %v2450_v47 }
  0x16   :  { %v108_v34 = vrot.slane %v107_v33, 4  ;;  %vm98_vm5 = vmor %vm96_vm3, %vm97_vm4 }
  0x17   :  { %v93_v45 = vsub.f32 1.0, %v92_v38  ;;  %v117_v60 = vrot.slane %v116_v54, 4 }
  0x18   :  { %2232 = vset.pattern.permute.xlu2 %v2312_v9  ;;  %v109_v39 = vadd.f32 %v108_v34, %v107_v33 }
  0x19   :  { %200 = vperm.xlu1 %2230, %v2391_v7   ;;  %195 = vperm.xlu0 %2229, %v2396_v8   ;;  %v94_v49 = vmul.f32 %v2255_v35, %v93_v45  ;;  %v118_v63 = vadd.f32 %v117_v60, %v116_v54 }
  0x1a   :  { %217 = vperm.xlu2 %2232, %v2365_v3   ;;  %v110_v46 = vrot.slane %v109_v39, 2 }
  0x1b   :  { %v95_v52 = vadd.f32 %v2255_v35, %v94_v49  ;;  %v119_v12 = vrot.slane %v118_v63, 2 }
  0x1c   :  { %v111_v50 = vadd.f32 %v110_v46, %v109_v39  ;;  %v135_v39 = vadd.f32 -39.9, %v133_v62  ;;  %v2318_v46 = vmov 3   ;;  %v136_v62 = vmul.f32 4.0, %v2459_v55 }
  0x1d   :  { %v99_v56 = vsel %vm98_vm5, %v2255_v35, %v95_v52  ;;  %v120_v19 = vadd.f32 %v119_v12, %v118_v63  ;;  %v4848_v55 = vmov 7  }
  0x1e   :  { %v112_v53 = vrot.slane %v111_v50, 1  ;;  %v2462_v58 = vsel %vm101_vm6, %v103_v51, %v99_v56 }
  0x1f   :  { %v121_v26 = vrot.slane %v120_v19, 1 }
  0x20   :  { %v113_v57 = vadd.f32 %v112_v53, %v111_v50 }
  0x21   :  { %2234 = vset.pattern.permute.xlu1 %v2312_v9  ;;  %2233 = vset.pattern.permute.xlu0 %v2312_v9  ;;  %v122_v33 = vadd.f32 %v121_v26, %v120_v19 }
  0x22   :  { %225 = vperm.xlu1 %2234, %v2360_v2   ;;  %229 = vperm.xlu2 %2232, %v2378_v5   ;;  %v114_v61 = vmul.f32 %v113_v57, %v2462_v58 }
  0x23   :  { %221 = vperm.xlu0 %2233, %v2383_v6   ;;  %v123_v37 = vmul.f32 %v122_v33, %v2462_v58 }
  0x24   :  { %v160_v9 = vrot.slane %v114_v61, 5 }
  0x25   :  { %v213_v40 = vrot.slane %v123_v37, 6  ;;  %v138_v37 = vperm.slane %v2468_v0, 3 }
  0x26   :  { %v162_v15 = vsub.f32 %v2468_v0, %v160_v9  ;;  %v137_v9 = vadd.f32 -1.0, %v136_v62 }
  0x27   :  { %v215_v45 = vsub.f32 %v135_v39, %v213_v40  ;;  %v139_v0 = vmul.f32 %v2419_v24, %v138_v37 }
  0x28   :  { %v2485_v20 = vperm.slane %v162_v15, 3 }
  0x29   :  { %v2503_v49 = vperm.slane %v215_v45, 2  ;;  %v2556_v62 = vsub.f32 %v2425_v27, %v139_v0 }
  0x2a   :  { %233 = vperm.xlu1 %2234, %v2355_v1   ;;  %237 = vperm.xlu2 %2232, %v2373_v4  }
  0x2b   :  { %241 = vperm.xlu0 %2233, %v2396_v8  }
  0x32   :  { %245 = vperm.xlu1 %2234, %v2391_v7   ;;  %2235 = vset.pattern.permute.xlu2 %v2313_v10 }
  0x33   :  { %2236 = vset.pattern.permute.xlu0 %v2313_v10  ;;  %270 = vperm.xlu2 %2235, %v2365_v3  }
  0x34   :  { %274 = vperm.xlu0 %2236, %v2383_v6  }
  0x3a   :  { %2237 = vset.pattern.permute.xlu1 %v2313_v10  ;;  %v52_v10 = vld [vmem:[#allocation2 + $0x30] sm:$0xff] }
  0x3b   :  { %278 = vperm.xlu1 %2237, %v2360_v2   ;;  %282 = vperm.xlu2 %2235, %v2378_v5   ;;  %v2473_v13 = vmul.f32 %v2419_v24, %v52_v10 }
  0x3c   :  { %294 = vperm.xlu0 %2236, %v2396_v8  }
  0x3d   :  { %v124_v18 = vadd.f32 %v2476_v14, %v2473_v13 }
  0x3f   :  { %v125_v22 = vadd.f32 %v124_v18, %v2481_v17 }
  0x41   :  { %v126_v32 = vrot.slane %v125_v22, 4 }
  0x43   :  { %286 = vperm.xlu1 %2237, %v2355_v1   ;;  %290 = vperm.xlu2 %2235, %v2373_v4   ;;  %v127_v35 = vadd.f32 %v126_v32, %v125_v22 }
  0x44   :  { %2239 = vset.pattern.permute.xlu0 %v2315_v29 }
  0x45   :  { %324 = vperm.xlu0 %2239, %v2383_v6   ;;  %v128_v38 = vrot.slane %v127_v35, 2 }
  0x47   :  { %v129_v41 = vadd.f32 %v128_v38, %v127_v35 }
  0x49   :  { %v130_v48 = vrot.slane %v129_v41, 1 }
  0x4b   :  { %298 = vperm.xlu1 %2237, %v2391_v7   ;;  %2238 = vset.pattern.permute.xlu2 %v2315_v29  ;;  %v131_v52 = vadd.f32 %v130_v48, %v129_v41  ;;  %v145_v41 = vperm.slane %v135_v39, 2  ;;  %v140_v39 = vmul.f32 %v2421_v25, %v138_v37 }
  0x4c   :  { %320 = vperm.xlu2 %2238, %v2365_v3  }
  0x4d   :  { %344 = vperm.xlu0 %2239, %v2396_v8   ;;  %v132_v61 = vmul.f32 %v131_v52, %v2462_v58  ;;  %v141_v52 = vmul.f32 %v2431_v30, %v138_v37  ;;  %v2629_v37 = vperm.slane %v2421_v25, 3 }
  0x4f   :  { %v266_v10 = vrot.slane %v132_v61, 7  ;;  %5181 = vst [vmem:[#allocation26_spill] sm:$0xff] %v2629_v37 }
  0x51   :  { %v268_v58 = vsub.f32 %v137_v9, %v266_v10  ;;  %v2560_v10 = vsub.f32 %v2428_v28, %v140_v39  ;;  %v2651_v39 = vperm.slane %v2431_v30, 2 }
  0x53   :  { %2240 = vset.pattern.permute.xlu1 %v2315_v29  ;;  %v2317_v29 = vmov 2   ;;  %v2520_v22 = vperm.slane %v268_v58, 1  ;;  %5188 = vst [vmem:[#allocation33_spill] sm:$0xff] %v2651_v39 }
  0x54   :  { %328 = vperm.xlu1 %2240, %v2360_v2   ;;  %332 = vperm.xlu2 %2238, %v2378_v5  }
  0x55   :  { %2242 = vset.pattern.permute.xlu0 %v2316_v59 }
  0x56   :  { %365 = vperm.xlu0 %2242, %v2383_v6  }
  0x5c   :  { %336 = vperm.xlu1 %2240, %v2355_v1   ;;  %340 = vperm.xlu2 %2238, %v2373_v4  }
  0x5e   :  { %385 = vperm.xlu0 %2242, %v2396_v8  }
  0x62   :  { %v186_v21 = vpop.permute.xlu2 %185 }
  0x63   :  { %v2489_v23 = vmul.f32 %v2485_v20, %v186_v21 }
  0x64   :  { %348 = vperm.xlu1 %2240, %v2391_v7   ;;  %2241 = vset.pattern.permute.xlu2 %v2316_v59 }
  0x65   :  { %361 = vperm.xlu2 %2241, %v2365_v3  }
  0x66   :  { %2245 = vset.pattern.permute.xlu0 %v2317_v29 }
  0x67   :  { %414 = vperm.xlu0 %2245, %v2383_v6  }
  0x6a   :  { %v191_v34 = vpop.permute.xlu2 %190 }
  0x6b   :  { %v209_v36 = vmul.f32 %v2485_v20, %v191_v34 }
  0x6c   :  { %2243 = vset.pattern.permute.xlu1 %v2316_v59 }
  0x6d   :  { %369 = vperm.xlu1 %2243, %v2360_v2   ;;  %373 = vperm.xlu2 %2241, %v2378_v5  }
  0x6f   :  { %434 = vperm.xlu0 %2245, %v2396_v8  }
  0x74   :  { %v218_v42 = vpop.permute.xlu2 %217 }
  0x75   :  { %377 = vperm.xlu1 %2243, %v2355_v1   ;;  %381 = vperm.xlu2 %2241, %v2373_v4   ;;  %v249_v50 = vmul.f32 %v2503_v49, %v218_v42 }
  0x77   :  { %2248 = vset.pattern.permute.xlu0 %v2318_v46 }
  0x78   :  { %463 = vperm.xlu0 %2248, %v2383_v6  }
  0x7b   :  { %v176_v51 = vpop.permute.xlu1 %175  ;;  %v166_v54 = vpop.permute.xlu0 %165 }
  0x7c   :  { %v206_v53 = vmul.f32 %v2485_v20, %v176_v51  ;;  %v230_v56 = vpop.permute.xlu2 %229  ;;  %v204_v57 = vmul.f32 %v2485_v20, %v166_v54  ;;  %v147_v54 = vmul.f32 %v2421_v25, %v145_v41 }
  0x7d   :  { %389 = vperm.xlu1 %2243, %v2391_v7   ;;  %v252_v59 = vmul.f32 %v2503_v49, %v230_v56  ;;  %2244 = vset.pattern.permute.xlu2 %v2317_v29  ;;  %v148_v56 = vmul.f32 %v2431_v30, %v145_v41 }
  0x7e   :  { %v257_v60 = vadd.f32 %v249_v50, %v204_v57  ;;  %410 = vperm.xlu2 %2244, %v2365_v3   ;;  %v2571_v27 = vsub.f32 %v2445_v44, %v147_v54 }
  0x80   :  { %483 = vperm.xlu0 %2248, %v2396_v8  }
  0x83   :  { %v181_v63 = vpop.permute.xlu1 %180  ;;  %v171_v12 = vpop.permute.xlu0 %170 }
  0x84   :  { %v207_v11 = vmul.f32 %v2485_v20, %v181_v63  ;;  %v238_v15 = vpop.permute.xlu2 %237 }
  0x85   :  { %2246 = vset.pattern.permute.xlu1 %v2317_v29  ;;  %v254_v18 = vmul.f32 %v2503_v49, %v238_v15 }
  0x86   :  { %v260_v16 = vadd.f32 %v252_v59, %v207_v11  ;;  %418 = vperm.xlu1 %2246, %v2360_v2   ;;  %422 = vperm.xlu2 %2244, %v2378_v5   ;;  %v2563_v11 = vsub.f32 %v2435_v31, %v141_v52  ;;  %v2654_v52 = vperm.slane %v2431_v30, 3 }
  0x87   :  { %v262_v19 = vadd.f32 %v254_v18, %v209_v36  ;;  %v2574_v18 = vsub.f32 %v2450_v47, %v148_v56 }
  0x88   :  { %2251 = vset.pattern.permute.xlu0 %v4848_v55  ;;  %5189 = vst [vmem:[#allocation34_spill] sm:$0xff] %v2654_v52 }
  0x89   :  { %2143 = vperm.xlu0 %2251, %v2383_v6   ;;  %v205_v6 = vmul.f32 %v2485_v20, %v171_v12 }
  0x8b   :  { %v201_v21 = vpop.permute.xlu1 %200  ;;  %v196_v29 = vpop.permute.xlu0 %195 }
  0x8c   :  { %v2523_v26 = vmul.f32 %v2485_v20, %v201_v21  ;;  %v210_v32 = vmul.f32 %v2485_v20, %v196_v29  ;;  %v2599_v21 = vperm.slane %v2419_v24, 1  ;;  %v2611_v29 = vperm.slane %v2419_v24, 5 }
  0x8d   :  { %v271_v33 = vpop.permute.xlu2 %270 }
  0x8e   :  { %426 = vperm.xlu1 %2246, %v2355_v1   ;;  %v302_v34 = vmul.f32 %v2520_v22, %v271_v33  ;;  %430 = vperm.xlu2 %2244, %v2373_v4   ;;  %5171 = vst [vmem:[#allocation16_spill] sm:$0xff] %v2599_v21  ;;  %v2620_v33 = vperm.slane %v2421_v25, 0 }
  0x8f   :  { %5175 = vst [vmem:[#allocation20_spill] sm:$0xff] %v2611_v29 }
  0x90   :  { %v2529_v35 = vadd.f32 %v302_v34, %v257_v60  ;;  %5178 = vst [vmem:[#allocation23_spill] sm:$0xff] %v2620_v33  ;;  %v2623_v34 = vperm.slane %v2421_v25, 1 }
  0x91   :  { %2163 = vperm.xlu0 %2251, %v2396_v8   ;;  %v152_v8 = vperm.slane %v137_v9, 1 }
  0x92   :  { %5166 = vst [vmem:[#allocation11_spill] sm:$0xff] %v2529_v35 }
  0x93   :  { %v153_v57 = vmul.f32 %v2419_v24, %v152_v8  ;;  %v154_v59 = vmul.f32 %v2421_v25, %v152_v8  ;;  %v155_v60 = vmul.f32 %v2431_v30, %v152_v8  ;;  %5179 = vst [vmem:[#allocation24_spill] sm:$0xff] %v2623_v34  ;;  %v2648_v8 = vperm.slane %v2431_v30, 1 }
  0x94   :  { %v226_v36 = vpop.permute.xlu1 %225 }
  0x95   :  { %v251_v38 = vmul.f32 %v2503_v49, %v226_v36  ;;  %v222_v40 = vpop.permute.xlu0 %221  ;;  %v283_v42 = vpop.permute.xlu2 %282  ;;  %v2585_v58 = vsub.f32 %v2476_v14, %v154_v59  ;;  %v2605_v14 = vperm.slane %v2419_v24, 3  ;;  %5187 = vst [vmem:[#allocation32_spill] sm:$0xff] %v2648_v8 }
  0x96   :  { %v250_v45 = vmul.f32 %v2503_v49, %v222_v40  ;;  %438 = vperm.xlu1 %2246, %v2391_v7   ;;  %v305_v50 = vmul.f32 %v2520_v22, %v283_v42  ;;  %2247 = vset.pattern.permute.xlu2 %v2318_v46  ;;  %v2635_v40 = vperm.slane %v2421_v25, 5 }
  0x97   :  { %v2537_v48 = vadd.f32 %v251_v38, %v206_v53  ;;  %459 = vperm.xlu2 %2247, %v2365_v3   ;;  %v146_v53 = vmul.f32 %v2419_v24, %v145_v41  ;;  %5173 = vst [vmem:[#allocation18_spill] sm:$0xff] %v2605_v14  ;;  %v2632_v38 = vperm.slane %v2421_v25, 4  ;;  %v2638_v41 = vperm.slane %v2421_v25, 6 }
  0x98   :  { %v2541_v20 = vadd.f32 %v250_v45, %v205_v6  ;;  %v2545_v51 = vadd.f32 %v305_v50, %v260_v16  ;;  %v2626_v6 = vperm.slane %v2421_v25, 2  ;;  %5183 = vst [vmem:[#allocation28_spill] sm:$0xff] %v2635_v40  ;;  %v2642_v45 = vperm.slane %v2421_v25, 7 }
  0x99   :  { %v2566_v12 = vsub.f32 %v2442_v43, %v146_v53  ;;  %v2582_v43 = vsub.f32 %v2473_v13, %v153_v57  ;;  %v2602_v13 = vperm.slane %v2419_v24, 2  ;;  %5182 = vst [vmem:[#allocation27_spill] sm:$0xff] %v2632_v38  ;;  %v2645_v50 = vperm.slane %v2431_v30, 0 }
  0x9a   :  { %5167 = vst [vmem:[#allocation12_spill] sm:$0xff] %v2545_v51  ;;  %v2756_v25 = vperm.slane %v2560_v10, 0 }
  0x9b   :  { %5172 = vst [vmem:[#allocation17_spill] sm:$0xff] %v2602_v13  ;;  %v2673_v59 = vmul.f32 %v2602_v13, %v2529_v35  ;;  %v2715_v55 = vperm.slane %v2566_v12, 2  ;;  %v2727_v51 = vperm.slane %v2566_v12, 4  ;;  %v2753_v30 = vperm.slane %v2566_v12, 7 }
  0x9c   :  { %v234_v61 = vpop.permute.xlu1 %233  ;;  %5180 = vst [vmem:[#allocation25_spill] sm:$0xff] %v2626_v6 }
  0x9d   :  { %v253_v63 = vmul.f32 %v2503_v49, %v234_v61  ;;  %v242_v9 = vpop.permute.xlu0 %241  ;;  %v291_v15 = vpop.permute.xlu2 %290  ;;  %5184 = vst [vmem:[#allocation29_spill] sm:$0xff] %v2638_v41  ;;  %v2686_v61 = vmul.f32 %v2611_v29, %v2529_v35 }
  0x9e   :  { %v255_v16 = vmul.f32 %v2503_v49, %v242_v9  ;;  %2249 = vset.pattern.permute.xlu1 %v2318_v46  ;;  %v307_v31 = vmul.f32 %v2520_v22, %v291_v15  ;;  %v2588_v46 = vsub.f32 %v2481_v17, %v155_v60  ;;  %v2608_v17 = vperm.slane %v2419_v24, 4  ;;  %5185 = vst [vmem:[#allocation30_spill] sm:$0xff] %v2642_v45 }
  0x9f   :  { %v2577_v28 = vadd.f32 %v253_v63, %v2489_v23  ;;  %467 = vperm.xlu1 %2249, %v2360_v2   ;;  %471 = vperm.xlu2 %2247, %v2378_v5   ;;  %v2596_v23 = vperm.slane %v2419_v24, 0  ;;  %5186 = vst [vmem:[#allocation31_spill] sm:$0xff] %v2645_v50  ;;  %v2677_v60 = vmul.f32 %v2605_v14, %v2529_v35 }
  0xa0   :  { %5168 = vst [vmem:[#allocation13_spill] sm:$0xff] %v2588_v46  ;;  %v2590_v44 = vadd.f32 %v255_v16, %v210_v32  ;;  %v2593_v47 = vadd.f32 %v307_v31, %v262_v19  ;;  %v2614_v19 = vperm.slane %v2419_v24, 6  ;;  %v2617_v32 = vperm.slane %v2419_v24, 7 }
  0xa1   :  { %5170 = vst [vmem:[#allocation15_spill] sm:$0xff] %v2596_v23  ;;  %v2658_v53 = vmul.f32 %v2596_v23, %v2529_v35  ;;  %v2700_v16 = vperm.slane %v2556_v62, 0  ;;  %v2703_v31 = vperm.slane %v2566_v12, 0 }
  0xa2   :  { %5169 = vst [vmem:[#allocation14_spill] sm:$0xff] %v2593_v47  ;;  %v2690_v63 = vmul.f32 %v2614_v19, %v2529_v35  ;;  %v2694_v9 = vmul.f32 %v2617_v32, %v2529_v35  ;;  %v2724_v47 = vperm.slane %v2556_v62, 4 }
  0xa3   :  { %5174 = vst [vmem:[#allocation19_spill] sm:$0xff] %v2608_v17 }
  0xa4   :  { %5176 = vst [vmem:[#allocation21_spill] sm:$0xff] %v2614_v19  ;;  %v246_v36 = vpop.permute.xlu1 %245 }
  0xa5   :  { %5177 = vst [vmem:[#allocation22_spill] sm:$0xff] %v2617_v32  ;;  %v256_v42 = vmul.f32 %v2503_v49, %v246_v36  ;;  %v2662_v49 = vmul.f32 %v2599_v21, %v2529_v35  ;;  %v2706_v36 = vperm.slane %v2556_v62, 1 }
  0xa6   :  { %v275_v0 = vpop.permute.xlu0 %274  ;;  %5190 = vst [vmem:[#allocation35_spill] sm:$0xff] %v2658_v53  ;;  %v2669_v57 = vpop.permute.xlu2 %320 }
  0xa7   :  { %5191 = vst [vmem:[#allocation36_spill] sm:$0xff] %v2662_v49  ;;  %v2665_v54 = vadd.f32 %v256_v42, %v2523_v26  ;;  %v303_v56 = vmul.f32 %v2520_v22, %v275_v0  ;;  %475 = vperm.xlu1 %2249, %v2355_v1   ;;  %479 = vperm.xlu2 %2247, %v2373_v4   ;;  %v2709_v42 = vperm.slane %v2566_v12, 1  ;;  %v2712_v0 = vperm.slane %v2556_v62, 2 }
  0xa8   :  { %5192 = vst [vmem:[#allocation37_spill] sm:$0xff] %v2669_v57  ;;  %v2682_v26 = vmul.f32 %v2608_v17, %v2529_v35 }
  0xa9   :  { %5193 = vst [vmem:[#allocation38_spill] sm:$0xff] %v2673_v59  ;;  %v2697_v15 = vadd.f32 %v303_v56, %v2541_v20  ;;  %v2718_v20 = vperm.slane %v2556_v62, 3  ;;  %v2721_v56 = vperm.slane %v2566_v12, 3 }
  0xaa   :  { %5194 = vst [vmem:[#allocation39_spill] sm:$0xff] %v2677_v60  ;;  %v2742_v60 = vperm.slane %v2556_v62, 7 }
  0xab   :  { %5195 = vst [vmem:[#allocation40_spill] sm:$0xff] %v2682_v26  ;;  %v2739_v26 = vperm.slane %v2566_v12, 6  ;;  %v2746_v49 = vmul.f32 %v2596_v23, %v2697_v15  ;;  %v2750_v53 = vmul.f32 %v2599_v21, %v2697_v15  ;;  %v2765_v23 = vmul.f32 %v2605_v14, %v2697_v15 }
  0xac   :  { %5196 = vst [vmem:[#allocation41_spill] sm:$0xff] %v2686_v61  ;;  %v2736_v61 = vperm.slane %v2556_v62, 6  ;;  %v2769_v21 = vmul.f32 %v2608_v17, %v2697_v15  ;;  %v2785_v14 = vmul.f32 %v2617_v32, %v2697_v15  ;;  %v2816_v32 = vperm.slane %v2571_v27, 2 }
  0xad   :  { %5197 = vst [vmem:[#allocation42_spill] sm:$0xff] %v2690_v63  ;;  %v2733_v63 = vperm.slane %v2566_v12, 5  ;;  %v279_v59 = vpop.permute.xlu1 %278 }
  0xae   :  { %5198 = vst [vmem:[#allocation43_spill] sm:$0xff] %v2694_v9  ;;  %v2730_v9 = vperm.slane %v2556_v62, 5  ;;  %v304_v24 = vmul.f32 %v2520_v22, %v279_v59  ;;  %v295_v46 = vpop.permute.xlu0 %294  ;;  %v2761_v62 = vmul.f32 %v2602_v13, %v2697_v15  ;;  %v2777_v59 = vmul.f32 %v2611_v29, %v2697_v15 }
  0xaf   :  { %5199 = vst [vmem:[#allocation44_spill] sm:$0xff] %v2700_v16  ;;  %v308_v12 = vmul.f32 %v2520_v22, %v295_v46  ;;  %487 = vperm.xlu1 %2249, %v2391_v7   ;;  %v2781_v13 = vmul.f32 %v2614_v19, %v2697_v15  ;;  %v5226_v46 = vmov 7   ;;  %v2799_v29 = vperm.slane %v2560_v10, 1 }
  0xb0   :  { %5200 = vst [vmem:[#allocation45_spill] sm:$0xff] %v2703_v31  ;;  %v2788_v17 = vadd.f32 %v304_v24, %v2537_v48  ;;  %2250 = vset.pattern.permute.xlu2 %v5226_v46  ;;  %v2806_v24 = vperm.slane %v2571_v27, 1  ;;  %v2810_v48 = vmul.f32 %v2623_v34, %v2697_v15 }
  0xb1   :  { %5201 = vst [vmem:[#allocation46_spill] sm:$0xff] %v2706_v36  ;;  %v2802_v19 = vadd.f32 %v308_v12, %v2590_v44  ;;  %2139 = vperm.xlu2 %2250, %v2365_v3   ;;  %v2823_v44 = vperm.slane %v2560_v10, 3  ;;  %v2826_v3 = vperm.slane %v2571_v27, 3  ;;  %v2830_v12 = vmul.f32 %v2629_v37, %v2697_v15 }
  0xb2   :  { %5202 = vst [vmem:[#allocation47_spill] sm:$0xff] %v2709_v42 }
  0xb3   :  { %5203 = vst [vmem:[#allocation48_spill] sm:$0xff] %v2712_v0 }
  0xb4   :  { %5204 = vst [vmem:[#allocation49_spill] sm:$0xff] %v2715_v55 }
  0xb5   :  { %5205 = vst [vmem:[#allocation50_spill] sm:$0xff] %v2718_v20 }
  0xb6   :  { %5206 = vst [vmem:[#allocation51_spill] sm:$0xff] %v2721_v56 }
  0xb7   :  { %5207 = vst [vmem:[#allocation52_spill] sm:$0xff] %v2724_v47  ;;  %2252 = vset.pattern.permute.xlu1 %v5226_v46  ;;  %v2903_v46 = vperm.slane %v2563_v11, 2 }
  0xb8   :  { %5208 = vst [vmem:[#allocation53_spill] sm:$0xff] %v2727_v51  ;;  %2147 = vperm.xlu1 %2252, %v2360_v2   ;;  %v2921_v2 = vmul.f32 %v2654_v52, %v2697_v15  ;;  %v2941_v52 = vperm.slane %v2582_v43, 3 }
  0xb9   :  { %5209 = vst [vmem:[#allocation54_spill] sm:$0xff] %v2730_v9  ;;  %2151 = vperm.xlu2 %2250, %v2378_v5   ;;  %v609_v5 = vmul.f32 %v2712_v0, %v2669_v57 }
  0xba   :  { %5210 = vst [vmem:[#allocation55_spill] sm:$0xff] %v2733_v63 }
  0xbb   :  { %5211 = vst [vmem:[#allocation56_spill] sm:$0xff] %v2736_v61 }
  0xbc   :  { %5212 = vst [vmem:[#allocation57_spill] sm:$0xff] %v2739_v26 }
  0xbd   :  { %5213 = vst [vmem:[#allocation58_spill] sm:$0xff] %v2742_v60 }
  0xbe   :  { %5214 = vst [vmem:[#allocation59_spill] sm:$0xff] %v2746_v49  ;;  %v2863_v49 = vperm.slane %v2560_v10, 7 }
  0xbf   :  { %5215 = vst [vmem:[#allocation60_spill] sm:$0xff] %v2750_v53  ;;  %v2773_v53 = vpop.permute.xlu2 %332 }
  0xc0   :  { %5216 = vst [vmem:[#allocation61_spill] sm:$0xff] %v2753_v30  ;;  %2155 = vperm.xlu1 %2252, %v2355_v1  }
  0xc1   :  { %5217 = vst [vmem:[#allocation62_spill] sm:$0xff] %v2756_v25  ;;  %2159 = vperm.xlu2 %2250, %v2373_v4  }
  0xc2   :  { %5218 = vst [vmem:[#allocation63_spill] sm:$0xff] %v2761_v62  ;;  %v2856_v62 = vperm.slane %v2571_v27, 6 }
  0xc3   :  { %5219 = vst [vmem:[#allocation64_spill] sm:$0xff] %v2765_v23  ;;  %v287_v23 = vpop.permute.xlu1 %286 }
  0xc4   :  { %5220 = vst [vmem:[#allocation65_spill] sm:$0xff] %v2769_v21  ;;  %v2792_v21 = vperm.slane %v2571_v27, 0 }
  0xc5   :  { %5221 = vst [vmem:[#allocation66_spill] sm:$0xff] %v2773_v53  ;;  %v2796_v53 = vmul.f32 %v2620_v33, %v2697_v15 }
  0xc6   :  { %5222 = vst [vmem:[#allocation67_spill] sm:$0xff] %v2777_v59  ;;  %v2850_v59 = vmul.f32 %v2635_v40, %v2697_v15 }
  0xc7   :  { %5223 = vst [vmem:[#allocation68_spill] sm:$0xff] %v2781_v13  ;;  %v2846_v13 = vperm.slane %v2571_v27, 5 }
  0xc8   :  { %5224 = vst [vmem:[#allocation69_spill] sm:$0xff] %v2785_v14  ;;  %v2840_v14 = vmul.f32 %v2632_v38, %v2697_v15  ;;  %2167 = vperm.xlu1 %2252, %v2391_v7  }
  0xc9   :  { %5225 = vst [vmem:[#allocation70_spill] sm:$0xff] %v2788_v17  ;;  %v2813_v17 = vperm.slane %v2560_v10, 2 }
  0xca   :  { %5227 = vst [vmem:[#allocation71_spill] sm:$0xff] %v2792_v21 }
  0xcb   :  { %5228 = vst [vmem:[#allocation72_spill] sm:$0xff] %v2796_v53  ;;  %v2820_v53 = vmul.f32 %v2626_v6, %v2697_v15 }
  0xcc   :  { %5229 = vst [vmem:[#allocation73_spill] sm:$0xff] %v2799_v29 }
  0xcd   :  { %5230 = vst [vmem:[#allocation74_spill] sm:$0xff] %v2802_v19  ;;  %v2833_v19 = vperm.slane %v2560_v10, 4 }
  0xce   :  { %5231 = vst [vmem:[#allocation75_spill] sm:$0xff] %v2806_v24 }
  0xcf   :  { %5232 = vst [vmem:[#allocation76_spill] sm:$0xff] %v2810_v48  ;;  %v2836_v48 = vperm.slane %v2571_v27, 4 }
  0xd0   :  { %5233 = vst [vmem:[#allocation77_spill] sm:$0xff] %v2813_v17 }
  0xd1   :  { %5234 = vst [vmem:[#allocation78_spill] sm:$0xff] %v2816_v32 }
  0xd2   :  { %5235 = vst [vmem:[#allocation79_spill] sm:$0xff] %v2820_v53  ;;  %v2843_v53 = vperm.slane %v2560_v10, 5 }
  0xd3   :  { %5236 = vst [vmem:[#allocation80_spill] sm:$0xff] %v2823_v44 }
  0xd4   :  { %5237 = vst [vmem:[#allocation81_spill] sm:$0xff] %v2826_v3 }
  0xd5   :  { %5238 = vst [vmem:[#allocation82_spill] sm:$0xff] %v2830_v12  ;;  %v2853_v12 = vperm.slane %v2560_v10, 6  ;;  %v2886_v10 = vmul.f32 %v2645_v50, %v2697_v15  ;;  %v2906_v50 = vperm.slane %v2574_v18, 2 }
  0xd6   :  { %5239 = vst [vmem:[#allocation83_spill] sm:$0xff] %v2833_v19 }
  0xd7   :  { %5240 = vst [vmem:[#allocation84_spill] sm:$0xff] %v2836_v48  ;;  %v2879_v48 = vpop.permute.xlu2 %340 }
  0xd8   :  { %5241 = vst [vmem:[#allocation85_spill] sm:$0xff] %v2840_v14  ;;  %v2860_v14 = vmul.f32 %v2638_v41, %v2697_v15 }
  0xd9   :  { %5242 = vst [vmem:[#allocation86_spill] sm:$0xff] %v2843_v53  ;;  %v306_v53 = vmul.f32 %v2520_v22, %v287_v23  ;;  %v2892_v23 = vperm.slane %v2574_v18, 1 }
  0xda   :  { %5243 = vst [vmem:[#allocation87_spill] sm:$0xff] %v2846_v13  ;;  %v2866_v13 = vperm.slane %v2571_v27, 7  ;;  %v2889_v27 = vperm.slane %v2563_v11, 1 }
  0xdb   :  { %5244 = vst [vmem:[#allocation88_spill] sm:$0xff] %v2850_v59  ;;  %v2871_v59 = vmul.f32 %v2642_v45, %v2697_v15 }
  0xdc   :  { %5245 = vst [vmem:[#allocation89_spill] sm:$0xff] %v2853_v12  ;;  %v2874_v12 = vperm.slane %v2563_v11, 0 }
  0xdd   :  { %5246 = vst [vmem:[#allocation90_spill] sm:$0xff] %v2856_v62  ;;  %v2877_v62 = vperm.slane %v2574_v18, 0 }
  0xde   :  { %5247 = vst [vmem:[#allocation91_spill] sm:$0xff] %v2860_v14  ;;  %v2881_v14 = vpop.permute.xlu0 %324 }
  0xdf   :  { %5248 = vst [vmem:[#allocation92_spill] sm:$0xff] %v2863_v49 }
  0xe0   :  { %5249 = vst [vmem:[#allocation93_spill] sm:$0xff] %v2866_v13 }
  0xe1   :  { %5250 = vst [vmem:[#allocation94_spill] sm:$0xff] %v2871_v59  ;;  %v2896_v59 = vmul.f32 %v2648_v8, %v2697_v15  ;;  %v2914_v8 = vperm.slane %v2563_v11, 3  ;;  %v694_v11 = vmul.f32 %v2718_v20, %v2669_v57 }
  0xe2   :  { %5251 = vst [vmem:[#allocation95_spill] sm:$0xff] %v2874_v12 }
  0xe3   :  { %5252 = vst [vmem:[#allocation96_spill] sm:$0xff] %v2877_v62 }
  0xe4   :  { %5253 = vst [vmem:[#allocation97_spill] sm:$0xff] %v2879_v48  ;;  %v2899_v48 = vadd.f32 %v306_v53, %v2577_v28  ;;  %v2917_v28 = vperm.slane %v2574_v18, 3  ;;  %v351_v53 = vmul.f32 %v2669_v57, %v2700_v16  ;;  %v2935_v18 = vperm.slane %v2582_v43, 1 }
  0xe5   :  { %5254 = vst [vmem:[#allocation98_spill] sm:$0xff] %v2886_v10  ;;  %v2910_v10 = vmul.f32 %v2651_v39, %v2697_v15  ;;  %v524_v39 = vmul.f32 %v2706_v36, %v2669_v57  ;;  %v2938_v15 = vperm.slane %v2582_v43, 2 }
  0xe6   :  { %5255 = vst [vmem:[#allocation99_spill] sm:$0xff] %v2889_v27 }
  0xe7   :  { %5256 = vst [vmem:[#allocation100_spill] sm:$0xff] %v2892_v23 }
  0xe8   :  { %5257 = vst [vmem:[#allocation101_spill] sm:$0xff] %v2896_v59  ;;  %v2950_v59 = vperm.slane %v2582_v43, 6 }
  0xe9   :  { %5258 = vst [vmem:[#allocation102_spill] sm:$0xff] %v2899_v48  ;;  %v2926_v48 = vperm.slane %v2582_v43, 0 }
  0xea   :  { %5259 = vst [vmem:[#allocation103_spill] sm:$0xff] %v2903_v46 }
  0xeb   :  { %5260 = vst [vmem:[#allocation104_spill] sm:$0xff] %v2906_v50  ;;  %v299_v50 = vpop.permute.xlu1 %298 }
  0xec   :  { %5261 = vst [vmem:[#allocation105_spill] sm:$0xff] %v2910_v10  ;;  %v2947_v10 = vperm.slane %v2582_v43, 5 }
  0xed   :  { %5262 = vst [vmem:[#allocation106_spill] sm:$0xff] %v2914_v8  ;;  %v2956_v8 = vperm.slane %v2585_v58, 0 }
  0xee   :  { %5263 = vst [vmem:[#allocation107_spill] sm:$0xff] %v2917_v28  ;;  %v2953_v28 = vperm.slane %v2582_v43, 7 }
  0xef   :  { %5264 = vst [vmem:[#allocation108_spill] sm:$0xff] %v2921_v2  ;;  %v2944_v2 = vperm.slane %v2582_v43, 4  ;;  %v2969_v43 = vmul.f32 %v2620_v33, %v2529_v35  ;;  %v3001_v33 = vperm.slane %v2585_v58, 4 }
  0xf0   :  { %5265 = vst [vmem:[#allocation109_spill] sm:$0xff] %v2926_v48  ;;  %v2982_v48 = vperm.slane %v2585_v58, 1 }
  0xf1   :  { %5266 = vst [vmem:[#allocation110_spill] sm:$0xff] %v2935_v18  ;;  %v2979_v18 = vpop.permute.xlu0 %344 }
  0xf2   :  { %5267 = vst [vmem:[#allocation111_spill] sm:$0xff] %v2938_v15  ;;  %v779_v15 = vmul.f32 %v2724_v47, %v2669_v57 }
  0xf3   :  { %5268 = vst [vmem:[#allocation112_spill] sm:$0xff] %v2941_v52  ;;  %v864_v52 = vmul.f32 %v2730_v9, %v2669_v57 }
  0xf4   :  { %5269 = vst [vmem:[#allocation113_spill] sm:$0xff] %v2944_v2  ;;  %v949_v2 = vmul.f32 %v2736_v61, %v2669_v57 }
  0xf5   :  { %5270 = vst [vmem:[#allocation114_spill] sm:$0xff] %v2947_v10  ;;  %v1034_v10 = vmul.f32 %v2742_v60, %v2669_v57  ;;  %v2985_v57 = vperm.slane %v2585_v58, 2 }
  0xf6   :  { %5271 = vst [vmem:[#allocation115_spill] sm:$0xff] %v2950_v59  ;;  %v309_v59 = vmul.f32 %v2520_v22, %v299_v50  ;;  %v2988_v22 = vperm.slane %v2585_v58, 3  ;;  %v2992_v50 = vmul.f32 %v2629_v37, %v2529_v35 }
  0xf7   :  { %5272 = vst [vmem:[#allocation116_spill] sm:$0xff] %v2953_v28  ;;  %v2977_v28 = vmul.f32 %v2626_v6, %v2529_v35  ;;  %v2997_v6 = vpop.permute.xlu2 %361 }
  0xf8   :  { %5273 = vst [vmem:[#allocation117_spill] sm:$0xff] %v2956_v8  ;;  %v2973_v8 = vmul.f32 %v2623_v34, %v2529_v35  ;;  %v2995_v34 = vadd.f32 %v309_v59, %v2665_v54  ;;  %v392_v37 = vmul.f32 %v2997_v6, %v2703_v31  ;;  %v533_v54 = vmul.f32 %v2709_v42, %v2997_v6 }
  0xf9   :  { %5274 = vst [vmem:[#allocation118_spill] sm:$0xff] %v2969_v43  ;;  %v618_v1 = vmul.f32 %v2715_v55, %v2997_v6  ;;  %v703_v59 = vmul.f32 %v2721_v56, %v2997_v6  ;;  %v958_v4 = vmul.f32 %v2739_v26, %v2997_v6  ;;  %v3027_v43 = vperm.slane %v2585_v58, 7 }
  0xfa   :  { %5275 = vst [vmem:[#allocation119_spill] sm:$0xff] %v2973_v8  ;;  %v1043_v8 = vmul.f32 %v2753_v30, %v2997_v6 }
  0xfb   :  { %5276 = vst [vmem:[#allocation120_spill] sm:$0xff] %v2977_v28  ;;  %v3007_v28 = vperm.slane %v2585_v58, 6  ;;  %v3044_v46 = vadd.f32 %v618_v1, %v609_v5  ;;  %v3061_v5 = vadd.f32 %v958_v4, %v949_v2  ;;  %v5298_v1 = vld [vmem:[#allocation8_spill] sm:$0xff] }
  0xfc   :  { %5277 = vst [vmem:[#allocation121_spill] sm:$0xff] %v2979_v18  ;;  %v3004_v18 = vperm.slane %v2585_v58, 5 }
  0xfd   :  { %5278 = vst [vmem:[#allocation122_spill] sm:$0xff] %v2982_v48  ;;  %v3042_v48 = vadd.f32 %v533_v54, %v524_v39  ;;  %v3067_v54 = vmul.f32 %v2638_v41, %v2529_v35 }
  0xfe   :  { %5279 = vst [vmem:[#allocation123_spill] sm:$0xff] %v2985_v57 }
  0xff   :  { %5280 = vst [vmem:[#allocation124_spill] sm:$0xff] %v2988_v22  ;;  %v5290_v22 = vld [vmem:[#allocation13_spill] sm:$0xff]  ;;  %v3079_v2 = vpop.permute.xlu2 %373 }
 0x100   :  { %5281 = vst [vmem:[#allocation125_spill] sm:$0xff] %v2992_v50  ;;  %v873_v50 = vmul.f32 %v2733_v63, %v2997_v6  ;;  %v3040_v57 = vperm.slane %v5290_v22, 0  ;;  %v3049_v58 = vperm.slane %v5290_v22, 1 }
 0x101   :  { %5282 = vst [vmem:[#allocation126_spill] sm:$0xff] %v2995_v34  ;;  %v788_v34 = vmul.f32 %v2727_v51, %v2997_v6 }
 0x102   :  { %5283 = vst [vmem:[#allocation127_spill] sm:$0xff] %v2997_v6  ;;  %v3046_v6 = vadd.f32 %v703_v59, %v694_v11  ;;  %v3059_v39 = vadd.f32 %v873_v50, %v864_v52  ;;  %v3063_v11 = vadd.f32 %v1043_v8, %v1034_v10  ;;  %v3077_v52 = vmul.f32 %v2642_v45, %v2529_v35  ;;  %v3081_v8 = vpop.permute.xlu0 %365  ;;  %v5302_v10 = vld [vmem:[#allocation10_spill] sm:$0xff] }
 0x103   :  { %5284 = vst [vmem:[#allocation128_spill] sm:$0xff] %v3001_v33  ;;  %v3037_v33 = vmul.f32 %v2635_v40, %v2529_v35  ;;  %v3057_v40 = vadd.f32 %v788_v34, %v779_v15  ;;  %v352_v34 = vmul.f32 %v2881_v14, %v2700_v16  ;;  %v393_v50 = vmul.f32 %v3081_v8, %v2703_v31  ;;  %v5316_v16 = vld [vmem:[#allocation84_spill] sm:$0xff] }
 0x104   :  { %5285 = vst [vmem:[#allocation129_spill] sm:$0xff] %v3004_v18  ;;  %v3033_v18 = vmul.f32 %v2632_v38, %v2529_v35  ;;  %v56_v38 = vld [vmem:[#allocation2 + $0x48] sm:$0xff]  ;;  %v534_v7 = vmul.f32 %v2709_v42, %v3081_v8  ;;  %v704_v45 = vmul.f32 %v2721_v56, %v3081_v8  ;;  %v789_v42 = vmul.f32 %v2727_v51, %v3081_v8 }
 0x105   :  { %5286 = vst [vmem:[#allocation130_spill] sm:$0xff] %v3007_v28  ;;  %v3029_v28 = vadd.f32 %v392_v37, %v351_v53  ;;  %v3052_v37 = vperm.slane %v5290_v22, 2  ;;  %v3055_v53 = vperm.slane %v5290_v22, 3  ;;  %v87_v59 = vmul.f32 %v5298_v1, %v56_v38 }
 0x106   :  { %5287 = vst [vmem:[#allocation131_spill] sm:$0xff] %v3027_v43  ;;  %v695_v38 = vmul.f32 %v2718_v20, %v2881_v14  ;;  %v3109_v41 = vadd.f32 %v393_v50, %v352_v34  ;;  %v874_v31 = vmul.f32 %v2733_v63, %v3081_v8  ;;  %v959_v50 = vmul.f32 %v2739_v26, %v3081_v8 }
 0x107   :  { %5288 = vst [vmem:[#allocation132_spill] sm:$0xff] %v3033_v18  ;;  %v58_v18 = vld [vmem:[#allocation2 + $0x58] sm:$0xff]  ;;  %v3095_v4 = vperm.slane %v87_v59, 0  ;;  %v3101_v1 = vperm.slane %v87_v59, 1  ;;  %v1044_v63 = vmul.f32 %v2753_v30, %v3081_v8 }
 0x108   :  { %5289 = vst [vmem:[#allocation133_spill] sm:$0xff] %v3037_v33  ;;  %v57_v33 = vld [vmem:[#allocation2 + $0x50] sm:$0xff]  ;;  %v3085_v15 = vmul.f32 %v5302_v10, %v58_v18  ;;  %v780_v18 = vmul.f32 %v2724_v47, %v2881_v14  ;;  %v619_v10 = vmul.f32 %v2715_v55, %v3081_v8  ;;  %v865_v55 = vmul.f32 %v2730_v9, %v2881_v14 }
 0x109   :  { %5291 = vst [vmem:[#allocation13_spill] sm:$0xff] %v3040_v57  ;;  %v3125_v56 = vadd.f32 %v704_v45, %v695_v38  ;;  %v1120_v38 = vmul.f32 %v2756_v25, %v2881_v14  ;;  %v1375_v9 = vmul.f32 %v2823_v44, %v2881_v14  ;;  %v5319_v44 = vld [vmem:[#allocation87_spill] sm:$0xff] }
 0x10a   :  { %5292 = vst [vmem:[#allocation134_spill] sm:$0xff] %v3046_v6  ;;  %v5299_v6 = vld [vmem:[#allocation9_spill] sm:$0xff]  ;;  %v3127_v34 = vadd.f32 %v789_v42, %v780_v18  ;;  %v3143_v42 = vperm.slane %v87_v59, 6  ;;  %v1129_v18 = vmul.f32 %v2792_v21, %v3081_v8 }
 0x10b   :  { %5293 = vst [vmem:[#allocation135_spill] sm:$0xff] %v3049_v58  ;;  %v3071_v22 = vmul.f32 %v5299_v6, %v57_v33  ;;  %v525_v33 = vmul.f32 %v2706_v36, %v2881_v14  ;;  %v610_v6 = vmul.f32 %v2712_v0, %v2881_v14  ;;  %v3113_v0 = vperm.slane %v87_v59, 3 }
 0x10c   :  { %5294 = vst [vmem:[#allocation136_spill] sm:$0xff] %v3052_v37  ;;  %v3119_v36 = vperm.slane %v87_v59, 4  ;;  %v3161_v30 = vadd.f32 %v1129_v18, %v1120_v38  ;;  %v1384_v38 = vmul.f32 %v2826_v3, %v3081_v8  ;;  %v1554_v3 = vmul.f32 %v5319_v44, %v3081_v8 }
 0x10d   :  { %5295 = vst [vmem:[#allocation137_spill] sm:$0xff] %v3055_v53  ;;  %v3111_v20 = vadd.f32 %v534_v7, %v525_v33  ;;  %v3117_v47 = vadd.f32 %v619_v10, %v610_v6  ;;  %v950_v33 = vmul.f32 %v2736_v61, %v2881_v14  ;;  %v3133_v6 = vadd.f32 %v874_v31, %v865_v55  ;;  %v3149_v55 = vpop.permute.xlu2 %381  ;;  %v3151_v31 = vpop.permute.xlu0 %385 }
 0x10e   :  { %5296 = vst [vmem:[#allocation138_spill] sm:$0xff] %v3063_v11  ;;  %v3135_v7 = vperm.slane %v87_v59, 5  ;;  %v1035_v10 = vmul.f32 %v2742_v60, %v2881_v14  ;;  %v3155_v60 = vperm.slane %v87_v59, 7  ;;  %v3164_v61 = vperm.slane %v3071_v22, 0  ;;  %v5321_v11 = vld [vmem:[#allocation89_spill] sm:$0xff] }
 0x10f   :  { %5297 = vst [vmem:[#allocation139_spill] sm:$0xff] %v3067_v54  ;;  %v3141_v45 = vadd.f32 %v959_v50, %v950_v33  ;;  %v1205_v33 = vmul.f32 %v2799_v29, %v2881_v14  ;;  %v1214_v50 = vmul.f32 %v2806_v24, %v3081_v8  ;;  %v3178_v51 = vperm.slane %v3071_v22, 2  ;;  %v5318_v54 = vld [vmem:[#allocation86_spill] sm:$0xff] }
 0x110   :  { %5300 = vst [vmem:[#allocation8_spill] sm:$0xff] %v3077_v52  ;;  %v3153_v26 = vadd.f32 %v1044_v63, %v1035_v10  ;;  %v1299_v63 = vmul.f32 %v2816_v32, %v3081_v8  ;;  %v1469_v52 = vmul.f32 %v5316_v16, %v3081_v8  ;;  %v1545_v35 = vmul.f32 %v5318_v54, %v2881_v14 }
 0x111   :  { %5301 = vst [vmem:[#allocation9_spill] sm:$0xff] %v3079_v2  ;;  %v3105_v2 = vperm.slane %v87_v59, 2  ;;  %v1222_v10 = vadd.f32 %v1214_v50, %v1205_v33  ;;  %v3171_v59 = vperm.slane %v3071_v22, 1  ;;  %v1392_v33 = vadd.f32 %v1384_v38, %v1375_v9 }
 0x112   :  { %5303 = vst [vmem:[#allocation10_spill] sm:$0xff] %v3095_v4  ;;  %v3185_v50 = vperm.slane %v3071_v22, 3  ;;  %v1562_v9 = vadd.f32 %v1554_v3, %v1545_v35  ;;  %v3199_v38 = vperm.slane %v3071_v22, 5  ;;  %v1715_v54 = vmul.f32 %v2863_v49, %v2881_v14 }
 0x113   :  { %5304 = vst [vmem:[#allocation140_spill] sm:$0xff] %v3101_v1  ;;  %v1724_v44 = vmul.f32 %v2866_v13, %v3081_v8  ;;  %v3213_v3 = vperm.slane %v3071_v22, 7  ;;  %v1885_v13 = vmul.f32 %v2889_v27, %v2881_v14  ;;  %v5332_v27 = vld [vmem:[#allocation112_spill] sm:$0xff] }
 0x114   :  { %5305 = vst [vmem:[#allocation141_spill] sm:$0xff] %v3105_v2 }
 0x115   :  { %5306 = vst [vmem:[#allocation142_spill] sm:$0xff] %v3113_v0  ;;  %v1732_v35 = vadd.f32 %v1724_v44, %v1715_v54  ;;  %v5328_v44 = vld [vmem:[#allocation103_spill] sm:$0xff]  ;;  %v5340_v0 = vld [vmem:[#allocation116_spill] sm:$0xff] }
 0x116   :  { %5307 = vst [vmem:[#allocation143_spill] sm:$0xff] %v3119_v36  ;;  %v1970_v54 = vmul.f32 %v5328_v44, %v2881_v14 }
 0x117   :  { %5308 = vst [vmem:[#allocation144_spill] sm:$0xff] %v3135_v7 }
 0x118   :  { %5309 = vst [vmem:[#allocation145_spill] sm:$0xff] %v3143_v42  ;;  %v5336_v42 = vld [vmem:[#allocation104_spill] sm:$0xff] }
 0x119   :  { %5310 = vst [vmem:[#allocation146_spill] sm:$0xff] %v3149_v55  ;;  %v1290_v55 = vmul.f32 %v2813_v17, %v2881_v14 }
 0x11a   :  { %5311 = vst [vmem:[#allocation147_spill] sm:$0xff] %v3151_v31  ;;  %v1460_v31 = vmul.f32 %v2833_v19, %v2881_v14  ;;  %v1630_v19 = vmul.f32 %v5321_v11, %v2881_v14  ;;  %v1800_v11 = vmul.f32 %v2874_v12, %v2881_v14  ;;  %v1894_v12 = vmul.f32 %v2892_v23, %v3081_v8 }
 0x11b   :  { %5312 = vst [vmem:[#allocation148_spill] sm:$0xff] %v3155_v60  ;;  %v1307_v18 = vadd.f32 %v1299_v63, %v1290_v55  ;;  %v3192_v63 = vperm.slane %v3071_v22, 4  ;;  %v5335_v60 = vld [vmem:[#allocation115_spill] sm:$0xff] }
 0x11c   :  { %5313 = vst [vmem:[#allocation149_spill] sm:$0xff] %v3164_v61  ;;  %v1477_v55 = vadd.f32 %v1469_v52, %v1460_v31  ;;  %v3206_v31 = vperm.slane %v3071_v22, 6  ;;  %v5329_v22 = vld [vmem:[#allocation109_spill] sm:$0xff] }
 0x11d   :  { %5314 = vst [vmem:[#allocation150_spill] sm:$0xff] %v3171_v59  ;;  %v5333_v61 = vld [vmem:[#allocation113_spill] sm:$0xff] }
 0x11e   :  { %5315 = vst [vmem:[#allocation151_spill] sm:$0xff] %v3178_v51  ;;  %v5322_v51 = vld [vmem:[#allocation90_spill] sm:$0xff] }
 0x11f   :  { %5317 = vst [vmem:[#allocation152_spill] sm:$0xff] %v3185_v50  ;;  %v1639_v16 = vmul.f32 %v5322_v51, %v3081_v8  ;;  %v1809_v51 = vmul.f32 %v2877_v62, %v3081_v8 }
 0x120   :  { %5320 = vst [vmem:[#allocation153_spill] sm:$0xff] %v3192_v63  ;;  %v5331_v63 = vld [vmem:[#allocation111_spill] sm:$0xff] }
 0x121   :  { %5323 = vst [vmem:[#allocation154_spill] sm:$0xff] %v3199_v38  ;;  %v1647_v52 = vadd.f32 %v1639_v16, %v1630_v19  ;;  %v3216_v38 = vperm.slane %v3085_v15, 0  ;;  %v3220_v19 = vpop.permute.xlu2 %410  ;;  %v415_v16 = vpop.permute.xlu0 %414  ;;  %v1817_v49 = vadd.f32 %v1809_v51, %v1800_v11  ;;  %v5334_v51 = vld [vmem:[#allocation114_spill] sm:$0xff] }
 0x122   :  { %5324 = vst [vmem:[#allocation155_spill] sm:$0xff] %v3206_v31  ;;  %v3225_v31 = vperm.slane %v3085_v15, 1  ;;  %v442_v62 = vmul.f32 %v415_v16, %v5329_v22  ;;  %v636_v50 = vmul.f32 %v5331_v63, %v415_v16  ;;  %v721_v59 = vmul.f32 %v5332_v27, %v415_v16 }
 0x123   :  { %5325 = vst [vmem:[#allocation156_spill] sm:$0xff] %v3213_v3  ;;  %v5330_v3 = vld [vmem:[#allocation110_spill] sm:$0xff]  ;;  %v806_v32 = vmul.f32 %v5333_v61, %v415_v16  ;;  %v891_v11 = vmul.f32 %v5334_v51, %v415_v16  ;;  %v976_v23 = vmul.f32 %v5335_v60, %v415_v16  ;;  %v1061_v2 = vmul.f32 %v5340_v0, %v415_v16 }
 0x124   :  { %5326 = vst [vmem:[#allocation157_spill] sm:$0xff] %v3216_v38  ;;  %v551_v38 = vmul.f32 %v5330_v3, %v415_v16  ;;  %v3239_v7 = vadd.f32 %v442_v62, %v3109_v41  ;;  %v3245_v36 = vadd.f32 %v636_v50, %v3117_v47  ;;  %v3249_v1 = vadd.f32 %v721_v59, %v3125_v56  ;;  %v5342_v62 = vld [vmem:[#allocation117_spill] sm:$0xff]  ;;  %v5344_v47 = vld [vmem:[#allocation123_spill] sm:$0xff] }
 0x125   :  { %5327 = vst [vmem:[#allocation158_spill] sm:$0xff] %v3225_v31  ;;  %v1979_v31 = vmul.f32 %v5336_v42, %v3081_v8  ;;  %v3252_v4 = vadd.f32 %v806_v32, %v3127_v34  ;;  %v3255_v17 = vadd.f32 %v891_v11, %v3133_v6  ;;  %v3258_v41 = vadd.f32 %v976_v23, %v3141_v45  ;;  %v5347_v59 = vld [vmem:[#allocation129_spill] sm:$0xff]  ;;  %v5348_v32 = vld [vmem:[#allocation130_spill] sm:$0xff] }
 0x126   :  { %5337 = vst [vmem:[#allocation159_spill] sm:$0xff] %v3239_v7  ;;  %v3242_v44 = vadd.f32 %v551_v38, %v3111_v20  ;;  %v1146_v20 = vmul.f32 %v5342_v62, %v415_v16  ;;  %v5343_v38 = vld [vmem:[#allocation122_spill] sm:$0xff]  ;;  %v1316_v50 = vmul.f32 %v5344_v47, %v415_v16  ;;  %v5346_v7 = vld [vmem:[#allocation128_spill] sm:$0xff]  ;;  %v1656_v34 = vmul.f32 %v5348_v32, %v415_v16 }
 0x127   :  { %5339 = vst [vmem:[#allocation161_spill] sm:$0xff] %v3245_v36  ;;  %v1231_v42 = vmul.f32 %v5343_v38, %v415_v16  ;;  %v5345_v36 = vld [vmem:[#allocation124_spill] sm:$0xff]  ;;  %v1486_v56 = vmul.f32 %v5346_v7, %v415_v16  ;;  %v1741_v6 = vmul.f32 %v3027_v43, %v415_v16  ;;  %v3269_v11 = vadd.f32 %v1061_v2, %v3153_v26 }
 0x128   :  { %5338 = vst [vmem:[#allocation160_spill] sm:$0xff] %v3242_v44  ;;  %v1401_v44 = vmul.f32 %v5345_v36, %v415_v16  ;;  %v3272_v23 = vadd.f32 %v1146_v20, %v3161_v30  ;;  %v3276_v38 = vadd.f32 %v1316_v50, %v1307_v18  ;;  %v3288_v43 = vadd.f32 %v1656_v34, %v1647_v52  ;;  %v5351_v20 = vld [vmem:[#allocation106_spill] sm:$0xff] }
 0x129   :  { %5341 = vst [vmem:[#allocation162_spill] sm:$0xff] %v3249_v1  ;;  %v1571_v1 = vmul.f32 %v5347_v59, %v415_v16  ;;  %v3274_v45 = vadd.f32 %v1231_v42, %v1222_v10  ;;  %v3278_v47 = vpop.permute.xlu2 %422  ;;  %v3280_v36 = vpop.permute.xlu0 %434  ;;  %v3284_v59 = vadd.f32 %v1486_v56, %v1477_v55  ;;  %v3290_v26 = vadd.f32 %v1741_v6, %v1732_v35  ;;  %v5352_v55 = vld [vmem:[#allocation107_spill] sm:$0xff] }
 0x12a   :  { %5349 = vst [vmem:[#allocation163_spill] sm:$0xff] %v3278_v47  ;;  %v3282_v7 = vadd.f32 %v1401_v44, %v1392_v33  ;;  %v1826_v30 = vmul.f32 %v3040_v57, %v415_v16  ;;  %v1902_v2 = vadd.f32 %v1894_v12, %v1885_v13  ;;  %v1911_v42 = vmul.f32 %v3049_v58, %v415_v16  ;;  %v5366_v47 = vld [vmem:[#allocation142_spill] sm:$0xff] }
 0x12b   :  { %5350 = vst [vmem:[#allocation164_spill] sm:$0xff] %v3280_v36  ;;  %v3286_v32 = vadd.f32 %v1571_v1, %v1562_v9  ;;  %v1987_v10 = vadd.f32 %v1979_v31, %v1970_v54  ;;  %v1996_v18 = vmul.f32 %v3052_v37, %v415_v16  ;;  %v2055_v33 = vmul.f32 %v5351_v20, %v2881_v14  ;;  %v5375_v57 = vld [vmem:[#allocation78_spill] sm:$0xff] }
 0x12c   :  { %v2064_v44 = vmul.f32 %v5352_v55, %v3081_v8  ;;  %v3299_v1 = vadd.f32 %v1826_v30, %v1817_v49  ;;  %v3301_v9 = vadd.f32 %v1911_v42, %v1902_v2  ;;  %v3304_v52 = vperm.slane %v3085_v15, 2  ;;  %v5355_v2 = vld [vmem:[#allocation134_spill] sm:$0xff] }
 0x12d   :  { %v2081_v13 = vmul.f32 %v3055_v53, %v415_v16  ;;  %v3308_v31 = vperm.slane %v3085_v15, 3  ;;  %v441_v35 = vmul.f32 %v3220_v19, %v5329_v22  ;;  %v550_v14 = vmul.f32 %v5330_v3, %v3220_v19 }
 0x12e   :  { %5353 = vst [vmem:[#allocation165_spill] sm:$0xff] %v3304_v52  ;;  %v2072_v12 = vadd.f32 %v2064_v44, %v2055_v33  ;;  %v635_v49 = vmul.f32 %v5331_v63, %v3220_v19  ;;  %v720_v8 = vmul.f32 %v5332_v27, %v3220_v19  ;;  %v805_v54 = vmul.f32 %v5333_v61, %v3220_v19  ;;  %v5370_v61 = vld [vmem:[#allocation148_spill] sm:$0xff]  ;;  %v5373_v36 = vld [vmem:[#allocation161_spill] sm:$0xff] }
 0x12f   :  { %5354 = vst [vmem:[#allocation166_spill] sm:$0xff] %v3308_v31  ;;  %v890_v16 = vmul.f32 %v5334_v51, %v3220_v19  ;;  %v3322_v15 = vadd.f32 %v1996_v18, %v1987_v10  ;;  %v3327_v56 = vadd.f32 %v441_v35, %v3029_v28  ;;  %v975_v34 = vmul.f32 %v5335_v60, %v3220_v19  ;;  %v5372_v3 = vld [vmem:[#allocation160_spill] sm:$0xff] }
 0x130   :  { %v3324_v50 = vadd.f32 %v2081_v13, %v2072_v12  ;;  %v3332_v6 = vadd.f32 %v550_v14, %v3042_v48  ;;  %v3335_v30 = vadd.f32 %v635_v49, %v3044_v46  ;;  %v3338_v42 = vadd.f32 %v720_v8, %v5355_v2  ;;  %v5356_v48 = vld [vmem:[#allocation37_spill] sm:$0xff]  ;;  %v5357_v13 = vld [vmem:[#allocation127_spill] sm:$0xff]  ;;  %v5363_v49 = vld [vmem:[#allocation10_spill] sm:$0xff] }
 0x131   :  { %v3341_v10 = vadd.f32 %v805_v54, %v3057_v40  ;;  %v3344_v18 = vadd.f32 %v890_v16, %v3059_v39  ;;  %v3347_v28 = vadd.f32 %v975_v34, %v3061_v5  ;;  %v3351_v33 = vmul.f32 %v5340_v0, %v3220_v19  ;;  %v464_v44 = vpop.permute.xlu0 %463  ;;  %v5360_v5 = vld [vmem:[#allocation77_spill] sm:$0xff]  ;;  %v3373_v14 = vpop.permute.xlu2 %430  ;;  %v5364_v54 = vld [vmem:[#allocation140_spill] sm:$0xff]  ;;  %v5374_v53 = vld [vmem:[#allocation162_spill] sm:$0xff] }
 0x132   :  { %v3355_v46 = vmul.f32 %v2756_v25, %v5356_v48  ;;  %v3359_v12 = vmul.f32 %v2792_v21, %v5357_v13  ;;  %v3363_v40 = vmul.f32 %v2799_v29, %v5356_v48  ;;  %v3367_v39 = vmul.f32 %v2806_v24, %v5357_v13  ;;  %5362 = vst [vmem:[#allocation169_spill] sm:$0xff] %v3373_v14  ;;  %v5365_v34 = vld [vmem:[#allocation141_spill] sm:$0xff]  ;;  %v5367_v29 = vld [vmem:[#allocation143_spill] sm:$0xff]  ;;  %v5368_v0 = vld [vmem:[#allocation144_spill] sm:$0xff] }
 0x133   :  { %v3371_v35 = vmul.f32 %v5360_v5, %v5356_v48  ;;  %v491_v8 = vmul.f32 %v464_v44, %v5363_v49  ;;  %v568_v16 = vmul.f32 %v5364_v54, %v464_v44  ;;  %v653_v2 = vmul.f32 %v5365_v34, %v464_v44  ;;  %v5369_v24 = vld [vmem:[#allocation145_spill] sm:$0xff]  ;;  %v5371_v5 = vld [vmem:[#allocation159_spill] sm:$0xff] }
 0x134   :  { %5358 = vst [vmem:[#allocation134_spill] sm:$0xff] %v3363_v40  ;;  %v738_v21 = vmul.f32 %v5366_v47, %v464_v44  ;;  %v823_v25 = vmul.f32 %v5367_v29, %v464_v44  ;;  %v908_v60 = vmul.f32 %v5368_v0, %v464_v44  ;;  %v993_v51 = vmul.f32 %v5369_v24, %v464_v44  ;;  %v5378_v40 = vld [vmem:[#allocation60_spill] sm:$0xff] }
 0x135   :  { %5359 = vst [vmem:[#allocation167_spill] sm:$0xff] %v3367_v39  ;;  %v1078_v27 = vmul.f32 %v5370_v61, %v464_v44  ;;  %v499_v63 = vadd.f32 %v491_v8, %v5371_v5  ;;  %v576_v14 = vadd.f32 %v568_v16, %v5372_v3  ;;  %v661_v22 = vadd.f32 %v653_v2, %v5373_v36  ;;  %v5379_v8 = vld [vmem:[#allocation63_spill] sm:$0xff]  ;;  %v5380_v16 = vld [vmem:[#allocation64_spill] sm:$0xff]  ;;  %v5384_v2 = vld [vmem:[#allocation149_spill] sm:$0xff] }
 0x136   :  { %5361 = vst [vmem:[#allocation168_spill] sm:$0xff] %v3371_v35  ;;  %v746_v55 = vadd.f32 %v738_v21, %v5374_v53  ;;  %v831_v20 = vadd.f32 %v823_v25, %v3252_v4  ;;  %v916_v37 = vadd.f32 %v908_v60, %v3255_v17  ;;  %v1001_v58 = vadd.f32 %v993_v51, %v3258_v41  ;;  %v5377_v35 = vld [vmem:[#allocation59_spill] sm:$0xff]  ;;  %v5381_v53 = vld [vmem:[#allocation65_spill] sm:$0xff]  ;;  %v5383_v60 = vld [vmem:[#allocation68_spill] sm:$0xff] }
 0x137   :  { %v3392_v48 = vmul.f32 %v5375_v57, %v5357_v13  ;;  %v516_v39 = vadd.f32 %v5377_v35, %v499_v63  ;;  %v593_v5 = vadd.f32 %v5378_v40, %v576_v14  ;;  %v678_v3 = vadd.f32 %v5379_v8, %v661_v22  ;;  %v5382_v4 = vld [vmem:[#allocation67_spill] sm:$0xff]  ;;  %v5385_v13 = vld [vmem:[#allocation150_spill] sm:$0xff]  ;;  %v5387_v40 = vld [vmem:[#allocation152_spill] sm:$0xff] }
 0x138   :  { %v1086_v36 = vadd.f32 %v1078_v27, %v3269_v11  ;;  %v763_v21 = vadd.f32 %v5380_v16, %v746_v55  ;;  %v848_v25 = vadd.f32 %v5381_v53, %v831_v20  ;;  %v933_v17 = vadd.f32 %v5382_v4, %v916_v37  ;;  %v5386_v63 = vld [vmem:[#allocation151_spill] sm:$0xff]  ;;  %v5388_v22 = vld [vmem:[#allocation153_spill] sm:$0xff]  ;;  %v5389_v27 = vld [vmem:[#allocation154_spill] sm:$0xff] }
 0x139   :  { %5376 = vst [vmem:[#allocation159_spill] sm:$0xff] %v3392_v48  ;;  %v1018_v51 = vadd.f32 %v5383_v60, %v1001_v58  ;;  %v601_v41 = vmax.f32 %v516_v39, %v593_v5  ;;  %v1163_v57 = vmul.f32 %v5384_v2, %v464_v44  ;;  %v1248_v48 = vmul.f32 %v5385_v13, %v464_v44  ;;  %v5390_v55 = vld [vmem:[#allocation155_spill] sm:$0xff]  ;;  %v5391_v53 = vld [vmem:[#allocation69_spill] sm:$0xff] }
 0x13a   :  { %v1333_v35 = vmul.f32 %v5386_v63, %v464_v44  ;;  %v1418_v14 = vmul.f32 %v5387_v40, %v464_v44  ;;  %v1503_v8 = vmul.f32 %v5388_v22, %v464_v44  ;;  %v1588_v11 = vmul.f32 %v5389_v27, %v464_v44  ;;  %v3416_v22 = vpop.permute.xlu2 %459  ;;  %v5392_v63 = vld [vmem:[#allocation72_spill] sm:$0xff] }
 0x13b   :  { %v1673_v16 = vmul.f32 %v5390_v55, %v464_v44  ;;  %v686_v20 = vmax.f32 %v601_v41, %v678_v3  ;;  %v1103_v37 = vadd.f32 %v5391_v53, %v1086_v36  ;;  %v1171_v58 = vadd.f32 %v1163_v57, %v3272_v23  ;;  %v5393_v3 = vld [vmem:[#allocation76_spill] sm:$0xff]  ;;  %v5394_v57 = vld [vmem:[#allocation82_spill] sm:$0xff] }
 0x13c   :  { %v1256_v39 = vadd.f32 %v1248_v48, %v3274_v45  ;;  %v1426_v5 = vadd.f32 %v1418_v14, %v3282_v7  ;;  %v1511_v4 = vadd.f32 %v1503_v8, %v3284_v59  ;;  %v1596_v60 = vadd.f32 %v1588_v11, %v3286_v32  ;;  %v5395_v45 = vld [vmem:[#allocation85_spill] sm:$0xff]  ;;  %v5396_v59 = vld [vmem:[#allocation88_spill] sm:$0xff]  ;;  %v5397_v32 = vld [vmem:[#allocation91_spill] sm:$0xff] }
 0x13d   :  { %v1681_v40 = vadd.f32 %v1673_v16, %v3288_v43  ;;  %v771_v27 = vmax.f32 %v686_v20, %v763_v21  ;;  %v1188_v55 = vadd.f32 %v5392_v63, %v1171_v58  ;;  %v1341_v36 = vadd.f32 %v1333_v35, %v3276_v38  ;;  %v5398_v21 = vld [vmem:[#allocation156_spill] sm:$0xff]  ;;  %v5399_v63 = vld [vmem:[#allocation157_spill] sm:$0xff]  ;;  %v5400_v16 = vld [vmem:[#allocation158_spill] sm:$0xff] }
 0x13e   :  { %v1273_v41 = vadd.f32 %v5393_v3, %v1256_v39  ;;  %v3422_v23 = vadd.f32 %v5394_v57, %v1426_v5  ;;  %v3425_v7 = vadd.f32 %v5395_v45, %v1511_v4  ;;  %v3428_v48 = vadd.f32 %v5396_v59, %v1596_v60  ;;  %v5401_v57 = vld [vmem:[#allocation94_spill] sm:$0xff] }
 0x13f   :  { %v3431_v43 = vadd.f32 %v5397_v32, %v1681_v40  ;;  %v856_v14 = vmax.f32 %v771_v27, %v848_v25  ;;  %v1758_v8 = vmul.f32 %v5398_v21, %v464_v44  ;;  %v1843_v11 = vmul.f32 %v5399_v63, %v464_v44  ;;  %v5402_v59 = vld [vmem:[#allocation98_spill] sm:$0xff] }
 0x140   :  { %v1928_v20 = vmul.f32 %v5400_v16, %v464_v44  ;;  %v2013_v38 = vmul.f32 %v3304_v52, %v464_v44  ;;  %v2098_v35 = vmul.f32 %v3308_v31, %v464_v44  ;;  %v490_v53 = vmul.f32 %v3416_v22, %v5363_v49 }
 0x141   :  { %v567_v58 = vmul.f32 %v5364_v54, %v3416_v22  ;;  %v941_v39 = vmax.f32 %v856_v14, %v933_v17  ;;  %v1766_v40 = vadd.f32 %v1758_v8, %v3290_v26  ;;  %v1851_v25 = vadd.f32 %v1843_v11, %v3299_v1  ;;  %v5403_v26 = vld [vmem:[#allocation101_spill] sm:$0xff]  ;;  %v5407_v8 = vld [vmem:[#allocation36_spill] sm:$0xff] }
 0x142   :  { %v1936_v27 = vadd.f32 %v1928_v20, %v3301_v9  ;;  %v2021_v5 = vadd.f32 %v2013_v38, %v3322_v15  ;;  %v2106_v4 = vadd.f32 %v2098_v35, %v3324_v50  ;;  %v498_v60 = vadd.f32 %v490_v53, %v3327_v56  ;;  %v5404_v1 = vld [vmem:[#allocation105_spill] sm:$0xff]  ;;  %v5405_v15 = vld [vmem:[#allocation108_spill] sm:$0xff]  ;;  %v5406_v50 = vld [vmem:[#allocation35_spill] sm:$0xff] }
 0x143   :  { %v575_v44 = vadd.f32 %v567_v58, %v3332_v6  ;;  %v1026_v3 = vmax.f32 %v941_v39, %v1018_v51  ;;  %v3450_v45 = vadd.f32 %v5401_v57, %v1766_v40  ;;  %v3453_v17 = vadd.f32 %v5402_v59, %v1851_v25  ;;  %v5408_v35 = vld [vmem:[#allocation79_spill] sm:$0xff]  ;;  %v5410_v59 = vld [vmem:[#allocation38_spill] sm:$0xff] }
 0x144   :  { %v3456_v32 = vadd.f32 %v5403_v26, %v1936_v27  ;;  %v3459_v9 = vadd.f32 %v5404_v1, %v2021_v5  ;;  %v3462_v14 = vadd.f32 %v5405_v15, %v2106_v4  ;;  %v515_v56 = vadd.f32 %v5406_v50, %v498_v60  ;;  %v5413_v15 = vld [vmem:[#allocation41_spill] sm:$0xff]  ;;  %v5414_v50 = vld [vmem:[#allocation42_spill] sm:$0xff] }
 0x145   :  { %v592_v6 = vadd.f32 %v5407_v8, %v575_v44  ;;  %v1111_v51 = vmax.f32 %v1026_v3, %v1103_v37  ;;  %v652_v11 = vmul.f32 %v5365_v34, %v3416_v22  ;;  %v737_v20 = vmul.f32 %v5366_v47, %v3416_v22  ;;  %v5409_v44 = vld [vmem:[#allocation138_spill] sm:$0xff] }
 0x146   :  { %v822_v38 = vmul.f32 %v5367_v29, %v3416_v22  ;;  %v1358_v53 = vadd.f32 %v5408_v35, %v1341_v36  ;;  %v907_v39 = vmul.f32 %v5368_v0, %v3416_v22  ;;  %v992_v40 = vmul.f32 %v5369_v24, %v3416_v22 }
 0x147   :  { %v600_v58 = vmax.f32 %v515_v56, %v592_v6  ;;  %v1196_v25 = vmax.f32 %v1111_v51, %v1188_v55  ;;  %v660_v37 = vadd.f32 %v652_v11, %v3335_v30  ;;  %v745_v27 = vadd.f32 %v737_v20, %v3338_v42  ;;  %v5411_v55 = vld [vmem:[#allocation39_spill] sm:$0xff]  ;;  %v5412_v42 = vld [vmem:[#allocation40_spill] sm:$0xff]  ;;  %v5415_v11 = vld [vmem:[#allocation134_spill] sm:$0xff] }
 0x148   :  { %v830_v5 = vadd.f32 %v822_v38, %v3341_v10  ;;  %v915_v4 = vadd.f32 %v907_v39, %v3344_v18  ;;  %v1000_v60 = vadd.f32 %v992_v40, %v3347_v28  ;;  %v1068_v36 = vadd.f32 %v3351_v33, %v5409_v44  ;;  %v5416_v20 = vld [vmem:[#allocation167_spill] sm:$0xff] }
 0x149   :  { %v1077_v3 = vmul.f32 %v5370_v61, %v3416_v22  ;;  %v1281_v57 = vmax.f32 %v1196_v25, %v1273_v41  ;;  %v677_v26 = vadd.f32 %v5410_v59, %v660_v37  ;;  %v762_v1 = vadd.f32 %v5411_v55, %v745_v27  ;;  %v5418_v25 = vld [vmem:[#allocation168_spill] sm:$0xff]  ;;  %v5420_v37 = vld [vmem:[#allocation123_spill] sm:$0xff] }
 0x14a   :  { %v1136_v30 = vadd.f32 %v3359_v12, %v3355_v46  ;;  %v847_v10 = vadd.f32 %v5412_v42, %v830_v5  ;;  %v932_v18 = vadd.f32 %v5413_v15, %v915_v4  ;;  %v1017_v28 = vadd.f32 %v5414_v50, %v1000_v60  ;;  %v5417_v46 = vld [vmem:[#allocation122_spill] sm:$0xff]  ;;  %v5421_v60 = vld [vmem:[#allocation151_spill] sm:$0xff] }
 0x14b   :  { %v1145_v33 = vmul.f32 %v5342_v62, %v3220_v19  ;;  %v1366_v56 = vmax.f32 %v1281_v57, %v1358_v53  ;;  %v685_v8 = vmax.f32 %v600_v58, %v677_v26  ;;  %v1085_v6 = vadd.f32 %v1077_v3, %v1068_v36  ;;  %v5419_v53 = vld [vmem:[#allocation159_spill] sm:$0xff]  ;;  %v5422_v36 = vld [vmem:[#allocation37_spill] sm:$0xff]  ;;  %v5423_v3 = vld [vmem:[#allocation80_spill] sm:$0xff] }
 0x14c   :  { %v1162_v41 = vmul.f32 %v5384_v2, %v3416_v22  ;;  %v1221_v38 = vadd.f32 %v5416_v20, %v5415_v11  ;;  %v1230_v12 = vmul.f32 %v5417_v46, %v3220_v19  ;;  %v1247_v35 = vmul.f32 %v5385_v13, %v3416_v22  ;;  %v5424_v55 = vld [vmem:[#allocation43_spill] sm:$0xff]  ;;  %v5427_v15 = vld [vmem:[#allocation118_spill] sm:$0xff] }
 0x14d   :  { %v1153_v51 = vadd.f32 %v1145_v33, %v1136_v30  ;;  %v1451_v39 = vmax.f32 %v1366_v56, %v3422_v23  ;;  %v770_v40 = vmax.f32 %v685_v8, %v762_v1  ;;  %v1306_v58 = vadd.f32 %v5419_v53, %v5418_v25  ;;  %v5425_v1 = vld [vmem:[#allocation127_spill] sm:$0xff]  ;;  %v5426_v30 = vld [vmem:[#allocation81_spill] sm:$0xff]  ;;  %v5428_v8 = vld [vmem:[#allocation124_spill] sm:$0xff] }
 0x14e   :  { %v1315_v27 = vmul.f32 %v5420_v37, %v3220_v19  ;;  %v1238_v4 = vadd.f32 %v1230_v12, %v1221_v38  ;;  %v1332_v44 = vmul.f32 %v5421_v60, %v3416_v22  ;;  %v1374_v57 = vmul.f32 %v5423_v3, %v5422_v36  ;;  %v5429_v38 = vld [vmem:[#allocation152_spill] sm:$0xff] }
 0x14f   :  { %v1170_v5 = vadd.f32 %v1162_v41, %v1153_v51  ;;  %v1536_v59 = vmax.f32 %v1451_v39, %v3425_v7  ;;  %v855_v26 = vmax.f32 %v770_v40, %v847_v10  ;;  %v1102_v23 = vadd.f32 %v5424_v55, %v1085_v6  ;;  %v5430_v6 = vld [vmem:[#allocation83_spill] sm:$0xff]  ;;  %v5431_v39 = vld [vmem:[#allocation84_spill] sm:$0xff] }
 0x150   :  { %v1383_v42 = vmul.f32 %v5426_v30, %v5425_v1  ;;  %v1255_v33 = vadd.f32 %v1247_v35, %v1238_v4  ;;  %v1323_v56 = vadd.f32 %v1315_v27, %v1306_v58  ;;  %v1400_v41 = vmul.f32 %v5428_v8, %v3220_v19  ;;  %v5432_v35 = vld [vmem:[#allocation128_spill] sm:$0xff]  ;;  %v5433_v27 = vld [vmem:[#allocation119_spill] sm:$0xff] }
 0x151   :  { %v1187_v50 = vadd.f32 %v5427_v15, %v1170_v5  ;;  %v1621_v51 = vmax.f32 %v1536_v59, %v3428_v48  ;;  %v940_v11 = vmax.f32 %v855_v26, %v932_v18  ;;  %v1417_v7 = vmul.f32 %v5429_v38, %v3416_v22  ;;  %v3530_v5 = vpop.permute.xlu0 %483  ;;  %v5435_v59 = vld [vmem:[#allocation86_spill] sm:$0xff]  ;;  %v5436_v55 = vld [vmem:[#allocation87_spill] sm:$0xff] }
 0x152   :  { %v1391_v20 = vadd.f32 %v1383_v42, %v1374_v57  ;;  %v1340_v10 = vadd.f32 %v1332_v44, %v1323_v56  ;;  %v1459_v12 = vmul.f32 %v5430_v6, %v5422_v36  ;;  %v1468_v40 = vmul.f32 %v5431_v39, %v5425_v1  ;;  %v5434_v44 = vld [vmem:[#allocation153_spill] sm:$0xff] }
 0x153   :  { %v1485_v25 = vmul.f32 %v5432_v35, %v3220_v19  ;;  %v1706_v53 = vmax.f32 %v1621_v51, %v3431_v43  ;;  %v1025_v58 = vmax.f32 %v940_v11, %v1017_v28  ;;  %v1272_v48 = vadd.f32 %v5433_v27, %v1255_v33  ;;  %v5437_v28 = vld [vmem:[#allocation129_spill] sm:$0xff]  ;;  %v5438_v11 = vld [vmem:[#allocation154_spill] sm:$0xff] }
 0x154   :  { %v1408_v18 = vadd.f32 %v1400_v41, %v1391_v20  ;;  %v1476_v4 = vadd.f32 %v1468_v40, %v1459_v12  ;;  %v1502_v57 = vmul.f32 %v5434_v44, %v3416_v22  ;;  %v1544_v26 = vmul.f32 %v5435_v59, %v5422_v36  ;;  %v5439_v12 = vld [vmem:[#allocation89_spill] sm:$0xff]  ;;  %v5440_v44 = vld [vmem:[#allocation120_spill] sm:$0xff] }
 0x155   :  { %v1553_v42 = vmul.f32 %v5436_v55, %v5425_v1  ;;  %v1791_v15 = vmax.f32 %v1706_v53, %v3450_v45  ;;  %v1110_v56 = vmax.f32 %v1025_v58, %v1102_v23  ;;  %v1570_v33 = vmul.f32 %v5437_v28, %v3220_v19  ;;  %v5441_v45 = vld [vmem:[#allocation90_spill] sm:$0xff] }
 0x156   :  { %v1425_v43 = vadd.f32 %v1417_v7, %v1408_v18  ;;  %v1493_v41 = vadd.f32 %v1485_v25, %v1476_v4  ;;  %v1587_v20 = vmul.f32 %v5438_v11, %v3416_v22  ;;  %v1629_v40 = vmul.f32 %v5439_v12, %v5422_v36  ;;  %v5442_v58 = vld [vmem:[#allocation130_spill] sm:$0xff]  ;;  %v5443_v18 = vld [vmem:[#allocation155_spill] sm:$0xff] }
 0x157   :  { %v1561_v51 = vadd.f32 %v1553_v42, %v1544_v26  ;;  %v1876_v27 = vmax.f32 %v1791_v15, %v3453_v17  ;;  %v1195_v59 = vmax.f32 %v1110_v56, %v1187_v50  ;;  %v1357_v55 = vadd.f32 %v5440_v44, %v1340_v10  ;;  %v5444_v17 = vld [vmem:[#allocation92_spill] sm:$0xff]  ;;  %v5445_v15 = vld [vmem:[#allocation125_spill] sm:$0xff] }
 0x158   :  { %v1638_v23 = vmul.f32 %v5441_v45, %v5425_v1  ;;  %v1510_v7 = vadd.f32 %v1502_v57, %v1493_v41  ;;  %v1655_v25 = vmul.f32 %v5442_v58, %v3220_v19  ;;  %v1672_v4 = vmul.f32 %v5443_v18, %v3416_v22  ;;  %v5446_v56 = vld [vmem:[#allocation93_spill] sm:$0xff]  ;;  %v5448_v18 = vld [vmem:[#allocation132_spill] sm:$0xff] }
 0x159   :  { %v1578_v53 = vadd.f32 %v1570_v33, %v1561_v51  ;;  %v1961_v26 = vmax.f32 %v1876_v27, %v3456_v32  ;;  %v1280_v42 = vmax.f32 %v1195_v59, %v1272_v48  ;;  %v1714_v50 = vmul.f32 %v5444_v17, %v5422_v36  ;;  %v5447_v33 = vld [vmem:[#allocation131_spill] sm:$0xff]  ;;  %v3563_v48 = vpop.permute.xlu2 %471  ;;  %v2144_v59 = vpop.permute.xlu0 %2143 }
 0x15a   :  { %v1646_v12 = vadd.f32 %v1638_v23, %v1629_v40  ;;  %v1442_v10 = vadd.f32 %v5445_v15, %v1425_v43  ;;  %v1723_v57 = vmul.f32 %v5446_v56, %v5425_v1  ;;  %v1740_v41 = vmul.f32 %v5447_v33, %v3220_v19  ;;  %5449 = vst [vmem:[#allocation160_spill] sm:$0xff] %v3563_v48  ;;  %v5451_v23 = vld [vmem:[#allocation96_spill] sm:$0xff] }
 0x15b   :  { %v1595_v44 = vadd.f32 %v1587_v20, %v1578_v53  ;;  %v2046_v51 = vmax.f32 %v1961_v26, %v3459_v9  ;;  %v1365_v58 = vmax.f32 %v1280_v42, %v1357_v55  ;;  %v1527_v45 = vadd.f32 %v5448_v18, %v1510_v7  ;;  %v5450_v20 = vld [vmem:[#allocation95_spill] sm:$0xff]  ;;  %v5452_v7 = vld [vmem:[#allocation13_spill] sm:$0xff] }
 0x15c   :  { %v1663_v32 = vadd.f32 %v1655_v25, %v1646_v12  ;;  %v1731_v40 = vadd.f32 %v1723_v57, %v1714_v50  ;;  %v1757_v43 = vmul.f32 %v5398_v21, %v3416_v22  ;;  %v1799_v27 = vmul.f32 %v5450_v20, %v5422_v36  ;;  %v5453_v25 = vld [vmem:[#allocation133_spill] sm:$0xff]  ;;  %v5454_v20 = vld [vmem:[#allocation11_spill] sm:$0xff] }
 0x15d   :  { %v1808_v53 = vmul.f32 %v5451_v23, %v5425_v1  ;;  %v2131_v15 = vmax.f32 %v2046_v51, %v3462_v14  ;;  %v1450_v9 = vmax.f32 %v1365_v58, %v1442_v10  ;;  %v1825_v12 = vmul.f32 %v5452_v7, %v3220_v19  ;;  %v5455_v21 = vld [vmem:[#allocation31_spill] sm:$0xff]  ;;  %v5457_v10 = vld [vmem:[#allocation100_spill] sm:$0xff] }
 0x15e   :  { %v1680_v55 = vadd.f32 %v1672_v4, %v1663_v32  ;;  %v1612_v18 = vadd.f32 %v5453_v25, %v1595_v44  ;;  %v1748_v26 = vadd.f32 %v1740_v41, %v1731_v40  ;;  %v1842_v50 = vmul.f32 %v5399_v63, %v3416_v22  ;;  %v5456_v23 = vld [vmem:[#allocation99_spill] sm:$0xff] }
 0x15f   :  { %v1816_v42 = vadd.f32 %v1808_v53, %v1799_v27  ;;  %v2171_v57 = vadd.f32 %v2144_v59, %v2131_v15  ;;  %v1535_v48 = vmax.f32 %v1450_v9, %v1527_v45  ;;  %v1859_v33 = vmul.f32 %v5455_v21, %v5454_v20  ;;  %v5458_v44 = vld [vmem:[#allocation135_spill] sm:$0xff]  ;;  %v5460_v9 = vld [vmem:[#allocation32_spill] sm:$0xff] }
 0x160   :  { %v1884_v14 = vmul.f32 %v5456_v23, %v5422_v36  ;;  %v1765_v58 = vadd.f32 %v1757_v43, %v1748_v26  ;;  %v1893_v51 = vmul.f32 %v5457_v10, %v5425_v1  ;;  %v1910_v41 = vmul.f32 %v5458_v44, %v3220_v19  ;;  %v5459_v27 = vld [vmem:[#allocation139_spill] sm:$0xff] }
 0x161   :  { %v1833_v4 = vadd.f32 %v1825_v12, %v1816_v42  ;;  %v2179_v32 = vmax.f32 %v2171_v57, 0.0  ;;  %v1620_v40 = vmax.f32 %v1535_v48, %v1612_v18  ;;  %v1697_v53 = vadd.f32 %v5459_v27, %v1680_v55  ;;  %v5461_v43 = vld [vmem:[#allocation103_spill] sm:$0xff]  ;;  %v5462_v42 = vld [vmem:[#allocation8_spill] sm:$0xff] }
 0x162   :  { %v1927_v45 = vmul.f32 %v5400_v16, %v3416_v22  ;;  %v1901_v15 = vadd.f32 %v1893_v51, %v1884_v14  ;;  %v1944_v25 = vmul.f32 %v5460_v9, %v5454_v20  ;;  %v1969_v12 = vmul.f32 %v5461_v43, %v5422_v36  ;;  %v5463_v57 = vld [vmem:[#allocation104_spill] sm:$0xff]  ;;  %v5465_v14 = vld [vmem:[#allocation106_spill] sm:$0xff] }
 0x163   :  { %v1850_v59 = vadd.f32 %v1842_v50, %v1833_v4  ;;  %2187 = vst [vmem:[#allocation5 + $0x8] sm:$0xff] %v2179_v32  ;;  %v1705_v26 = vmax.f32 %v1620_v40, %v1697_v53  ;;  %v1782_v21 = vadd.f32 %v5462_v42, %v1765_v58  ;;  %v1978_v48 = vmul.f32 %v5463_v57, %v5425_v1  ;;  %v5464_v55 = vld [vmem:[#allocation136_spill] sm:$0xff]  ;;  %v5466_v32 = vld [vmem:[#allocation107_spill] sm:$0xff]  ;;  %v5467_v58 = vld [vmem:[#allocation137_spill] sm:$0xff]  ;;  %v3605_v42 = vpop.permute.xlu2 %479 }
 0x164   :  { %v1995_v18 = vmul.f32 %v5464_v55, %v3220_v19  ;;  %v1918_v16 = vadd.f32 %v1910_v41, %v1901_v15  ;;  %v2012_v50 = vmul.f32 %v3304_v52, %v3416_v22  ;;  %v2054_v4 = vmul.f32 %v5465_v14, %v5422_v36  ;;  %5468 = vst [vmem:[#allocation161_spill] sm:$0xff] %v3605_v42  ;;  %v5470_v15 = vld [vmem:[#allocation44_spill] sm:$0xff]  ;;  %v5471_v52 = vld [vmem:[#allocation121_spill] sm:$0xff] }
 0x165   :  { %v1867_v27 = vadd.f32 %v1859_v33, %v1850_v59  ;;  %v1790_v51 = vmax.f32 %v1705_v26, %v1782_v21  ;;  %v1986_v9 = vadd.f32 %v1978_v48, %v1969_v12  ;;  %v2063_v40 = vmul.f32 %v5466_v32, %v5425_v1  ;;  %v5469_v33 = vld [vmem:[#allocation33_spill] sm:$0xff]  ;;  %v5473_v1 = vld [vmem:[#allocation147_spill] sm:$0xff] }
 0x166   :  { %v2080_v53 = vmul.f32 %v5467_v58, %v3220_v19  ;;  %v1935_v57 = vadd.f32 %v1927_v45, %v1918_v16  ;;  %v2029_v41 = vmul.f32 %v5469_v33, %v5454_v20  ;;  %v2097_v59 = vmul.f32 %v3308_v31, %v3416_v22  ;;  %v5472_v48 = vld [vmem:[#allocation45_spill] sm:$0xff]  ;;  %v5474_v19 = vld [vmem:[#allocation34_spill] sm:$0xff]  ;;  %v5476_v45 = vld [vmem:[#allocation164_spill] sm:$0xff] }
 0x167   :  { %v357_v36 = vmul.f32 %v5471_v52, %v5470_v15  ;;  %v1875_v21 = vmax.f32 %v1790_v51, %v1867_v27  ;;  %v2003_v12 = vadd.f32 %v1995_v18, %v1986_v9  ;;  %v2071_v26 = vadd.f32 %v2063_v40, %v2054_v4  ;;  %v5475_v16 = vld [vmem:[#allocation109_spill] sm:$0xff]  ;;  %v5477_v27 = vld [vmem:[#allocation46_spill] sm:$0xff]  ;;  %v5479_v51 = vld [vmem:[#allocation15_spill] sm:$0xff] }
 0x168   :  { %v398_v32 = vmul.f32 %v5473_v1, %v5472_v48  ;;  %v1952_v14 = vadd.f32 %v1944_v25, %v1935_v57  ;;  %v2114_v42 = vmul.f32 %v5474_v19, %v5454_v20  ;;  %v447_v58 = vmul.f32 %v5476_v45, %v5475_v16  ;;  %v5478_v4 = vld [vmem:[#allocation74_spill] sm:$0xff]  ;;  %v5480_v25 = vld [vmem:[#allocation47_spill] sm:$0xff] }
 0x169   :  { %v496_v33 = vmul.f32 %v3530_v5, %v5363_v49  ;;  %v2020_v22 = vadd.f32 %v2012_v50, %v2003_v12  ;;  %v2088_v31 = vadd.f32 %v2080_v53, %v2071_v26  ;;  %v530_v9 = vmul.f32 %v5477_v27, %v5471_v52  ;;  %v5481_v20 = vld [vmem:[#allocation110_spill] sm:$0xff]  ;;  %v5482_v53 = vld [vmem:[#allocation48_spill] sm:$0xff]  ;;  %v5484_v12 = vld [vmem:[#allocation111_spill] sm:$0xff] }
 0x16a   :  { %v406_v55 = vadd.f32 %v398_v32, %v357_v36  ;;  %v1960_v18 = vmax.f32 %v1875_v21, %v1952_v14  ;;  %v513_v40 = vmul.f32 %v5479_v51, %v5478_v4  ;;  %v539_v57 = vmul.f32 %v5480_v25, %v5473_v1  ;;  %v5483_v14 = vld [vmem:[#allocation49_spill] sm:$0xff] }
 0x16b   :  { %v556_v19 = vmul.f32 %v5481_v20, %v5476_v45  ;;  %v2037_v16 = vadd.f32 %v2029_v41, %v2020_v22  ;;  %v2105_v48 = vadd.f32 %v2097_v59, %v2088_v31  ;;  %v573_v50 = vmul.f32 %v5364_v54, %v3530_v5  ;;  %v5485_v41 = vld [vmem:[#allocation16_spill] sm:$0xff] }
 0x16c   :  { %v455_v15 = vadd.f32 %v447_v58, %v406_v55  ;;  %v547_v32 = vadd.f32 %v539_v57, %v530_v9  ;;  %v615_v36 = vmul.f32 %v5482_v53, %v5471_v52  ;;  %v624_v21 = vmul.f32 %v5483_v14, %v5473_v1  ;;  %v2140_v55 = vpop.permute.xlu2 %2139  ;;  %v5486_v9 = vld [vmem:[#allocation50_spill] sm:$0xff]  ;;  %v5487_v14 = vld [vmem:[#allocation17_spill] sm:$0xff] }
 0x16d   :  { %v641_v26 = vmul.f32 %v5484_v12, %v5476_v45  ;;  %v2045_v51 = vmax.f32 %v1960_v18, %v2037_v16  ;;  %v2122_v25 = vadd.f32 %v2114_v42, %v2105_v48  ;;  %v590_v31 = vmul.f32 %v5485_v41, %v5478_v4  ;;  %v5488_v16 = vld [vmem:[#allocation51_spill] sm:$0xff]  ;;  %v3649_v48 = vpop.permute.xlu1 %328 }
 0x16e   :  { %v504_v27 = vadd.f32 %v496_v33, %v455_v15  ;;  %v564_v58 = vadd.f32 %v556_v19, %v547_v32  ;;  %v632_v59 = vadd.f32 %v624_v21, %v615_v36  ;;  %v658_v22 = vmul.f32 %v5365_v34, %v3530_v5  ;;  %v5489_v33 = vld [vmem:[#allocation112_spill] sm:$0xff]  ;;  %5490 = vst [vmem:[#allocation162_spill] sm:$0xff] %v3649_v48  ;;  %v5497_v48 = vld [vmem:[#allocation19_spill] sm:$0xff] }
 0x16f   :  { %v700_v57 = vmul.f32 %v5486_v9, %v5471_v52  ;;  %v2130_v53 = vmax.f32 %v2045_v51, %v2122_v25  ;;  %v675_v54 = vmul.f32 %v5487_v14, %v5478_v4  ;;  %v709_v42 = vmul.f32 %v5488_v16, %v5473_v1  ;;  %v5491_v51 = vld [vmem:[#allocation52_spill] sm:$0xff]  ;;  %v5492_v14 = vld [vmem:[#allocation53_spill] sm:$0xff] }
 0x170   :  { %v726_v15 = vmul.f32 %v5489_v33, %v5476_v45  ;;  %v521_v19 = vadd.f32 %v513_v40, %v504_v27  ;;  %v581_v18 = vadd.f32 %v573_v50, %v564_v58  ;;  %v649_v32 = vadd.f32 %v641_v26, %v632_v59  ;;  %v5493_v33 = vld [vmem:[#allocation18_spill] sm:$0xff]  ;;  %v5494_v27 = vld [vmem:[#allocation113_spill] sm:$0xff] }
 0x171   :  { %v743_v36 = vmul.f32 %v5366_v47, %v3530_v5  ;;  %v2170_v21 = vadd.f32 %v2140_v55, %v2130_v53  ;;  %v717_v9 = vadd.f32 %v709_v42, %v700_v57  ;;  %v785_v25 = vmul.f32 %v5491_v51, %v5471_v52  ;;  %v5495_v57 = vld [vmem:[#allocation54_spill] sm:$0xff] }
 0x172   :  { %v794_v34 = vmul.f32 %v5492_v14, %v5473_v1  ;;  %v598_v16 = vadd.f32 %v590_v31, %v581_v18  ;;  %v666_v41 = vadd.f32 %v658_v22, %v649_v32  ;;  %v760_v12 = vmul.f32 %v5493_v33, %v5478_v4  ;;  %v5496_v31 = vld [vmem:[#allocation55_spill] sm:$0xff] }
 0x173   :  { %v811_v40 = vmul.f32 %v5494_v27, %v5476_v45  ;;  %v2178_v50 = vmax.f32 %v2170_v21, 0.0  ;;  %v734_v26 = vadd.f32 %v726_v15, %v717_v9  ;;  %v828_v53 = vmul.f32 %v5367_v29, %v3530_v5  ;;  %v5498_v9 = vld [vmem:[#allocation114_spill] sm:$0xff] }
 0x174   :  { %v802_v58 = vadd.f32 %v794_v34, %v785_v25  ;;  %v606_v55 = vmax.f32 %v521_v19, %v598_v16  ;;  %v683_v59 = vadd.f32 %v675_v54, %v666_v41  ;;  %v870_v42 = vmul.f32 %v5495_v57, %v5471_v52  ;;  %v5499_v41 = vld [vmem:[#allocation56_spill] sm:$0xff] }
 0x175   :  { %v879_v22 = vmul.f32 %v5496_v31, %v5473_v1  ;;  %2186 = vst [vmem:[#allocation5] sm:$0xff] %v2178_v50  ;;  %v751_v18 = vadd.f32 %v743_v36, %v734_v26  ;;  %v845_v27 = vmul.f32 %v5497_v48, %v5478_v4  ;;  %v896_v34 = vmul.f32 %v5498_v9, %v5476_v45  ;;  %v5500_v50 = vld [vmem:[#allocation57_spill] sm:$0xff]  ;;  %v5502_v48 = vld [vmem:[#allocation20_spill] sm:$0xff] }
 0x176   :  { %v819_v32 = vadd.f32 %v811_v40, %v802_v58  ;;  %v691_v15 = vmax.f32 %v606_v55, %v683_v59  ;;  %v913_v54 = vmul.f32 %v5368_v0, %v3530_v5  ;;  %v955_v16 = vmul.f32 %v5499_v41, %v5471_v52  ;;  %v5501_v40 = vld [vmem:[#allocation115_spill] sm:$0xff]  ;;  %v5503_v59 = vld [vmem:[#allocation58_spill] sm:$0xff] }
 0x177   :  { %v887_v21 = vadd.f32 %v879_v22, %v870_v42  ;;  %v768_v19 = vadd.f32 %v760_v12, %v751_v18  ;;  %v964_v36 = vmul.f32 %v5500_v50, %v5473_v1  ;;  %v981_v26 = vmul.f32 %v5501_v40, %v5476_v45 }
 0x178   :  { %v836_v25 = vadd.f32 %v828_v53, %v819_v32  ;;  %v930_v9 = vmul.f32 %v5502_v48, %v5478_v4  ;;  %v998_v55 = vmul.f32 %v5369_v24, %v3530_v5  ;;  %v1040_v42 = vmul.f32 %v5503_v59, %v5471_v52  ;;  %v5504_v53 = vld [vmem:[#allocation61_spill] sm:$0xff]  ;;  %v3687_v32 = vpop.permute.xlu1 %336  ;;  %v5507_v48 = vld [vmem:[#allocation116_spill] sm:$0xff] }
 0x179   :  { %v904_v58 = vadd.f32 %v896_v34, %v887_v21  ;;  %v776_v22 = vmax.f32 %v691_v15, %v768_v19  ;;  %v972_v12 = vadd.f32 %v964_v36, %v955_v16  ;;  %v1049_v18 = vmul.f32 %v5504_v53, %v5473_v1  ;;  %5505 = vst [vmem:[#allocation59_spill] sm:$0xff] %v3687_v32  ;;  %v5506_v34 = vld [vmem:[#allocation21_spill] sm:$0xff] }
 0x17a   :  { %v853_v41 = vadd.f32 %v845_v27, %v836_v25  ;;  %v1015_v21 = vmul.f32 %v5506_v34, %v5478_v4  ;;  %v1066_v40 = vmul.f32 %v5507_v48, %v5476_v45  ;;  %v1083_v24 = vmul.f32 %v5370_v61, %v3530_v5  ;;  %v5508_v27 = vld [vmem:[#allocation62_spill] sm:$0xff] }
 0x17b   :  { %v921_v50 = vadd.f32 %v913_v54, %v904_v58  ;;  %v989_v59 = vadd.f32 %v981_v26, %v972_v12  ;;  %v1057_v15 = vadd.f32 %v1049_v18, %v1040_v42  ;;  %v1125_v16 = vmul.f32 %v5508_v27, %v5471_v52  ;;  %v5509_v25 = vld [vmem:[#allocation22_spill] sm:$0xff]  ;;  %v5510_v54 = vld [vmem:[#allocation71_spill] sm:$0xff]  ;;  %v5511_v26 = vld [vmem:[#allocation73_spill] sm:$0xff] }
 0x17c   :  { %v861_v0 = vmax.f32 %v776_v22, %v853_v41  ;;  %v1100_v36 = vmul.f32 %v5509_v25, %v5478_v4  ;;  %v1134_v58 = vmul.f32 %v5510_v54, %v5473_v1  ;;  %v1151_v32 = vmul.f32 %v5342_v62, %v5476_v45  ;;  %v5513_v62 = vld [vmem:[#allocation23_spill] sm:$0xff] }
 0x17d   :  { %v938_v19 = vadd.f32 %v930_v9, %v921_v50  ;;  %v1006_v48 = vadd.f32 %v998_v55, %v989_v59  ;;  %v1074_v34 = vadd.f32 %v1066_v40, %v1057_v15  ;;  %v1168_v41 = vmul.f32 %v5384_v2, %v3530_v5  ;;  %v5512_v9 = vld [vmem:[#allocation75_spill] sm:$0xff] }
 0x17e   :  { %v1210_v42 = vmul.f32 %v5511_v26, %v5471_v52  ;;  %v1142_v12 = vadd.f32 %v1134_v58, %v1125_v16  ;;  %v1219_v50 = vmul.f32 %v5512_v9, %v5473_v1  ;;  %v1236_v18 = vmul.f32 %v5417_v46, %v5476_v45  ;;  %v5514_v26 = vld [vmem:[#allocation77_spill] sm:$0xff]  ;;  %v5515_v16 = vld [vmem:[#allocation78_spill] sm:$0xff]  ;;  %v5516_v46 = vld [vmem:[#allocation24_spill] sm:$0xff] }
 0x17f   :  { %v946_v22 = vmax.f32 %v861_v0, %v938_v19  ;;  %v1023_v25 = vadd.f32 %v1015_v21, %v1006_v48  ;;  %v1091_v54 = vadd.f32 %v1083_v24, %v1074_v34  ;;  %v1185_v55 = vmul.f32 %v5513_v62, %v5478_v4 }
 0x180   :  { %v1253_v40 = vmul.f32 %v5385_v13, %v3530_v5  ;;  %v1159_v59 = vadd.f32 %v1151_v32, %v1142_v12  ;;  %v1227_v15 = vadd.f32 %v1219_v50, %v1210_v42  ;;  %v1295_v0 = vmul.f32 %v5514_v26, %v5471_v52 }
 0x181   :  { %v1304_v19 = vmul.f32 %v5515_v16, %v5473_v1  ;;  %v1031_v58 = vmax.f32 %v946_v22, %v1023_v25  ;;  %v1108_v9 = vadd.f32 %v1100_v36, %v1091_v54  ;;  %v1270_v48 = vmul.f32 %v5516_v46, %v5478_v4  ;;  %v3731_v54 = vpop.permute.xlu1 %348 }
 0x182   :  { %v1321_v24 = vmul.f32 %v5420_v37, %v5476_v45  ;;  %v1176_v34 = vadd.f32 %v1168_v41, %v1159_v59  ;;  %v1244_v21 = vadd.f32 %v1236_v18, %v1227_v15  ;;  %v1338_v32 = vmul.f32 %v5421_v60, %v3530_v5  ;;  %5517 = vst [vmem:[#allocation60_spill] sm:$0xff] %v3731_v54  ;;  %v5518_v18 = vld [vmem:[#allocation25_spill] sm:$0xff] }
 0x183   :  { %v1312_v62 = vadd.f32 %v1304_v19, %v1295_v0  ;;  %v1116_v42 = vmax.f32 %v1031_v58, %v1108_v9  ;;  %v1380_v12 = vmul.f32 %v5423_v3, %v5471_v52  ;;  %v1389_v25 = vmul.f32 %v5426_v30, %v5473_v1 }
 0x184   :  { %v1406_v36 = vmul.f32 %v5428_v8, %v5476_v45  ;;  %v1193_v22 = vadd.f32 %v1185_v55, %v1176_v34  ;;  %v1261_v50 = vadd.f32 %v1253_v40, %v1244_v21  ;;  %v1355_v59 = vmul.f32 %v5518_v18, %v5478_v4  ;;  %v5519_v40 = vld [vmem:[#allocation26_spill] sm:$0xff]  ;;  %v5520_v21 = vld [vmem:[#allocation153_spill] sm:$0xff] }
 0x185   :  { %v1329_v41 = vadd.f32 %v1321_v24, %v1312_v62  ;;  %v1397_v15 = vadd.f32 %v1389_v25, %v1380_v12  ;;  %v1423_v9 = vmul.f32 %v5429_v38, %v3530_v5  ;;  %v1465_v0 = vmul.f32 %v5430_v6, %v5471_v52  ;;  %v5521_v6 = vld [vmem:[#allocation86_spill] sm:$0xff] }
 0x186   :  { %v1474_v19 = vmul.f32 %v5431_v39, %v5473_v1  ;;  %v1201_v58 = vmax.f32 %v1116_v42, %v1193_v22  ;;  %v1278_v8 = vadd.f32 %v1270_v48, %v1261_v50  ;;  %v1491_v55 = vmul.f32 %v5432_v35, %v5476_v45  ;;  %v5522_v42 = vld [vmem:[#allocation87_spill] sm:$0xff] }
 0x187   :  { %v1346_v30 = vadd.f32 %v1338_v32, %v1329_v41  ;;  %v1414_v62 = vadd.f32 %v1406_v36, %v1397_v15  ;;  %v1440_v24 = vmul.f32 %v5519_v40, %v5478_v4  ;;  %v1508_v12 = vmul.f32 %v5520_v21, %v3530_v5  ;;  %v5523_v50 = vld [vmem:[#allocation27_spill] sm:$0xff] }
 0x188   :  { %v1482_v34 = vadd.f32 %v1474_v19, %v1465_v0  ;;  %v1286_v25 = vmax.f32 %v1201_v58, %v1278_v8  ;;  %v1550_v38 = vmul.f32 %v5521_v6, %v5471_v52  ;;  %v1559_v48 = vmul.f32 %v5522_v42, %v5473_v1  ;;  %v5525_v42 = vld [vmem:[#allocation90_spill] sm:$0xff] }
 0x189   :  { %v1363_v54 = vadd.f32 %v1355_v59, %v1346_v30  ;;  %v1431_v32 = vadd.f32 %v1423_v9, %v1414_v62  ;;  %v1525_v36 = vmul.f32 %v5523_v50, %v5478_v4  ;;  %v1576_v41 = vmul.f32 %v5437_v28, %v5476_v45  ;;  %v5524_v30 = vld [vmem:[#allocation89_spill] sm:$0xff]  ;;  %v5527_v50 = vld [vmem:[#allocation28_spill] sm:$0xff] }
 0x18a   :  { %v1499_v22 = vadd.f32 %v1491_v55, %v1482_v34  ;;  %v1567_v0 = vadd.f32 %v1559_v48, %v1550_v38  ;;  %v1593_v8 = vmul.f32 %v5438_v11, %v3530_v5  ;;  %v1635_v59 = vmul.f32 %v5524_v30, %v5471_v52  ;;  %v5526_v55 = vld [vmem:[#allocation130_spill] sm:$0xff]  ;;  %v5528_v38 = vld [vmem:[#allocation155_spill] sm:$0xff] }
 0x18b   :  { %v1371_v15 = vmax.f32 %v1286_v25, %v1363_v54  ;;  %v1448_v19 = vadd.f32 %v1440_v24, %v1431_v32  ;;  %v1644_v9 = vmul.f32 %v5525_v42, %v5473_v1  ;;  %v1661_v62 = vmul.f32 %v5526_v55, %v5476_v45  ;;  %v3771_v32 = vpop.permute.xlu1 %369 }
 0x18c   :  { %v1516_v58 = vadd.f32 %v1508_v12, %v1499_v22  ;;  %v1584_v34 = vadd.f32 %v1576_v41, %v1567_v0  ;;  %v1610_v28 = vmul.f32 %v5527_v50, %v5478_v4  ;;  %v1678_v54 = vmul.f32 %v5528_v38, %v3530_v5  ;;  %5529 = vst [vmem:[#allocation63_spill] sm:$0xff] %v3771_v32  ;;  %v5530_v41 = vld [vmem:[#allocation29_spill] sm:$0xff]  ;;  %v5531_v50 = vld [vmem:[#allocation131_spill] sm:$0xff]  ;;  %v5532_v38 = vld [vmem:[#allocation156_spill] sm:$0xff] }
 0x18d   :  { %v1720_v25 = vmul.f32 %v5444_v17, %v5471_v52  ;;  %v1456_v48 = vmax.f32 %v1371_v15, %v1448_v19  ;;  %v1652_v24 = vadd.f32 %v1644_v9, %v1635_v59  ;;  %v1729_v12 = vmul.f32 %v5446_v56, %v5473_v1 }
 0x18e   :  { %v1533_v30 = vadd.f32 %v1525_v36, %v1516_v58  ;;  %v1601_v22 = vadd.f32 %v1593_v8, %v1584_v34  ;;  %v1695_v0 = vmul.f32 %v5530_v41, %v5478_v4  ;;  %v1746_v55 = vmul.f32 %v5531_v50, %v5476_v45  ;;  %v5533_v36 = vld [vmem:[#allocation95_spill] sm:$0xff]  ;;  %v5534_v58 = vld [vmem:[#allocation30_spill] sm:$0xff]  ;;  %v5535_v8 = vld [vmem:[#allocation96_spill] sm:$0xff] }
 0x18f   :  { %v1763_v42 = vmul.f32 %v5532_v38, %v3530_v5  ;;  %v1669_v17 = vadd.f32 %v1661_v62, %v1652_v24  ;;  %v1737_v15 = vadd.f32 %v1729_v12, %v1720_v25  ;;  %v1805_v59 = vmul.f32 %v5533_v36, %v5471_v52 }
 0x190   :  { %v1541_v11 = vmax.f32 %v1456_v48, %v1533_v30  ;;  %v1618_v19 = vadd.f32 %v1610_v28, %v1601_v22  ;;  %v1780_v9 = vmul.f32 %v5534_v58, %v5478_v4  ;;  %v1814_v34 = vmul.f32 %v5535_v8, %v5473_v1  ;;  %v5536_v58 = vld [vmem:[#allocation31_spill] sm:$0xff] }
 0x191   :  { %v1831_v32 = vmul.f32 %v5452_v7, %v5476_v45  ;;  %v1686_v50 = vadd.f32 %v1678_v54, %v1669_v17  ;;  %v1754_v41 = vadd.f32 %v1746_v55, %v1737_v15  ;;  %v1848_v30 = vmul.f32 %v5399_v63, %v3530_v5  ;;  %v5537_v55 = vld [vmem:[#allocation158_spill] sm:$0xff] }
 0x192   :  { %v1890_v62 = vmul.f32 %v5456_v23, %v5471_v52  ;;  %v1626_v25 = vmax.f32 %v1541_v11, %v1618_v19  ;;  %v1822_v48 = vadd.f32 %v1814_v34, %v1805_v59  ;;  %v1899_v28 = vmul.f32 %v5457_v10, %v5473_v1  ;;  %v5538_v59 = vld [vmem:[#allocation104_spill] sm:$0xff] }
 0x193   :  { %v1916_v24 = vmul.f32 %v5458_v44, %v5476_v45  ;;  %v1703_v12 = vadd.f32 %v1695_v0, %v1686_v50  ;;  %v1771_v22 = vadd.f32 %v1763_v42, %v1754_v41  ;;  %v1865_v17 = vmul.f32 %v5536_v58, %v5478_v4  ;;  %v5539_v44 = vld [vmem:[#allocation32_spill] sm:$0xff] }
 0x194   :  { %v1933_v54 = vmul.f32 %v5537_v55, %v3530_v5  ;;  %v1839_v15 = vadd.f32 %v1831_v32, %v1822_v48  ;;  %v1907_v63 = vadd.f32 %v1899_v28, %v1890_v62  ;;  %v1975_v11 = vmul.f32 %v5461_v43, %v5471_v52  ;;  %v5540_v42 = vld [vmem:[#allocation136_spill] sm:$0xff]  ;;  %v5541_v32 = vld [vmem:[#allocation165_spill] sm:$0xff]  ;;  %v5542_v28 = vld [vmem:[#allocation106_spill] sm:$0xff] }
 0x195   :  { %v1984_v19 = vmul.f32 %v5538_v59, %v5473_v1  ;;  %v1711_v34 = vmax.f32 %v1626_v25, %v1703_v12  ;;  %v1788_v10 = vadd.f32 %v1780_v9, %v1771_v22  ;;  %v1950_v50 = vmul.f32 %v5539_v44, %v5478_v4  ;;  %v5543_v59 = vld [vmem:[#allocation107_spill] sm:$0xff]  ;;  %v5544_v9 = vld [vmem:[#allocation137_spill] sm:$0xff]  ;;  %v3815_v22 = vpop.permute.xlu1 %377 }
 0x196   :  { %v2001_v41 = vmul.f32 %v5540_v42, %v5476_v45  ;;  %v1856_v0 = vadd.f32 %v1848_v30, %v1839_v15  ;;  %v1924_v58 = vadd.f32 %v1916_v24, %v1907_v63  ;;  %v2018_v62 = vmul.f32 %v5541_v32, %v3530_v5  ;;  %5545 = vst [vmem:[#allocation64_spill] sm:$0xff] %v3815_v22  ;;  %v5546_v63 = vld [vmem:[#allocation33_spill] sm:$0xff] }
 0x197   :  { %v1992_v23 = vadd.f32 %v1984_v19, %v1975_v11  ;;  %v1796_v48 = vmax.f32 %v1711_v34, %v1788_v10  ;;  %v2060_v43 = vmul.f32 %v5542_v28, %v5471_v52  ;;  %v2069_v25 = vmul.f32 %v5543_v59, %v5473_v1  ;;  %v5547_v10 = vld [vmem:[#allocation166_spill] sm:$0xff]  ;;  %v5548_v19 = vld [vmem:[#allocation44_spill] sm:$0xff]  ;;  %v5550_v28 = vld [vmem:[#allocation45_spill] sm:$0xff] }
 0x198   :  { %v2086_v12 = vmul.f32 %v5544_v9, %v5476_v45  ;;  %v1873_v44 = vadd.f32 %v1865_v17, %v1856_v0  ;;  %v1941_v42 = vadd.f32 %v1933_v54, %v1924_v58  ;;  %v2035_v24 = vmul.f32 %v5546_v63, %v5478_v4  ;;  %v5549_v52 = vld [vmem:[#allocation66_spill] sm:$0xff]  ;;  %v5551_v1 = vld [vmem:[#allocation9_spill] sm:$0xff]  ;;  %v5553_v17 = vld [vmem:[#allocation163_spill] sm:$0xff] }
 0x199   :  { %v2009_v30 = vadd.f32 %v2001_v41, %v1992_v23  ;;  %v2077_v15 = vadd.f32 %v2069_v25, %v2060_v43  ;;  %v2103_v11 = vmul.f32 %v5547_v10, %v3530_v5  ;;  %v354_v34 = vmul.f32 %v5549_v52, %v5548_v19  ;;  %v5552_v22 = vld [vmem:[#allocation109_spill] sm:$0xff]  ;;  %v5554_v54 = vld [vmem:[#allocation34_spill] sm:$0xff]  ;;  %v5555_v0 = vld [vmem:[#allocation160_spill] sm:$0xff] }
 0x19a   :  { %v395_v59 = vmul.f32 %v5551_v1, %v5550_v28  ;;  %v1881_v32 = vmax.f32 %v1796_v48, %v1873_v44  ;;  %v1958_v45 = vadd.f32 %v1950_v50, %v1941_v42  ;;  %v444_v58 = vmul.f32 %v5553_v17, %v5552_v22  ;;  %v5556_v19 = vld [vmem:[#allocation46_spill] sm:$0xff]  ;;  %v5557_v44 = vld [vmem:[#allocation47_spill] sm:$0xff]  ;;  %v5558_v48 = vld [vmem:[#allocation12_spill] sm:$0xff] }
 0x19b   :  { %v2026_v9 = vadd.f32 %v2018_v62, %v2009_v30  ;;  %v2094_v23 = vadd.f32 %v2086_v12, %v2077_v15  ;;  %v2120_v41 = vmul.f32 %v5554_v54, %v5478_v4  ;;  %v493_v5 = vmul.f32 %v5555_v0, %v5363_v49  ;;  %v5559_v30 = vld [vmem:[#allocation15_spill] sm:$0xff] }
 0x19c   :  { %v403_v43 = vadd.f32 %v395_v59, %v354_v34  ;;  %v1966_v25 = vmax.f32 %v1881_v32, %v1958_v45  ;;  %v527_v63 = vmul.f32 %v5556_v19, %v5549_v52  ;;  %v536_v50 = vmul.f32 %v5557_v44, %v5551_v1  ;;  %v5560_v34 = vld [vmem:[#allocation140_spill] sm:$0xff]  ;;  %v5562_v44 = vld [vmem:[#allocation49_spill] sm:$0xff] }
 0x19d   :  { %v2043_v10 = vadd.f32 %v2035_v24, %v2026_v9  ;;  %v2111_v42 = vadd.f32 %v2103_v11, %v2094_v23  ;;  %v510_v12 = vmul.f32 %v5559_v30, %v5558_v48  ;;  %v553_v4 = vmul.f32 %v5481_v20, %v5553_v17  ;;  %v5561_v9 = vld [vmem:[#allocation48_spill] sm:$0xff] }
 0x19e   :  { %v452_v62 = vadd.f32 %v444_v58, %v403_v43  ;;  %v544_v15 = vadd.f32 %v536_v50, %v527_v63  ;;  %v570_v32 = vmul.f32 %v5560_v34, %v5555_v0  ;;  %v612_v24 = vmul.f32 %v5561_v9, %v5549_v52  ;;  %v5563_v58 = vld [vmem:[#allocation111_spill] sm:$0xff]  ;;  %v2164_v43 = vpop.permute.xlu0 %2163  ;;  %v5564_v20 = vld [vmem:[#allocation16_spill] sm:$0xff]  ;;  %v5565_v63 = vld [vmem:[#allocation141_spill] sm:$0xff] }
 0x19f   :  { %v2051_v59 = vmax.f32 %v1966_v25, %v2043_v10  ;;  %v2128_v45 = vadd.f32 %v2120_v41, %v2111_v42  ;;  %v621_v11 = vmul.f32 %v5562_v44, %v5551_v1  ;;  %v638_v23 = vmul.f32 %v5563_v58, %v5553_v17  ;;  %v5566_v50 = vld [vmem:[#allocation50_spill] sm:$0xff]  ;;  %v3857_v58 = vpop.permute.xlu1 %389 }
 0x1a0   :  { %v501_v19 = vadd.f32 %v493_v5, %v452_v62  ;;  %v561_v30 = vadd.f32 %v553_v4, %v544_v15  ;;  %v587_v10 = vmul.f32 %v5564_v20, %v5558_v48  ;;  %v655_v25 = vmul.f32 %v5565_v63, %v5555_v0  ;;  %v5567_v5 = vld [vmem:[#allocation17_spill] sm:$0xff]  ;;  %v5568_v62 = vld [vmem:[#allocation51_spill] sm:$0xff]  ;;  %5569 = vst [vmem:[#allocation65_spill] sm:$0xff] %v3857_v58  ;;  %v5570_v20 = vld [vmem:[#allocation112_spill] sm:$0xff] }
 0x1a1   :  { %v697_v34 = vmul.f32 %v5566_v50, %v5549_v52  ;;  %v2136_v9 = vmax.f32 %v2051_v59, %v2128_v45  ;;  %v629_v41 = vadd.f32 %v621_v11, %v612_v24  ;;  %v672_v42 = vmul.f32 %v5567_v5, %v5558_v48 }
 0x1a2   :  { %v706_v44 = vmul.f32 %v5568_v62, %v5551_v1  ;;  %v518_v4 = vadd.f32 %v510_v12, %v501_v19  ;;  %v578_v15 = vadd.f32 %v570_v32, %v561_v30  ;;  %v723_v49 = vmul.f32 %v5570_v20, %v5553_v17  ;;  %v5571_v30 = vld [vmem:[#allocation113_spill] sm:$0xff] }
 0x1a3   :  { %v740_v63 = vmul.f32 %v5366_v47, %v5555_v0  ;;  %v2176_v54 = vadd.f32 %v2164_v43, %v2136_v9  ;;  %v646_v50 = vadd.f32 %v638_v23, %v629_v41  ;;  %v782_v24 = vmul.f32 %v5491_v51, %v5549_v52 }
 0x1a4   :  { %v714_v59 = vadd.f32 %v706_v44, %v697_v34  ;;  %v595_v45 = vadd.f32 %v587_v10, %v578_v15  ;;  %v757_v11 = vmul.f32 %v5493_v33, %v5558_v48  ;;  %v791_v19 = vmul.f32 %v5492_v14, %v5551_v1  ;;  %v5572_v15 = vld [vmem:[#allocation19_spill] sm:$0xff] }
 0x1a5   :  { %v808_v12 = vmul.f32 %v5571_v30, %v5553_v17  ;;  %v2184_v32 = vmax.f32 %v2176_v54, 0.0  ;;  %v663_v58 = vadd.f32 %v655_v25, %v646_v50  ;;  %v825_v9 = vmul.f32 %v5367_v29, %v5555_v0  ;;  %v5573_v54 = vld [vmem:[#allocation114_spill] sm:$0xff] }
 0x1a6   :  { %v731_v20 = vadd.f32 %v723_v49, %v714_v59  ;;  %v603_v44 = vmax.f32 %v518_v4, %v595_v45  ;;  %v799_v34 = vadd.f32 %v791_v19, %v782_v24  ;;  %v867_v23 = vmul.f32 %v5495_v57, %v5549_v52  ;;  %v5574_v4 = vld [vmem:[#allocation144_spill] sm:$0xff] }
 0x1a7   :  { %v876_v43 = vmul.f32 %v5496_v31, %v5551_v1  ;;  %2192 = vst [vmem:[#allocation5 + $0x30] sm:$0xff] %v2184_v32  ;;  %v680_v10 = vadd.f32 %v672_v42, %v663_v58  ;;  %v842_v33 = vmul.f32 %v5572_v15, %v5558_v48  ;;  %v893_v49 = vmul.f32 %v5573_v54, %v5553_v17  ;;  %v5575_v24 = vld [vmem:[#allocation56_spill] sm:$0xff]  ;;  %v5576_v32 = vld [vmem:[#allocation57_spill] sm:$0xff] }
 0x1a8   :  { %v748_v41 = vadd.f32 %v740_v63, %v731_v20  ;;  %v816_v25 = vadd.f32 %v808_v12, %v799_v34  ;;  %v910_v59 = vmul.f32 %v5574_v4, %v5555_v0  ;;  %v952_v45 = vmul.f32 %v5575_v24, %v5549_v52  ;;  %v5577_v20 = vld [vmem:[#allocation115_spill] sm:$0xff]  ;;  %v5578_v54 = vld [vmem:[#allocation20_spill] sm:$0xff]  ;;  %v5579_v34 = vld [vmem:[#allocation145_spill] sm:$0xff] }
 0x1a9   :  { %v884_v50 = vadd.f32 %v876_v43, %v867_v23  ;;  %v688_v19 = vmax.f32 %v603_v44, %v680_v10  ;;  %v961_v58 = vmul.f32 %v5576_v32, %v5551_v1  ;;  %v978_v63 = vmul.f32 %v5577_v20, %v5553_v17  ;;  %v5580_v24 = vld [vmem:[#allocation58_spill] sm:$0xff]  ;;  %v3897_v10 = vpop.permute.xlu1 %418 }
 0x1aa   :  { %v765_v57 = vadd.f32 %v757_v11, %v748_v41  ;;  %v833_v42 = vadd.f32 %v825_v9, %v816_v25  ;;  %v927_v12 = vmul.f32 %v5578_v54, %v5558_v48  ;;  %v995_v23 = vmul.f32 %v5579_v34, %v5555_v0  ;;  %v5581_v9 = vld [vmem:[#allocation21_spill] sm:$0xff]  ;;  %v5582_v25 = vld [vmem:[#allocation116_spill] sm:$0xff] }
 0x1ab   :  { %v901_v15 = vadd.f32 %v893_v49, %v884_v50  ;;  %v969_v4 = vadd.f32 %v961_v58, %v952_v45  ;;  %v1037_v44 = vmul.f32 %v5580_v24, %v5549_v52  ;;  %v1046_v11 = vmul.f32 %v5504_v53, %v5551_v1  ;;  %v5583_v53 = vld [vmem:[#allocation71_spill] sm:$0xff] }
 0x1ac   :  { %v773_v43 = vmax.f32 %v688_v19, %v765_v57  ;;  %v850_v41 = vadd.f32 %v842_v33, %v833_v42  ;;  %v1012_v49 = vmul.f32 %v5581_v9, %v5558_v48  ;;  %v1063_v50 = vmul.f32 %v5582_v25, %v5553_v17  ;;  %v5585_v25 = vld [vmem:[#allocation22_spill] sm:$0xff] }
 0x1ad   :  { %v918_v20 = vadd.f32 %v910_v59, %v901_v15  ;;  %v986_v54 = vadd.f32 %v978_v63, %v969_v4  ;;  %v1054_v34 = vadd.f32 %v1046_v11, %v1037_v44  ;;  %v1080_v57 = vmul.f32 %v5370_v61, %v5555_v0  ;;  %v5584_v15 = vld [vmem:[#allocation117_spill] sm:$0xff] }
 0x1ae   :  { %v1122_v45 = vmul.f32 %v5508_v27, %v5549_v52  ;;  %v858_v19 = vmax.f32 %v773_v43, %v850_v41  ;;  %v1131_v33 = vmul.f32 %v5583_v53, %v5551_v1  ;;  %v1148_v59 = vmul.f32 %v5584_v15, %v5553_v17  ;;  %v5586_v27 = vld [vmem:[#allocation73_spill] sm:$0xff]  ;;  %v5588_v15 = vld [vmem:[#allocation23_spill] sm:$0xff] }
 0x1af   :  { %v935_v58 = vadd.f32 %v927_v12, %v918_v20  ;;  %v1003_v42 = vadd.f32 %v995_v23, %v986_v54  ;;  %v1071_v24 = vadd.f32 %v1063_v50, %v1054_v34  ;;  %v1097_v4 = vmul.f32 %v5585_v25, %v5558_v48  ;;  %v5587_v20 = vld [vmem:[#allocation75_spill] sm:$0xff]  ;;  %v5589_v34 = vld [vmem:[#allocation122_spill] sm:$0xff] }
 0x1b0   :  { %v1165_v63 = vmul.f32 %v5384_v2, %v5555_v0  ;;  %v1139_v11 = vadd.f32 %v1131_v33, %v1122_v45  ;;  %v1207_v43 = vmul.f32 %v5586_v27, %v5549_v52  ;;  %v1216_v12 = vmul.f32 %v5587_v20, %v5551_v1 }
 0x1b1   :  { %v943_v44 = vmax.f32 %v858_v19, %v935_v58  ;;  %v1020_v41 = vadd.f32 %v1012_v49, %v1003_v42  ;;  %v1088_v53 = vadd.f32 %v1080_v57, %v1071_v24  ;;  %v1182_v54 = vmul.f32 %v5588_v15, %v5558_v48 }
 0x1b2   :  { %v1233_v23 = vmul.f32 %v5589_v34, %v5553_v17  ;;  %v1156_v50 = vadd.f32 %v1148_v59, %v1139_v11  ;;  %v1224_v25 = vadd.f32 %v1216_v12, %v1207_v43  ;;  %v1250_v19 = vmul.f32 %v5385_v13, %v5555_v0 }
 0x1b3   :  { %v1292_v45 = vmul.f32 %v5514_v26, %v5549_v52  ;;  %v1028_v58 = vmax.f32 %v943_v44, %v1020_v41  ;;  %v1105_v33 = vadd.f32 %v1097_v4, %v1088_v53  ;;  %v1301_v49 = vmul.f32 %v5515_v16, %v5551_v1  ;;  %v5590_v53 = vld [vmem:[#allocation81_spill] sm:$0xff]  ;;  %v3939_v41 = vpop.permute.xlu1 %426 }
 0x1b4   :  { %v1318_v24 = vmul.f32 %v5420_v37, %v5553_v17  ;;  %v1173_v57 = vadd.f32 %v1165_v63, %v1156_v50  ;;  %v1241_v42 = vadd.f32 %v1233_v23, %v1224_v25  ;;  %v1267_v59 = vmul.f32 %v5516_v46, %v5558_v48  ;;  %5591 = vst [vmem:[#allocation67_spill] sm:$0xff] %v3939_v41  ;;  %v5592_v63 = vld [vmem:[#allocation124_spill] sm:$0xff] }
 0x1b5   :  { %v1335_v11 = vmul.f32 %v5421_v60, %v5555_v0  ;;  %v1113_v43 = vmax.f32 %v1028_v58, %v1105_v33  ;;  %v1309_v12 = vadd.f32 %v1301_v49, %v1292_v45  ;;  %v1377_v44 = vmul.f32 %v5423_v3, %v5549_v52  ;;  %v5593_v45 = vld [vmem:[#allocation152_spill] sm:$0xff]  ;;  %v5594_v33 = vld [vmem:[#allocation83_spill] sm:$0xff] }
 0x1b6   :  { %v1386_v4 = vmul.f32 %v5590_v53, %v5551_v1  ;;  %v1190_v16 = vadd.f32 %v1182_v54, %v1173_v57  ;;  %v1258_v37 = vadd.f32 %v1250_v19, %v1241_v42  ;;  %v1352_v25 = vmul.f32 %v5518_v18, %v5558_v48 }
 0x1b7   :  { %v1403_v23 = vmul.f32 %v5592_v63, %v5553_v17  ;;  %v1326_v50 = vadd.f32 %v1318_v24, %v1309_v12  ;;  %v1420_v58 = vmul.f32 %v5593_v45, %v5555_v0  ;;  %v1462_v49 = vmul.f32 %v5594_v33, %v5549_v52 }
 0x1b8   :  { %v1394_v60 = vadd.f32 %v1386_v4, %v1377_v44  ;;  %v1198_v3 = vmax.f32 %v1113_v43, %v1190_v16  ;;  %v1275_v53 = vadd.f32 %v1267_v59, %v1258_v37  ;;  %v1471_v54 = vmul.f32 %v5431_v39, %v5551_v1  ;;  %v5595_v37 = vld [vmem:[#allocation87_spill] sm:$0xff] }
 0x1b9   :  { %v1488_v19 = vmul.f32 %v5432_v35, %v5553_v17  ;;  %v1343_v57 = vadd.f32 %v1335_v11, %v1326_v50  ;;  %v1437_v24 = vmul.f32 %v5519_v40, %v5558_v48  ;;  %v1505_v12 = vmul.f32 %v5520_v21, %v5555_v0  ;;  %v5596_v35 = vld [vmem:[#allocation27_spill] sm:$0xff]  ;;  %v5598_v21 = vld [vmem:[#allocation154_spill] sm:$0xff] }
 0x1ba   :  { %v1411_v42 = vadd.f32 %v1403_v23, %v1394_v60  ;;  %v1283_v44 = vmax.f32 %v1198_v3, %v1275_v53  ;;  %v1479_v4 = vadd.f32 %v1471_v54, %v1462_v49  ;;  %v1547_v16 = vmul.f32 %v5521_v6, %v5549_v52  ;;  %v5597_v60 = vld [vmem:[#allocation129_spill] sm:$0xff] }
 0x1bb   :  { %v1556_v59 = vmul.f32 %v5595_v37, %v5551_v1  ;;  %v1360_v43 = vadd.f32 %v1352_v25, %v1343_v57  ;;  %v1522_v11 = vmul.f32 %v5596_v35, %v5558_v48  ;;  %v1573_v23 = vmul.f32 %v5597_v60, %v5553_v17  ;;  %v5599_v53 = vld [vmem:[#allocation89_spill] sm:$0xff]  ;;  %v5600_v37 = vld [vmem:[#allocation90_spill] sm:$0xff]  ;;  %v5602_v60 = vld [vmem:[#allocation28_spill] sm:$0xff] }
 0x1bc   :  { %v1428_v41 = vadd.f32 %v1420_v58, %v1411_v42  ;;  %v1496_v50 = vadd.f32 %v1488_v19, %v1479_v4  ;;  %v1590_v3 = vmul.f32 %v5598_v21, %v5555_v0  ;;  %v1632_v49 = vmul.f32 %v5599_v53, %v5549_v52  ;;  %v5601_v58 = vld [vmem:[#allocation130_spill] sm:$0xff]  ;;  %v5603_v4 = vld [vmem:[#allocation155_spill] sm:$0xff]  ;;  %v5604_v53 = vld [vmem:[#allocation92_spill] sm:$0xff] }
 0x1bd   :  { %v1564_v40 = vadd.f32 %v1556_v59, %v1547_v16  ;;  %v1368_v54 = vmax.f32 %v1283_v44, %v1360_v43  ;;  %v1641_v25 = vmul.f32 %v5600_v37, %v5551_v1  ;;  %v1658_v57 = vmul.f32 %v5601_v58, %v5553_v17 }
 0x1be   :  { %v1445_v6 = vadd.f32 %v1437_v24, %v1428_v41  ;;  %v1513_v42 = vadd.f32 %v1505_v12, %v1496_v50  ;;  %v1607_v19 = vmul.f32 %v5602_v60, %v5558_v48  ;;  %v1675_v16 = vmul.f32 %v5603_v4, %v5555_v0  ;;  %v3981_v24 = vpop.permute.xlu1 %438 }
 0x1bf   :  { %v1581_v35 = vadd.f32 %v1573_v23, %v1564_v40  ;;  %v1649_v21 = vadd.f32 %v1641_v25, %v1632_v49  ;;  %v1717_v44 = vmul.f32 %v5604_v53, %v5549_v52  ;;  %v1726_v41 = vmul.f32 %v5446_v56, %v5551_v1  ;;  %5605 = vst [vmem:[#allocation68_spill] sm:$0xff] %v3981_v24  ;;  %v5606_v40 = vld [vmem:[#allocation29_spill] sm:$0xff]  ;;  %v5607_v23 = vld [vmem:[#allocation131_spill] sm:$0xff]  ;;  %v5608_v24 = vld [vmem:[#allocation30_spill] sm:$0xff] }
 0x1c0   :  { %v1453_v59 = vmax.f32 %v1368_v54, %v1445_v6  ;;  %v1530_v43 = vadd.f32 %v1522_v11, %v1513_v42  ;;  %v1692_v12 = vmul.f32 %v5606_v40, %v5558_v48  ;;  %v1743_v50 = vmul.f32 %v5607_v23, %v5553_v17 }
 0x1c1   :  { %v1598_v58 = vadd.f32 %v1590_v3, %v1581_v35  ;;  %v1666_v60 = vadd.f32 %v1658_v57, %v1649_v21  ;;  %v1734_v4 = vadd.f32 %v1726_v41, %v1717_v44  ;;  %v1760_v6 = vmul.f32 %v5532_v38, %v5555_v0  ;;  %v5609_v57 = vld [vmem:[#allocation157_spill] sm:$0xff] }
 0x1c2   :  { %v1802_v49 = vmul.f32 %v5533_v36, %v5549_v52  ;;  %v1538_v54 = vmax.f32 %v1453_v59, %v1530_v43  ;;  %v1811_v11 = vmul.f32 %v5535_v8, %v5551_v1  ;;  %v1828_v35 = vmul.f32 %v5452_v7, %v5553_v17  ;;  %v5610_v36 = vld [vmem:[#allocation99_spill] sm:$0xff] }
 0x1c3   :  { %v1615_v25 = vadd.f32 %v1607_v19, %v1598_v58  ;;  %v1683_v3 = vadd.f32 %v1675_v16, %v1666_v60  ;;  %v1751_v42 = vadd.f32 %v1743_v50, %v1734_v4  ;;  %v1777_v21 = vmul.f32 %v5608_v24, %v5558_v48  ;;  %v5611_v58 = vld [vmem:[#allocation100_spill] sm:$0xff]  ;;  %v5612_v7 = vld [vmem:[#allocation31_spill] sm:$0xff] }
 0x1c4   :  { %v1845_v44 = vmul.f32 %v5609_v57, %v5555_v0  ;;  %v1819_v38 = vadd.f32 %v1811_v11, %v1802_v49  ;;  %v1887_v59 = vmul.f32 %v5610_v36, %v5549_v52  ;;  %v1896_v19 = vmul.f32 %v5611_v58, %v5551_v1  ;;  %v5613_v4 = vld [vmem:[#allocation135_spill] sm:$0xff]  ;;  %v5615_v58 = vld [vmem:[#allocation104_spill] sm:$0xff] }
 0x1c5   :  { %v1623_v41 = vmax.f32 %v1538_v54, %v1615_v25  ;;  %v1700_v43 = vadd.f32 %v1692_v12, %v1683_v3  ;;  %v1768_v8 = vadd.f32 %v1760_v6, %v1751_v42  ;;  %v1862_v60 = vmul.f32 %v5612_v7, %v5558_v48  ;;  %v5614_v49 = vld [vmem:[#allocation103_spill] sm:$0xff]  ;;  %v5616_v6 = vld [vmem:[#allocation136_spill] sm:$0xff] }
 0x1c6   :  { %v1913_v16 = vmul.f32 %v5613_v4, %v5553_v17  ;;  %v1836_v50 = vadd.f32 %v1828_v35, %v1819_v38  ;;  %v1904_v24 = vadd.f32 %v1896_v19, %v1887_v59  ;;  %v1930_v54 = vmul.f32 %v5537_v55, %v5555_v0  ;;  %v5617_v4 = vld [vmem:[#allocation32_spill] sm:$0xff]  ;;  %v5618_v35 = vld [vmem:[#allocation165_spill] sm:$0xff] }
 0x1c7   :  { %v1972_v25 = vmul.f32 %v5614_v49, %v5549_v52  ;;  %v1708_v11 = vmax.f32 %v1623_v41, %v1700_v43  ;;  %v1785_v36 = vadd.f32 %v1777_v21, %v1768_v8  ;;  %v1981_v12 = vmul.f32 %v5615_v58, %v5551_v1  ;;  %v5619_v49 = vld [vmem:[#allocation106_spill] sm:$0xff]  ;;  %v5620_v8 = vld [vmem:[#allocation107_spill] sm:$0xff]  ;;  %v4023_v43 = vpop.permute.xlu1 %467 }
 0x1c8   :  { %v1998_v3 = vmul.f32 %v5616_v6, %v5553_v17  ;;  %v1853_v42 = vadd.f32 %v1845_v44, %v1836_v50  ;;  %v1921_v7 = vadd.f32 %v1913_v16, %v1904_v24  ;;  %v1947_v38 = vmul.f32 %v5617_v4, %v5558_v48  ;;  %v5621_v24 = vld [vmem:[#allocation33_spill] sm:$0xff] }
 0x1c9   :  { %v2015_v59 = vmul.f32 %v5618_v35, %v5555_v0  ;;  %v1793_v19 = vmax.f32 %v1708_v11, %v1785_v36  ;;  %v1989_v55 = vadd.f32 %v1981_v12, %v1972_v25  ;;  %v2057_v41 = vmul.f32 %v5619_v49, %v5549_v52  ;;  %v5622_v16 = vld [vmem:[#allocation137_spill] sm:$0xff]  ;;  %v5623_v36 = vld [vmem:[#allocation166_spill] sm:$0xff]  ;;  %v5624_v11 = vld [vmem:[#allocation44_spill] sm:$0xff] }
 0x1ca   :  { %v2066_v21 = vmul.f32 %v5620_v8, %v5551_v1  ;;  %v1870_v58 = vadd.f32 %v1862_v60, %v1853_v42  ;;  %v1938_v6 = vadd.f32 %v1930_v54, %v1921_v7  ;;  %v2032_v44 = vmul.f32 %v5621_v24, %v5558_v48  ;;  %v5625_v52 = vld [vmem:[#allocation162_spill] sm:$0xff]  ;;  %v5626_v8 = vld [vmem:[#allocation63_spill] sm:$0xff] }
 0x1cb   :  { %v2083_v50 = vmul.f32 %v5622_v16, %v5553_v17  ;;  %v2006_v4 = vadd.f32 %v1998_v3, %v1989_v55  ;;  %v2100_v25 = vmul.f32 %v5623_v36, %v5555_v0  ;;  %v353_v12 = vmul.f32 %v5625_v52, %v5624_v11  ;;  %v5627_v17 = vld [vmem:[#allocation34_spill] sm:$0xff] }
 0x1cc   :  { %v2074_v35 = vadd.f32 %v2066_v21, %v2057_v41  ;;  %v1878_v49 = vmax.f32 %v1793_v19, %v1870_v58  ;;  %v1955_v1 = vadd.f32 %v1947_v38, %v1938_v6  ;;  %v394_v60 = vmul.f32 %v5626_v8, %v5550_v28  ;;  %v5628_v3 = vld [vmem:[#allocation10_spill] sm:$0xff]  ;;  %v5630_v6 = vld [vmem:[#allocation47_spill] sm:$0xff] }
 0x1cd   :  { %v443_v7 = vmul.f32 %v3897_v10, %v5552_v22  ;;  %v2023_v54 = vadd.f32 %v2015_v59, %v2006_v4  ;;  %v2117_v55 = vmul.f32 %v5627_v17, %v5558_v48  ;;  %v492_v41 = vmul.f32 %v4023_v43, %v5628_v3  ;;  %v5629_v11 = vld [vmem:[#allocation46_spill] sm:$0xff]  ;;  %v5632_v22 = vld [vmem:[#allocation15_spill] sm:$0xff]  ;;  %v5634_v3 = vld [vmem:[#allocation140_spill] sm:$0xff] }
 0x1ce   :  { %v2091_v42 = vadd.f32 %v2083_v50, %v2074_v35  ;;  %v1963_v0 = vmax.f32 %v1878_v49, %v1955_v1  ;;  %v402_v21 = vadd.f32 %v394_v60, %v353_v12  ;;  %v526_v58 = vmul.f32 %v5629_v11, %v5625_v52  ;;  %v5631_v36 = vld [vmem:[#allocation70_spill] sm:$0xff]  ;;  %v5635_v12 = vld [vmem:[#allocation48_spill] sm:$0xff] }
 0x1cf   :  { %v535_v38 = vmul.f32 %v5630_v6, %v5626_v8  ;;  %v2040_v19 = vadd.f32 %v2032_v44, %v2023_v54  ;;  %v509_v4 = vmul.f32 %v5632_v22, %v5631_v36  ;;  %v5633_v35 = vld [vmem:[#allocation110_spill] sm:$0xff]  ;;  %v569_v49 = vmul.f32 %v5634_v3, %v4023_v43  ;;  %v5636_v6 = vld [vmem:[#allocation49_spill] sm:$0xff] }
 0x1d0   :  { %v2108_v28 = vadd.f32 %v2100_v25, %v2091_v42  ;;  %v552_v59 = vmul.f32 %v5633_v35, %v3897_v10  ;;  %v451_v48 = vadd.f32 %v443_v7, %v402_v21  ;;  %v611_v1 = vmul.f32 %v5635_v12, %v5625_v52  ;;  %v5637_v25 = vld [vmem:[#allocation111_spill] sm:$0xff]  ;;  %v2152_v42 = vpop.permute.xlu2 %2151  ;;  %v5638_v7 = vld [vmem:[#allocation16_spill] sm:$0xff] }
 0x1d1   :  { %v543_v50 = vadd.f32 %v535_v38, %v526_v58  ;;  %v2048_v60 = vmax.f32 %v1963_v0, %v2040_v19  ;;  %v620_v44 = vmul.f32 %v5636_v6, %v5626_v8  ;;  %v637_v54 = vmul.f32 %v5637_v25, %v3897_v10  ;;  %v5639_v58 = vld [vmem:[#allocation141_spill] sm:$0xff]  ;;  %v5640_v0 = vld [vmem:[#allocation50_spill] sm:$0xff] }
 0x1d2   :  { %v2125_v11 = vadd.f32 %v2117_v55, %v2108_v28  ;;  %v500_v22 = vadd.f32 %v492_v41, %v451_v48  ;;  %v586_v21 = vmul.f32 %v5638_v7, %v5631_v36  ;;  %v654_v38 = vmul.f32 %v5639_v58, %v4023_v43 }
 0x1d3   :  { %v560_v17 = vadd.f32 %v552_v59, %v543_v50  ;;  %v628_v35 = vadd.f32 %v620_v44, %v611_v1  ;;  %v696_v28 = vmul.f32 %v5640_v0, %v5625_v52  ;;  %v705_v55 = vmul.f32 %v5568_v62, %v5626_v8  ;;  %v5641_v59 = vld [vmem:[#allocation112_spill] sm:$0xff] }
 0x1d4   :  { %v2133_v3 = vmax.f32 %v2048_v60, %v2125_v11  ;;  %v517_v19 = vadd.f32 %v509_v4, %v500_v22  ;;  %v671_v41 = vmul.f32 %v5567_v5, %v5631_v36  ;;  %v722_v48 = vmul.f32 %v5641_v59, %v3897_v10 }
 0x1d5   :  { %v577_v6 = vadd.f32 %v569_v49, %v560_v17  ;;  %v645_v25 = vadd.f32 %v637_v54, %v628_v35  ;;  %v713_v7 = vadd.f32 %v705_v55, %v696_v28  ;;  %v739_v11 = vmul.f32 %v5366_v47, %v4023_v43 }
 0x1d6   :  { %v2173_v50 = vadd.f32 %v2152_v42, %v2133_v3  ;;  %v781_v60 = vmul.f32 %v5491_v51, %v5625_v52  ;;  %v790_v22 = vmul.f32 %v5492_v14, %v5626_v8  ;;  %v807_v17 = vmul.f32 %v5571_v30, %v3897_v10  ;;  %v5642_v3 = vld [vmem:[#allocation18_spill] sm:$0xff] }
 0x1d7   :  { %v594_v1 = vadd.f32 %v586_v21, %v577_v6  ;;  %v662_v49 = vadd.f32 %v654_v38, %v645_v25  ;;  %v730_v44 = vadd.f32 %v722_v48, %v713_v7  ;;  %v756_v35 = vmul.f32 %v5642_v3, %v5631_v36  ;;  %v5643_v21 = vld [vmem:[#allocation54_spill] sm:$0xff]  ;;  %v5645_v48 = vld [vmem:[#allocation19_spill] sm:$0xff] }
 0x1d8   :  { %v2181_v4 = vmax.f32 %v2173_v50, 0.0  ;;  %v798_v42 = vadd.f32 %v790_v22, %v781_v60  ;;  %v824_v6 = vmul.f32 %v5367_v29, %v4023_v43  ;;  %v866_v28 = vmul.f32 %v5643_v21, %v5625_v52  ;;  %v5644_v25 = vld [vmem:[#allocation114_spill] sm:$0xff]  ;;  %v5646_v50 = vld [vmem:[#allocation144_spill] sm:$0xff] }
 0x1d9   :  { %v602_v54 = vmax.f32 %v517_v19, %v594_v1  ;;  %v679_v55 = vadd.f32 %v671_v41, %v662_v49  ;;  %v747_v14 = vadd.f32 %v739_v11, %v730_v44  ;;  %v875_v30 = vmul.f32 %v5496_v31, %v5626_v8  ;;  %v5647_v60 = vld [vmem:[#allocation56_spill] sm:$0xff] }
 0x1da   :  { %2189 = vst [vmem:[#allocation5 + $0x18] sm:$0xff] %v2181_v4  ;;  %v892_v7 = vmul.f32 %v5644_v25, %v3897_v10  ;;  %v815_v38 = vadd.f32 %v807_v17, %v798_v42  ;;  %v841_v19 = vmul.f32 %v5645_v48, %v5631_v36  ;;  %v909_v1 = vmul.f32 %v5646_v50, %v4023_v43  ;;  %v5648_v44 = vld [vmem:[#allocation20_spill] sm:$0xff]  ;;  %v5649_v17 = vld [vmem:[#allocation115_spill] sm:$0xff]  ;;  %v5650_v48 = vld [vmem:[#allocation145_spill] sm:$0xff] }
 0x1db   :  { %v951_v22 = vmul.f32 %v5647_v60, %v5625_v52  ;;  %v687_v21 = vmax.f32 %v602_v54, %v679_v55  ;;  %v764_v4 = vadd.f32 %v756_v35, %v747_v14  ;;  %v883_v41 = vadd.f32 %v875_v30, %v866_v28  ;;  %v5651_v35 = vld [vmem:[#allocation58_spill] sm:$0xff]  ;;  %v5653_v55 = vld [vmem:[#allocation116_spill] sm:$0xff] }
 0x1dc   :  { %v960_v11 = vmul.f32 %v5576_v32, %v5626_v8  ;;  %v832_v49 = vadd.f32 %v824_v6, %v815_v38  ;;  %v926_v25 = vmul.f32 %v5648_v44, %v5631_v36  ;;  %v977_v42 = vmul.f32 %v5649_v17, %v3897_v10  ;;  %v5652_v6 = vld [vmem:[#allocation61_spill] sm:$0xff] }
 0x1dd   :  { %v994_v31 = vmul.f32 %v5650_v48, %v4023_v43  ;;  %v772_v50 = vmax.f32 %v687_v21, %v764_v4  ;;  %v900_v29 = vadd.f32 %v892_v7, %v883_v41  ;;  %v1011_v14 = vmul.f32 %v5581_v9, %v5631_v36  ;;  %v5654_v7 = vld [vmem:[#allocation62_spill] sm:$0xff] }
 0x1de   :  { %v968_v3 = vadd.f32 %v960_v11, %v951_v22  ;;  %v849_v30 = vadd.f32 %v841_v19, %v832_v49  ;;  %v1036_v54 = vmul.f32 %v5651_v35, %v5625_v52  ;;  %v1045_v28 = vmul.f32 %v5652_v6, %v5626_v8  ;;  %v5655_v19 = vld [vmem:[#allocation71_spill] sm:$0xff]  ;;  %v5656_v49 = vld [vmem:[#allocation117_spill] sm:$0xff] }
 0x1df   :  { %v1062_v38 = vmul.f32 %v5653_v55, %v3897_v10  ;;  %v917_v17 = vadd.f32 %v909_v1, %v900_v29  ;;  %v1079_v21 = vmul.f32 %v5370_v61, %v4023_v43  ;;  %v1121_v22 = vmul.f32 %v5654_v7, %v5625_v52  ;;  %v5657_v55 = vld [vmem:[#allocation22_spill] sm:$0xff] }
 0x1e0   :  { %v985_v44 = vadd.f32 %v977_v42, %v968_v3  ;;  %v857_v4 = vmax.f32 %v772_v50, %v849_v30  ;;  %v1053_v41 = vadd.f32 %v1045_v28, %v1036_v54  ;;  %v1130_v11 = vmul.f32 %v5655_v19, %v5626_v8 }
 0x1e1   :  { %v1147_v9 = vmul.f32 %v5656_v49, %v3897_v10  ;;  %v934_v6 = vadd.f32 %v926_v25, %v917_v17  ;;  %v1096_v29 = vmul.f32 %v5657_v55, %v5631_v36  ;;  %v1164_v3 = vmul.f32 %v5384_v2, %v4023_v43 }
 0x1e2   :  { %v1002_v35 = vadd.f32 %v994_v31, %v985_v44  ;;  %v1070_v1 = vadd.f32 %v1062_v38, %v1053_v41  ;;  %v1138_v42 = vadd.f32 %v1130_v11, %v1121_v22  ;;  %v1206_v50 = vmul.f32 %v5586_v27, %v5625_v52  ;;  %v5658_v11 = vld [vmem:[#allocation78_spill] sm:$0xff] }
 0x1e3   :  { %v1215_v30 = vmul.f32 %v5587_v20, %v5626_v8  ;;  %v942_v54 = vmax.f32 %v857_v4, %v934_v6  ;;  %v1181_v25 = vmul.f32 %v5588_v15, %v5631_v36  ;;  %v1232_v31 = vmul.f32 %v5589_v34, %v3897_v10 }
 0x1e4   :  { %v1019_v28 = vadd.f32 %v1011_v14, %v1002_v35  ;;  %v1087_v44 = vadd.f32 %v1079_v21, %v1070_v1  ;;  %v1155_v17 = vadd.f32 %v1147_v9, %v1138_v42  ;;  %v1249_v38 = vmul.f32 %v5385_v13, %v4023_v43  ;;  %v5659_v14 = vld [vmem:[#allocation123_spill] sm:$0xff] }
 0x1e5   :  { %v1223_v49 = vadd.f32 %v1215_v30, %v1206_v50  ;;  %v1291_v41 = vmul.f32 %v5514_v26, %v5625_v52  ;;  %v1300_v6 = vmul.f32 %v5658_v11, %v5626_v8  ;;  %v1317_v35 = vmul.f32 %v5659_v14, %v3897_v10  ;;  %v5660_v1 = vld [vmem:[#allocation151_spill] sm:$0xff]  ;;  %v5661_v50 = vld [vmem:[#allocation80_spill] sm:$0xff] }
 0x1e6   :  { %v1027_v22 = vmax.f32 %v942_v54, %v1019_v28  ;;  %v1104_v4 = vadd.f32 %v1096_v29, %v1087_v44  ;;  %v1172_v15 = vadd.f32 %v1164_v3, %v1155_v17  ;;  %v1266_v9 = vmul.f32 %v5516_v46, %v5631_v36  ;;  %v5662_v54 = vld [vmem:[#allocation81_spill] sm:$0xff] }
 0x1e7   :  { %v1240_v20 = vadd.f32 %v1232_v31, %v1223_v49  ;;  %v1308_v21 = vadd.f32 %v1300_v6, %v1291_v41  ;;  %v1334_v42 = vmul.f32 %v5660_v1, %v4023_v43  ;;  %v1376_v30 = vmul.f32 %v5661_v50, %v5625_v52 }
 0x1e8   :  { %v1385_v28 = vmul.f32 %v5662_v54, %v5626_v8  ;;  %v1112_v11 = vmax.f32 %v1027_v22, %v1104_v4  ;;  %v1189_v26 = vadd.f32 %v1181_v25, %v1172_v15  ;;  %v1402_v29 = vmul.f32 %v5592_v63, %v3897_v10 }
 0x1e9   :  { %v1257_v13 = vadd.f32 %v1249_v38, %v1240_v20  ;;  %v1325_v49 = vadd.f32 %v1317_v35, %v1308_v21  ;;  %v1351_v3 = vmul.f32 %v5518_v18, %v5631_v36  ;;  %v1419_v44 = vmul.f32 %v5593_v45, %v4023_v43  ;;  %v5663_v38 = vld [vmem:[#allocation26_spill] sm:$0xff]  ;;  %v5664_v35 = vld [vmem:[#allocation128_spill] sm:$0xff] }
 0x1ea   :  { %v1393_v31 = vadd.f32 %v1385_v28, %v1376_v30  ;;  %v1197_v17 = vmax.f32 %v1112_v11, %v1189_v26  ;;  %v1461_v6 = vmul.f32 %v5594_v33, %v5625_v52  ;;  %v1470_v15 = vmul.f32 %v5431_v39, %v5626_v8  ;;  %v5665_v28 = vld [vmem:[#allocation153_spill] sm:$0xff]  ;;  %v5667_v39 = vld [vmem:[#allocation87_spill] sm:$0xff] }
 0x1eb   :  { %v1274_v41 = vadd.f32 %v1266_v9, %v1257_v13  ;;  %v1342_v20 = vadd.f32 %v1334_v42, %v1325_v49  ;;  %v1436_v22 = vmul.f32 %v5663_v38, %v5631_v36  ;;  %v1487_v4 = vmul.f32 %v5664_v35, %v3897_v10  ;;  %v5666_v13 = vld [vmem:[#allocation86_spill] sm:$0xff]  ;;  %v5669_v38 = vld [vmem:[#allocation27_spill] sm:$0xff] }
 0x1ec   :  { %v1410_v25 = vadd.f32 %v1402_v29, %v1393_v31  ;;  %v1478_v30 = vadd.f32 %v1470_v15, %v1461_v6  ;;  %v1504_v26 = vmul.f32 %v5665_v28, %v4023_v43  ;;  %v1546_v11 = vmul.f32 %v5666_v13, %v5625_v52  ;;  %v5668_v29 = vld [vmem:[#allocation129_spill] sm:$0xff] }
 0x1ed   :  { %v1282_v21 = vmax.f32 %v1197_v17, %v1274_v41  ;;  %v1359_v9 = vadd.f32 %v1351_v3, %v1342_v20  ;;  %v1555_v42 = vmul.f32 %v5667_v39, %v5626_v8  ;;  %v1572_v49 = vmul.f32 %v5668_v29, %v3897_v10  ;;  %v5670_v17 = vld [vmem:[#allocation154_spill] sm:$0xff]  ;;  %v5671_v6 = vld [vmem:[#allocation89_spill] sm:$0xff] }
 0x1ee   :  { %v1427_v33 = vadd.f32 %v1419_v44, %v1410_v25  ;;  %v1495_v31 = vadd.f32 %v1487_v4, %v1478_v30  ;;  %v1521_v35 = vmul.f32 %v5669_v38, %v5631_v36  ;;  %v1589_v41 = vmul.f32 %v5670_v17, %v4023_v43  ;;  %v5672_v25 = vld [vmem:[#allocation28_spill] sm:$0xff]  ;;  %v5673_v4 = vld [vmem:[#allocation130_spill] sm:$0xff]  ;;  %v5674_v38 = vld [vmem:[#allocation155_spill] sm:$0xff] }
 0x1ef   :  { %v1631_v15 = vmul.f32 %v5671_v6, %v5625_v52  ;;  %v1367_v28 = vmax.f32 %v1282_v21, %v1359_v9  ;;  %v1563_v3 = vadd.f32 %v1555_v42, %v1546_v11  ;;  %v1640_v44 = vmul.f32 %v5600_v37, %v5626_v8 }
 0x1f0   :  { %v1444_v13 = vadd.f32 %v1436_v22, %v1427_v33  ;;  %v1512_v20 = vadd.f32 %v1504_v26, %v1495_v31  ;;  %v1606_v29 = vmul.f32 %v5672_v25, %v5631_v36  ;;  %v1657_v30 = vmul.f32 %v5673_v4, %v3897_v10  ;;  %v5675_v31 = vld [vmem:[#allocation156_spill] sm:$0xff] }
 0x1f1   :  { %v1674_v39 = vmul.f32 %v5674_v38, %v4023_v43  ;;  %v1580_v45 = vadd.f32 %v1572_v49, %v1563_v3  ;;  %v1648_v18 = vadd.f32 %v1640_v44, %v1631_v15  ;;  %v1691_v33 = vmul.f32 %v5606_v40, %v5631_v36  ;;  %v4193_v15 = vpop.permute.xlu1 %475  ;;  %v5678_v44 = vld [vmem:[#allocation96_spill] sm:$0xff]  ;;  %v5679_v40 = vld [vmem:[#allocation13_spill] sm:$0xff] }
 0x1f2   :  { %v1452_v17 = vmax.f32 %v1367_v28, %v1444_v13  ;;  %v1529_v22 = vadd.f32 %v1521_v35, %v1512_v20  ;;  %v1716_v21 = vmul.f32 %v5604_v53, %v5625_v52  ;;  %v1725_v26 = vmul.f32 %v5446_v56, %v5626_v8  ;;  %v5676_v13 = vld [vmem:[#allocation95_spill] sm:$0xff]  ;;  %5677 = vst [vmem:[#allocation69_spill] sm:$0xff] %v4193_v15 }
 0x1f3   :  { %v1742_v11 = vmul.f32 %v5607_v23, %v3897_v10  ;;  %v1597_v9 = vadd.f32 %v1589_v41, %v1580_v45  ;;  %v1665_v42 = vadd.f32 %v1657_v30, %v1648_v18  ;;  %v1759_v28 = vmul.f32 %v5675_v31, %v4023_v43  ;;  %v5680_v18 = vld [vmem:[#allocation30_spill] sm:$0xff]  ;;  %v5681_v15 = vld [vmem:[#allocation99_spill] sm:$0xff] }
 0x1f4   :  { %v1801_v49 = vmul.f32 %v5676_v13, %v5625_v52  ;;  %v1537_v35 = vmax.f32 %v1452_v17, %v1529_v22  ;;  %v1733_v3 = vadd.f32 %v1725_v26, %v1716_v21  ;;  %v1810_v20 = vmul.f32 %v5678_v44, %v5626_v8  ;;  %v5682_v22 = vld [vmem:[#allocation100_spill] sm:$0xff] }
 0x1f5   :  { %v1827_v56 = vmul.f32 %v5679_v40, %v3897_v10  ;;  %v1614_v53 = vadd.f32 %v1606_v29, %v1597_v9  ;;  %v1682_v23 = vadd.f32 %v1674_v39, %v1665_v42  ;;  %v1776_v45 = vmul.f32 %v5680_v18, %v5631_v36  ;;  %v5683_v40 = vld [vmem:[#allocation31_spill] sm:$0xff] }
 0x1f6   :  { %v1844_v41 = vmul.f32 %v5609_v57, %v4023_v43  ;;  %v1750_v30 = vadd.f32 %v1742_v11, %v1733_v3  ;;  %v1818_v13 = vadd.f32 %v1810_v20, %v1801_v49  ;;  %v1886_v17 = vmul.f32 %v5681_v15, %v5625_v52  ;;  %v5684_v39 = vld [vmem:[#allocation135_spill] sm:$0xff]  ;;  %v5685_v11 = vld [vmem:[#allocation158_spill] sm:$0xff] }
 0x1f7   :  { %v1895_v21 = vmul.f32 %v5682_v22, %v5626_v8  ;;  %v1622_v26 = vmax.f32 %v1537_v35, %v1614_v53  ;;  %v1699_v44 = vadd.f32 %v1691_v33, %v1682_v23  ;;  %v1861_v29 = vmul.f32 %v5683_v40, %v5631_v36  ;;  %v5686_v20 = vld [vmem:[#allocation103_spill] sm:$0xff]  ;;  %v5687_v22 = vld [vmem:[#allocation104_spill] sm:$0xff] }
 0x1f8   :  { %v1912_v9 = vmul.f32 %v5684_v39, %v3897_v10  ;;  %v1767_v42 = vadd.f32 %v1759_v28, %v1750_v30  ;;  %v1835_v18 = vadd.f32 %v1827_v56, %v1818_v13  ;;  %v1929_v49 = vmul.f32 %v5685_v11, %v4023_v43  ;;  %v5688_v23 = vld [vmem:[#allocation136_spill] sm:$0xff]  ;;  %v5690_v30 = vld [vmem:[#allocation165_spill] sm:$0xff] }
 0x1f9   :  { %v1903_v31 = vadd.f32 %v1895_v21, %v1886_v17  ;;  %v1707_v3 = vmax.f32 %v1622_v26, %v1699_v44  ;;  %v1971_v15 = vmul.f32 %v5686_v20, %v5625_v52  ;;  %v1980_v53 = vmul.f32 %v5687_v22, %v5626_v8  ;;  %v5689_v28 = vld [vmem:[#allocation32_spill] sm:$0xff]  ;;  %v5691_v44 = vld [vmem:[#allocation106_spill] sm:$0xff]  ;;  %v5692_v26 = vld [vmem:[#allocation107_spill] sm:$0xff] }
 0x1fa   :  { %v1997_v33 = vmul.f32 %v5688_v23, %v3897_v10  ;;  %v1784_v35 = vadd.f32 %v1776_v45, %v1767_v42  ;;  %v1852_v40 = vadd.f32 %v1844_v41, %v1835_v18  ;;  %v1946_v56 = vmul.f32 %v5689_v28, %v5631_v36  ;;  %v5693_v41 = vld [vmem:[#allocation166_spill] sm:$0xff]  ;;  %v4233_v42 = vpop.permute.xlu1 %487 }
 0x1fb   :  { %v1920_v57 = vadd.f32 %v1912_v9, %v1903_v31  ;;  %v1988_v13 = vadd.f32 %v1980_v53, %v1971_v15  ;;  %v2014_v17 = vmul.f32 %v5690_v30, %v4023_v43  ;;  %v2056_v21 = vmul.f32 %v5691_v44, %v5625_v52  ;;  %5694 = vst [vmem:[#allocation72_spill] sm:$0xff] %v4233_v42  ;;  %v5695_v44 = vld [vmem:[#allocation44_spill] sm:$0xff]  ;;  %v5703_v42 = vld [vmem:[#allocation161_spill] sm:$0xff] }
 0x1fc   :  { %v2065_v20 = vmul.f32 %v5692_v26, %v5626_v8  ;;  %v1792_v22 = vmax.f32 %v1707_v3, %v1784_v35  ;;  %v1869_v11 = vadd.f32 %v1861_v29, %v1852_v40  ;;  %v2082_v18 = vmul.f32 %v5622_v16, %v3897_v10  ;;  %v5696_v8 = vld [vmem:[#allocation97_spill] sm:$0xff] }
 0x1fd   :  { %v1937_v39 = vadd.f32 %v1929_v49, %v1920_v57  ;;  %v2005_v31 = vadd.f32 %v1997_v33, %v1988_v13  ;;  %v2031_v45 = vmul.f32 %v5621_v24, %v5631_v36  ;;  %v2099_v9 = vmul.f32 %v5693_v41, %v4023_v43  ;;  %v5697_v40 = vld [vmem:[#allocation45_spill] sm:$0xff]  ;;  %v5698_v57 = vld [vmem:[#allocation146_spill] sm:$0xff] }
 0x1fe   :  { %v2073_v15 = vadd.f32 %v2065_v20, %v2056_v21  ;;  %v1877_v52 = vmax.f32 %v1792_v22, %v1869_v11  ;;  %v356_v3 = vmul.f32 %v5696_v8, %v5695_v44  ;;  %v397_v29 = vmul.f32 %v5698_v57, %v5697_v40  ;;  %v5699_v33 = vld [vmem:[#allocation34_spill] sm:$0xff]  ;;  %v5700_v13 = vld [vmem:[#allocation109_spill] sm:$0xff]  ;;  %v5705_v40 = vld [vmem:[#allocation47_spill] sm:$0xff] }
 0x1ff   :  { %v1954_v53 = vadd.f32 %v1946_v56, %v1937_v39  ;;  %v2022_v49 = vadd.f32 %v2014_v17, %v2005_v31  ;;  %v2116_v35 = vmul.f32 %v5699_v33, %v5631_v36  ;;  %v5701_v20 = vld [vmem:[#allocation169_spill] sm:$0xff]  ;;  %v5702_v41 = vld [vmem:[#allocation10_spill] sm:$0xff]  ;;  %v538_v17 = vmul.f32 %v5705_v40, %v5698_v57  ;;  %v5708_v33 = vld [vmem:[#allocation15_spill] sm:$0xff] }
 0x200   :  { %v2090_v10 = vadd.f32 %v2082_v18, %v2073_v15  ;;  %v446_v21 = vmul.f32 %v5701_v20, %v5700_v13  ;;  %v405_v43 = vadd.f32 %v397_v29, %v356_v3  ;;  %v495_v22 = vmul.f32 %v5703_v42, %v5702_v41  ;;  %v5704_v39 = vld [vmem:[#allocation46_spill] sm:$0xff]  ;;  %v5711_v40 = vld [vmem:[#allocation16_spill] sm:$0xff] }
 0x201   :  { %v1962_v24 = vmax.f32 %v1877_v52, %v1954_v53  ;;  %v529_v11 = vmul.f32 %v5704_v39, %v5696_v8  ;;  %v2039_v56 = vadd.f32 %v2031_v45, %v2022_v49  ;;  %v5706_v18 = vld [vmem:[#allocation110_spill] sm:$0xff]  ;;  %v5709_v52 = vld [vmem:[#allocation140_spill] sm:$0xff]  ;;  %v614_v3 = vmul.f32 %v5635_v12, %v5696_v8 }
 0x202   :  { %v2107_v44 = vadd.f32 %v2099_v9, %v2090_v10  ;;  %v555_v31 = vmul.f32 %v5706_v18, %v5701_v20  ;;  %v454_v36 = vadd.f32 %v446_v21, %v405_v43  ;;  %v5707_v15 = vld [vmem:[#allocation14_spill] sm:$0xff]  ;;  %v572_v53 = vmul.f32 %v5709_v52, %v5703_v42  ;;  %v5710_v9 = vld [vmem:[#allocation49_spill] sm:$0xff]  ;;  %v5712_v21 = vld [vmem:[#allocation111_spill] sm:$0xff] }
 0x203   :  { %v512_v13 = vmul.f32 %v5708_v33, %v5707_v15  ;;  %v2047_v29 = vmax.f32 %v1962_v24, %v2039_v56  ;;  %v546_v45 = vadd.f32 %v538_v17, %v529_v11  ;;  %v623_v49 = vmul.f32 %v5710_v9, %v5698_v57 }
 0x204   :  { %v2124_v39 = vadd.f32 %v2116_v35, %v2107_v44  ;;  %v503_v10 = vadd.f32 %v495_v22, %v454_v36  ;;  %v589_v18 = vmul.f32 %v5711_v40, %v5707_v15  ;;  %v640_v43 = vmul.f32 %v5712_v21, %v5701_v20  ;;  %v2148_v44 = vpop.permute.xlu1 %2147 }
 0x205   :  { %v657_v33 = vmul.f32 %v5639_v58, %v5703_v42  ;;  %v563_v41 = vadd.f32 %v555_v31, %v546_v45  ;;  %v631_v16 = vadd.f32 %v623_v49, %v614_v3  ;;  %v674_v24 = vmul.f32 %v5567_v5, %v5707_v15  ;;  %v5714_v45 = vld [vmem:[#allocation113_spill] sm:$0xff] }
 0x206   :  { %v2132_v52 = vmax.f32 %v2047_v29, %v2124_v39  ;;  %v520_v35 = vadd.f32 %v512_v13, %v503_v10  ;;  %v699_v22 = vmul.f32 %v5640_v0, %v5696_v8  ;;  %v708_v11 = vmul.f32 %v5568_v62, %v5698_v57  ;;  %v5713_v13 = vld [vmem:[#allocation53_spill] sm:$0xff] }
 0x207   :  { %v725_v56 = vmul.f32 %v5641_v59, %v5701_v20  ;;  %v580_v36 = vadd.f32 %v572_v53, %v563_v41  ;;  %v648_v58 = vadd.f32 %v640_v43, %v631_v16  ;;  %v742_v39 = vmul.f32 %v5366_v47, %v5703_v42  ;;  %v5716_v43 = vld [vmem:[#allocation143_spill] sm:$0xff] }
 0x208   :  { %v2172_v17 = vadd.f32 %v2148_v44, %v2132_v52  ;;  %v716_v31 = vadd.f32 %v708_v11, %v699_v22  ;;  %v784_v3 = vmul.f32 %v5491_v51, %v5696_v8  ;;  %v793_v29 = vmul.f32 %v5713_v13, %v5698_v57  ;;  %v5715_v52 = vld [vmem:[#allocation18_spill] sm:$0xff]  ;;  %v5718_v47 = vld [vmem:[#allocation55_spill] sm:$0xff] }
 0x209   :  { %v810_v49 = vmul.f32 %v5714_v45, %v5701_v20  ;;  %v597_v62 = vadd.f32 %v589_v18, %v580_v36  ;;  %v665_v0 = vadd.f32 %v657_v33, %v648_v58  ;;  %v759_v41 = vmul.f32 %v5715_v52, %v5707_v15  ;;  %v5717_v22 = vld [vmem:[#allocation54_spill] sm:$0xff] }
 0x20a   :  { %v2180_v10 = vmax.f32 %v2172_v17, 0.0  ;;  %v733_v16 = vadd.f32 %v725_v56, %v716_v31  ;;  %v801_v53 = vadd.f32 %v793_v29, %v784_v3  ;;  %v827_v44 = vmul.f32 %v5716_v43, %v5703_v42  ;;  %v5719_v18 = vld [vmem:[#allocation114_spill] sm:$0xff]  ;;  %v5720_v56 = vld [vmem:[#allocation19_spill] sm:$0xff]  ;;  %v5721_v31 = vld [vmem:[#allocation144_spill] sm:$0xff] }
 0x20b   :  { %v869_v11 = vmul.f32 %v5717_v22, %v5696_v8  ;;  %v605_v51 = vmax.f32 %v520_v35, %v597_v62  ;;  %v682_v13 = vadd.f32 %v674_v24, %v665_v0  ;;  %v878_v45 = vmul.f32 %v5718_v47, %v5698_v57 }
 0x20c   :  { %2188 = vst [vmem:[#allocation5 + $0x10] sm:$0xff] %v2180_v10  ;;  %v895_v58 = vmul.f32 %v5719_v18, %v5701_v20  ;;  %v750_v33 = vadd.f32 %v742_v39, %v733_v16  ;;  %v818_v17 = vadd.f32 %v810_v49, %v801_v53  ;;  %v844_v36 = vmul.f32 %v5720_v56, %v5707_v15  ;;  %v5722_v10 = vld [vmem:[#allocation20_spill] sm:$0xff]  ;;  %v5723_v49 = vld [vmem:[#allocation115_spill] sm:$0xff] }
 0x20d   :  { %v912_v3 = vmul.f32 %v5721_v31, %v5703_v42  ;;  %v690_v29 = vmax.f32 %v605_v51, %v682_v13  ;;  %v886_v43 = vadd.f32 %v878_v45, %v869_v11  ;;  %v954_v62 = vmul.f32 %v5647_v60, %v5696_v8  ;;  %v5724_v13 = vld [vmem:[#allocation58_spill] sm:$0xff] }
 0x20e   :  { %v963_v0 = vmul.f32 %v5576_v32, %v5698_v57  ;;  %v767_v24 = vadd.f32 %v759_v41, %v750_v33  ;;  %v835_v35 = vadd.f32 %v827_v44, %v818_v17  ;;  %v929_v39 = vmul.f32 %v5722_v10, %v5707_v15  ;;  %v5725_v32 = vld [vmem:[#allocation61_spill] sm:$0xff]  ;;  %v5726_v44 = vld [vmem:[#allocation116_spill] sm:$0xff] }
 0x20f   :  { %v980_v16 = vmul.f32 %v5723_v49, %v5701_v20  ;;  %v903_v53 = vadd.f32 %v895_v58, %v886_v43  ;;  %v997_v51 = vmul.f32 %v5650_v48, %v5703_v42  ;;  %v1039_v45 = vmul.f32 %v5724_v13, %v5696_v8  ;;  %v5727_v49 = vld [vmem:[#allocation21_spill] sm:$0xff] }
 0x210   :  { %v971_v18 = vadd.f32 %v963_v0, %v954_v62  ;;  %v775_v11 = vmax.f32 %v690_v29, %v767_v24  ;;  %v852_v60 = vadd.f32 %v844_v36, %v835_v35  ;;  %v1048_v41 = vmul.f32 %v5725_v32, %v5698_v57 }
 0x211   :  { %v1065_v33 = vmul.f32 %v5726_v44, %v5701_v20  ;;  %v920_v17 = vadd.f32 %v912_v3, %v903_v53  ;;  %v1014_v43 = vmul.f32 %v5727_v49, %v5707_v15  ;;  %v1082_v58 = vmul.f32 %v5370_v61, %v5703_v42 }
 0x212   :  { %v988_v10 = vadd.f32 %v980_v16, %v971_v18  ;;  %v860_v62 = vmax.f32 %v775_v11, %v852_v60  ;;  %v1056_v0 = vadd.f32 %v1048_v41, %v1039_v45  ;;  %v1124_v29 = vmul.f32 %v5654_v7, %v5696_v8  ;;  %v5728_v18 = vld [vmem:[#allocation117_spill] sm:$0xff] }
 0x213   :  { %v1133_v36 = vmul.f32 %v5655_v19, %v5698_v57  ;;  %v937_v24 = vadd.f32 %v929_v39, %v920_v17  ;;  %v1099_v3 = vmul.f32 %v5657_v55, %v5707_v15  ;;  %v1150_v16 = vmul.f32 %v5728_v18, %v5701_v20  ;;  %v5729_v19 = vld [vmem:[#allocation75_spill] sm:$0xff] }
 0x214   :  { %v1005_v35 = vadd.f32 %v997_v51, %v988_v10  ;;  %v1073_v53 = vadd.f32 %v1065_v33, %v1056_v0  ;;  %v1167_v60 = vmul.f32 %v5384_v2, %v5703_v42  ;;  %v1209_v45 = vmul.f32 %v5586_v27, %v5696_v8  ;;  %v5730_v18 = vld [vmem:[#allocation23_spill] sm:$0xff]  ;;  %v5731_v0 = vld [vmem:[#allocation150_spill] sm:$0xff]  ;;  %v5732_v27 = vld [vmem:[#allocation77_spill] sm:$0xff] }
 0x215   :  { %v1141_v44 = vadd.f32 %v1133_v36, %v1124_v29  ;;  %v945_v11 = vmax.f32 %v860_v62, %v937_v24  ;;  %v1218_v39 = vmul.f32 %v5729_v19, %v5698_v57  ;;  %v1235_v10 = vmul.f32 %v5589_v34, %v5701_v20 }
 0x216   :  { %v1022_v41 = vadd.f32 %v1014_v43, %v1005_v35  ;;  %v1090_v51 = vadd.f32 %v1082_v58, %v1073_v53  ;;  %v1184_v33 = vmul.f32 %v5730_v18, %v5707_v15  ;;  %v1252_v29 = vmul.f32 %v5731_v0, %v5703_v42  ;;  %v5733_v43 = vld [vmem:[#allocation78_spill] sm:$0xff] }
 0x217   :  { %v1158_v17 = vadd.f32 %v1150_v16, %v1141_v44  ;;  %v1226_v2 = vadd.f32 %v1218_v39, %v1209_v45  ;;  %v1294_v62 = vmul.f32 %v5732_v27, %v5696_v8  ;;  %v1303_v24 = vmul.f32 %v5733_v43, %v5698_v57 }
 0x218   :  { %v1030_v36 = vmax.f32 %v945_v11, %v1022_v41  ;;  %v1107_v35 = vadd.f32 %v1099_v3, %v1090_v51  ;;  %v1269_v58 = vmul.f32 %v5516_v46, %v5707_v15  ;;  %v1320_v44 = vmul.f32 %v5659_v14, %v5701_v20  ;;  %v5734_v14 = vld [vmem:[#allocation25_spill] sm:$0xff] }
 0x219   :  { %v1175_v19 = vadd.f32 %v1167_v60, %v1158_v17  ;;  %v1243_v16 = vadd.f32 %v1235_v10, %v1226_v2  ;;  %v1311_v53 = vadd.f32 %v1303_v24, %v1294_v62  ;;  %v1337_v11 = vmul.f32 %v5660_v1, %v5703_v42  ;;  %v5735_v10 = vld [vmem:[#allocation152_spill] sm:$0xff] }
 0x21a   :  { %v1379_v45 = vmul.f32 %v5661_v50, %v5696_v8  ;;  %v1115_v41 = vmax.f32 %v1030_v36, %v1107_v35  ;;  %v1388_v3 = vmul.f32 %v5662_v54, %v5698_v57  ;;  %v1405_v60 = vmul.f32 %v5592_v63, %v5701_v20  ;;  %v5736_v50 = vld [vmem:[#allocation83_spill] sm:$0xff]  ;;  %v5738_v63 = vld [vmem:[#allocation26_spill] sm:$0xff] }
 0x21b   :  { %v1192_v39 = vadd.f32 %v1184_v33, %v1175_v19  ;;  %v1260_v51 = vadd.f32 %v1252_v29, %v1243_v16  ;;  %v1328_v17 = vadd.f32 %v1320_v44, %v1311_v53  ;;  %v1354_v2 = vmul.f32 %v5734_v14, %v5707_v15  ;;  %v5737_v19 = vld [vmem:[#allocation84_spill] sm:$0xff] }
 0x21c   :  { %v1422_v62 = vmul.f32 %v5735_v10, %v5703_v42  ;;  %v1396_v1 = vadd.f32 %v1388_v3, %v1379_v45  ;;  %v1464_v36 = vmul.f32 %v5736_v50, %v5696_v8  ;;  %v1473_v33 = vmul.f32 %v5737_v19, %v5698_v57  ;;  %v5739_v44 = vld [vmem:[#allocation128_spill] sm:$0xff]  ;;  %v5740_v10 = vld [vmem:[#allocation153_spill] sm:$0xff]  ;;  %v5741_v45 = vld [vmem:[#allocation86_spill] sm:$0xff] }
 0x21d   :  { %v1200_v24 = vmax.f32 %v1115_v41, %v1192_v39  ;;  %v1277_v35 = vadd.f32 %v1269_v58, %v1260_v51  ;;  %v1345_v54 = vadd.f32 %v1337_v11, %v1328_v17  ;;  %v1439_v29 = vmul.f32 %v5738_v63, %v5707_v15  ;;  %v5742_v19 = vld [vmem:[#allocation87_spill] sm:$0xff]  ;;  %v5743_v11 = vld [vmem:[#allocation129_spill] sm:$0xff] }
 0x21e   :  { %v1490_v16 = vmul.f32 %v5739_v44, %v5701_v20  ;;  %v1413_v53 = vadd.f32 %v1405_v60, %v1396_v1  ;;  %v1481_v14 = vadd.f32 %v1473_v33, %v1464_v36  ;;  %v1507_v41 = vmul.f32 %v5740_v10, %v5703_v42  ;;  %v5744_v44 = vld [vmem:[#allocation27_spill] sm:$0xff]  ;;  %v5745_v60 = vld [vmem:[#allocation154_spill] sm:$0xff] }
 0x21f   :  { %v1549_v39 = vmul.f32 %v5741_v45, %v5696_v8  ;;  %v1285_v3 = vmax.f32 %v1200_v24, %v1277_v35  ;;  %v1362_v50 = vadd.f32 %v1354_v2, %v1345_v54  ;;  %v1558_v58 = vmul.f32 %v5742_v19, %v5698_v57 }
 0x220   :  { %v1575_v51 = vmul.f32 %v5743_v11, %v5701_v20  ;;  %v1430_v17 = vadd.f32 %v1422_v62, %v1413_v53  ;;  %v1498_v63 = vadd.f32 %v1490_v16, %v1481_v14  ;;  %v1524_v1 = vmul.f32 %v5744_v44, %v5707_v15 }
 0x221   :  { %v1592_v36 = vmul.f32 %v5745_v60, %v5703_v42  ;;  %v1370_v33 = vmax.f32 %v1285_v3, %v1362_v50  ;;  %v1566_v10 = vadd.f32 %v1558_v58, %v1549_v39  ;;  %v1634_v24 = vmul.f32 %v5671_v6, %v5696_v8  ;;  %v5746_v39 = vld [vmem:[#allocation92_spill] sm:$0xff] }
 0x222   :  { %v1643_v54 = vmul.f32 %v5600_v37, %v5698_v57  ;;  %v1447_v2 = vadd.f32 %v1439_v29, %v1430_v17  ;;  %v1515_v35 = vadd.f32 %v1507_v41, %v1498_v63  ;;  %v1609_v62 = vmul.f32 %v5672_v25, %v5707_v15  ;;  %v5747_v37 = vld [vmem:[#allocation93_spill] sm:$0xff]  ;;  %v5748_v63 = vld [vmem:[#allocation131_spill] sm:$0xff] }
 0x223   :  { %v1660_v14 = vmul.f32 %v5673_v4, %v5701_v20  ;;  %v1583_v16 = vadd.f32 %v1575_v51, %v1566_v10  ;;  %v1677_v50 = vmul.f32 %v5674_v38, %v5703_v42  ;;  %v1719_v3 = vmul.f32 %v5746_v39, %v5696_v8  ;;  %v5749_v4 = vld [vmem:[#allocation29_spill] sm:$0xff]  ;;  %v5750_v51 = vld [vmem:[#allocation156_spill] sm:$0xff]  ;;  %v5751_v39 = vld [vmem:[#allocation95_spill] sm:$0xff] }
 0x224   :  { %v1651_v53 = vadd.f32 %v1643_v54, %v1634_v24  ;;  %v1455_v58 = vmax.f32 %v1370_v33, %v1447_v2  ;;  %v1532_v6 = vadd.f32 %v1524_v1, %v1515_v35  ;;  %v1728_v29 = vmul.f32 %v5747_v37, %v5698_v57  ;;  %v5752_v1 = vld [vmem:[#allocation96_spill] sm:$0xff] }
 0x225   :  { %v1745_v41 = vmul.f32 %v5748_v63, %v5701_v20  ;;  %v1600_v17 = vadd.f32 %v1592_v36, %v1583_v16  ;;  %v1694_v10 = vmul.f32 %v5749_v4, %v5707_v15  ;;  %v1762_v24 = vmul.f32 %v5750_v51, %v5703_v42  ;;  %v5753_v63 = vld [vmem:[#allocation30_spill] sm:$0xff]  ;;  %v5755_v51 = vld [vmem:[#allocation157_spill] sm:$0xff] }
 0x226   :  { %v1668_v25 = vadd.f32 %v1660_v14, %v1651_v53  ;;  %v1540_v54 = vmax.f32 %v1455_v58, %v1532_v6  ;;  %v1736_v38 = vadd.f32 %v1728_v29, %v1719_v3  ;;  %v1804_v33 = vmul.f32 %v5751_v39, %v5696_v8  ;;  %v5754_v14 = vld [vmem:[#allocation13_spill] sm:$0xff]  ;;  %v5756_v3 = vld [vmem:[#allocation99_spill] sm:$0xff] }
 0x227   :  { %v1813_v2 = vmul.f32 %v5752_v1, %v5698_v57  ;;  %v1617_v35 = vadd.f32 %v1609_v62, %v1600_v17  ;;  %v1779_v36 = vmul.f32 %v5753_v63, %v5707_v15  ;;  %v1830_v16 = vmul.f32 %v5754_v14, %v5701_v20  ;;  %v5757_v1 = vld [vmem:[#allocation100_spill] sm:$0xff]  ;;  %v5759_v14 = vld [vmem:[#allocation31_spill] sm:$0xff] }
 0x228   :  { %v1685_v37 = vadd.f32 %v1677_v50, %v1668_v25  ;;  %v1753_v53 = vadd.f32 %v1745_v41, %v1736_v38  ;;  %v1847_v6 = vmul.f32 %v5755_v51, %v5703_v42  ;;  %v1889_v58 = vmul.f32 %v5756_v3, %v5696_v8  ;;  %v5758_v25 = vld [vmem:[#allocation135_spill] sm:$0xff]  ;;  %v5760_v41 = vld [vmem:[#allocation158_spill] sm:$0xff] }
 0x229   :  { %v1821_v4 = vadd.f32 %v1813_v2, %v1804_v33  ;;  %v1625_v29 = vmax.f32 %v1540_v54, %v1617_v35  ;;  %v1898_v62 = vmul.f32 %v5757_v1, %v5698_v57  ;;  %v1915_v50 = vmul.f32 %v5758_v25, %v5701_v20  ;;  %v5761_v3 = vld [vmem:[#allocation103_spill] sm:$0xff] }
 0x22a   :  { %v1702_v39 = vadd.f32 %v1694_v10, %v1685_v37  ;;  %v1770_v17 = vadd.f32 %v1762_v24, %v1753_v53  ;;  %v1864_v38 = vmul.f32 %v5759_v14, %v5707_v15  ;;  %v1932_v33 = vmul.f32 %v5760_v41, %v5703_v42  ;;  %v5762_v37 = vld [vmem:[#allocation104_spill] sm:$0xff] }
 0x22b   :  { %v1838_v63 = vadd.f32 %v1830_v16, %v1821_v4  ;;  %v1906_v51 = vadd.f32 %v1898_v62, %v1889_v58  ;;  %v1974_v54 = vmul.f32 %v5761_v3, %v5696_v8  ;;  %v1983_v10 = vmul.f32 %v5762_v37, %v5698_v57  ;;  %v5763_v58 = vld [vmem:[#allocation106_spill] sm:$0xff]  ;;  %v5767_v37 = vld [vmem:[#allocation44_spill] sm:$0xff] }
 0x22c   :  { %v1710_v2 = vmax.f32 %v1625_v29, %v1702_v39  ;;  %v1787_v35 = vadd.f32 %v1779_v36, %v1770_v17  ;;  %v1949_v24 = vmul.f32 %v5689_v28, %v5707_v15  ;;  %v2000_v4 = vmul.f32 %v5688_v23, %v5701_v20  ;;  %v5765_v23 = vld [vmem:[#allocation33_spill] sm:$0xff] }
 0x22d   :  { %v1855_v1 = vadd.f32 %v1847_v6, %v1838_v63  ;;  %v1923_v16 = vadd.f32 %v1915_v50, %v1906_v51  ;;  %v1991_v53 = vadd.f32 %v1983_v10, %v1974_v54  ;;  %v2017_v39 = vmul.f32 %v5690_v30, %v5703_v42  ;;  %v5764_v63 = vld [vmem:[#allocation137_spill] sm:$0xff]  ;;  %v5766_v50 = vld [vmem:[#allocation166_spill] sm:$0xff] }
 0x22e   :  { %v2059_v29 = vmul.f32 %v5763_v58, %v5696_v8  ;;  %v1795_v62 = vmax.f32 %v1710_v2, %v1787_v35  ;;  %v2068_v36 = vmul.f32 %v5692_v26, %v5698_v57  ;;  %v2085_v6 = vmul.f32 %v5764_v63, %v5701_v20  ;;  %v5768_v8 = vld [vmem:[#allocation59_spill] sm:$0xff]  ;;  %v5771_v20 = vld [vmem:[#allocation34_spill] sm:$0xff] }
 0x22f   :  { %v1872_v3 = vadd.f32 %v1864_v38, %v1855_v1  ;;  %v1940_v17 = vadd.f32 %v1932_v33, %v1923_v16  ;;  %v2008_v28 = vadd.f32 %v2000_v4, %v1991_v53  ;;  %v2034_v51 = vmul.f32 %v5765_v23, %v5707_v15  ;;  %v5769_v1 = vld [vmem:[#allocation45_spill] sm:$0xff]  ;;  %v5770_v38 = vld [vmem:[#allocation64_spill] sm:$0xff]  ;;  %v5773_v16 = vld [vmem:[#allocation67_spill] sm:$0xff] }
 0x230   :  { %v2102_v54 = vmul.f32 %v5766_v50, %v5703_v42  ;;  %v2076_v30 = vadd.f32 %v2068_v36, %v2059_v29  ;;  %v355_v2 = vmul.f32 %v5768_v8, %v5767_v37  ;;  %v396_v35 = vmul.f32 %v5770_v38, %v5769_v1  ;;  %v5772_v4 = vld [vmem:[#allocation109_spill] sm:$0xff]  ;;  %v5774_v58 = vld [vmem:[#allocation10_spill] sm:$0xff]  ;;  %v5777_v1 = vld [vmem:[#allocation47_spill] sm:$0xff] }
 0x231   :  { %v1880_v10 = vmax.f32 %v1795_v62, %v1872_v3  ;;  %v1957_v57 = vadd.f32 %v1949_v24, %v1940_v17  ;;  %v2025_v26 = vadd.f32 %v2017_v39, %v2008_v28  ;;  %v2119_v33 = vmul.f32 %v5771_v20, %v5707_v15  ;;  %v5775_v42 = vld [vmem:[#allocation69_spill] sm:$0xff]  ;;  %v5776_v29 = vld [vmem:[#allocation46_spill] sm:$0xff] }
 0x232   :  { %v445_v53 = vmul.f32 %v5773_v16, %v5772_v4  ;;  %v2093_v23 = vadd.f32 %v2085_v6, %v2076_v30  ;;  %v404_v63 = vadd.f32 %v396_v35, %v355_v2  ;;  %v494_v3 = vmul.f32 %v5775_v42, %v5774_v58  ;;  %v5778_v28 = vld [vmem:[#allocation110_spill] sm:$0xff]  ;;  %v5780_v4 = vld [vmem:[#allocation15_spill] sm:$0xff]  ;;  %v5781_v6 = vld [vmem:[#allocation140_spill] sm:$0xff] }
 0x233   :  { %v528_v62 = vmul.f32 %v5776_v29, %v5768_v8  ;;  %v1965_v36 = vmax.f32 %v1880_v10, %v1957_v57  ;;  %v2042_v37 = vadd.f32 %v2034_v51, %v2025_v26  ;;  %v537_v24 = vmul.f32 %v5777_v1, %v5770_v38  ;;  %v5779_v20 = vld [vmem:[#allocation102_spill] sm:$0xff] }
 0x234   :  { %v554_v39 = vmul.f32 %v5778_v28, %v5773_v16  ;;  %v2110_v15 = vadd.f32 %v2102_v54, %v2093_v23  ;;  %v453_v17 = vadd.f32 %v445_v53, %v404_v63  ;;  %v511_v30 = vmul.f32 %v5780_v4, %v5779_v20  ;;  %v2160_v54 = vpop.permute.xlu2 %2159 }
 0x235   :  { %v571_v2 = vmul.f32 %v5781_v6, %v5775_v42  ;;  %v2050_v35 = vmax.f32 %v1965_v36, %v2042_v37  ;;  %v545_v58 = vadd.f32 %v537_v24, %v528_v62  ;;  %v613_v10 = vmul.f32 %v5635_v12, %v5768_v8  ;;  %v5782_v37 = vld [vmem:[#allocation141_spill] sm:$0xff] }
 0x236   :  { %v622_v26 = vmul.f32 %v5710_v9, %v5770_v38  ;;  %v2127_v51 = vadd.f32 %v2119_v33, %v2110_v15  ;;  %v502_v57 = vadd.f32 %v494_v3, %v453_v17  ;;  %v588_v23 = vmul.f32 %v5711_v40, %v5779_v20  ;;  %v5783_v9 = vld [vmem:[#allocation50_spill] sm:$0xff]  ;;  %v5784_v3 = vld [vmem:[#allocation51_spill] sm:$0xff] }
 0x237   :  { %v639_v63 = vmul.f32 %v5712_v21, %v5773_v16  ;;  %v562_v53 = vadd.f32 %v554_v39, %v545_v58  ;;  %v656_v62 = vmul.f32 %v5782_v37, %v5775_v42  ;;  %v673_v36 = vmul.f32 %v5567_v5, %v5779_v20  ;;  %v5785_v39 = vld [vmem:[#allocation142_spill] sm:$0xff]  ;;  %v5786_v5 = vld [vmem:[#allocation52_spill] sm:$0xff] }
 0x238   :  { %v630_v4 = vadd.f32 %v622_v26, %v613_v10  ;;  %v2135_v24 = vmax.f32 %v2050_v35, %v2127_v51  ;;  %v698_v33 = vmul.f32 %v5783_v9, %v5768_v8  ;;  %v707_v15 = vmul.f32 %v5784_v3, %v5770_v38  ;;  %v5787_v51 = vld [vmem:[#allocation53_spill] sm:$0xff] }
 0x239   :  { %v724_v17 = vmul.f32 %v5641_v59, %v5773_v16  ;;  %v519_v40 = vadd.f32 %v511_v30, %v502_v57  ;;  %v579_v21 = vadd.f32 %v571_v2, %v562_v53  ;;  %v741_v10 = vmul.f32 %v5785_v39, %v5775_v42  ;;  %v5788_v30 = vld [vmem:[#allocation113_spill] sm:$0xff] }
 0x23a   :  { %v647_v58 = vadd.f32 %v639_v63, %v630_v4  ;;  %v2175_v26 = vadd.f32 %v2160_v54, %v2135_v24  ;;  %v715_v37 = vadd.f32 %v707_v15, %v698_v33  ;;  %v783_v35 = vmul.f32 %v5786_v5, %v5768_v8  ;;  %v5789_v54 = vld [vmem:[#allocation143_spill] sm:$0xff] }
 0x23b   :  { %v792_v9 = vmul.f32 %v5787_v51, %v5770_v38  ;;  %v596_v12 = vadd.f32 %v588_v23, %v579_v21  ;;  %v758_v3 = vmul.f32 %v5715_v52, %v5779_v20  ;;  %v809_v2 = vmul.f32 %v5788_v30, %v5773_v16 }
 0x23c   :  { %v664_v6 = vadd.f32 %v656_v62, %v647_v58  ;;  %v2183_v4 = vmax.f32 %v2175_v26, 0.0  ;;  %v732_v57 = vadd.f32 %v724_v17, %v715_v37  ;;  %v826_v53 = vmul.f32 %v5789_v54, %v5775_v42  ;;  %v5790_v37 = vld [vmem:[#allocation114_spill] sm:$0xff] }
 0x23d   :  { %v800_v63 = vadd.f32 %v792_v9, %v783_v35  ;;  %v604_v24 = vmax.f32 %v519_v40, %v596_v12  ;;  %v868_v15 = vmul.f32 %v5717_v22, %v5768_v8  ;;  %v877_v21 = vmul.f32 %v5718_v47, %v5770_v38  ;;  %v5791_v40 = vld [vmem:[#allocation56_spill] sm:$0xff] }
 0x23e   :  { %v681_v33 = vadd.f32 %v673_v36, %v664_v6  ;;  %2191 = vst [vmem:[#allocation5 + $0x28] sm:$0xff] %v2183_v4  ;;  %v749_v23 = vadd.f32 %v741_v10, %v732_v57  ;;  %v843_v58 = vmul.f32 %v5720_v56, %v5779_v20  ;;  %v894_v9 = vmul.f32 %v5790_v37, %v5773_v16  ;;  %v5792_v4 = vld [vmem:[#allocation57_spill] sm:$0xff]  ;;  %v5794_v56 = vld [vmem:[#allocation20_spill] sm:$0xff] }
 0x23f   :  { %v817_v62 = vadd.f32 %v809_v2, %v800_v63  ;;  %v885_v26 = vadd.f32 %v877_v21, %v868_v15  ;;  %v911_v12 = vmul.f32 %v5721_v31, %v5775_v42  ;;  %v953_v6 = vmul.f32 %v5791_v40, %v5768_v8  ;;  %v5793_v2 = vld [vmem:[#allocation115_spill] sm:$0xff] }
 0x240   :  { %v689_v17 = vmax.f32 %v604_v24, %v681_v33  ;;  %v766_v36 = vadd.f32 %v758_v3, %v749_v23  ;;  %v962_v10 = vmul.f32 %v5792_v4, %v5770_v38  ;;  %v979_v57 = vmul.f32 %v5793_v2, %v5773_v16 }
 0x241   :  { %v834_v35 = vadd.f32 %v826_v53, %v817_v62  ;;  %v902_v63 = vadd.f32 %v894_v9, %v885_v26  ;;  %v928_v37 = vmul.f32 %v5794_v56, %v5779_v20  ;;  %v996_v24 = vmul.f32 %v5650_v48, %v5775_v42  ;;  %v5795_v9 = vld [vmem:[#allocation116_spill] sm:$0xff] }
 0x242   :  { %v1038_v33 = vmul.f32 %v5724_v13, %v5768_v8  ;;  %v774_v15 = vmax.f32 %v689_v17, %v766_v36  ;;  %v970_v3 = vadd.f32 %v962_v10, %v953_v6  ;;  %v1047_v53 = vmul.f32 %v5725_v32, %v5770_v38 }
 0x243   :  { %v851_v21 = vadd.f32 %v843_v58, %v834_v35  ;;  %v919_v23 = vadd.f32 %v911_v12, %v902_v63  ;;  %v1013_v62 = vmul.f32 %v5727_v49, %v5779_v20  ;;  %v1064_v26 = vmul.f32 %v5795_v9, %v5773_v16  ;;  %v5796_v12 = vld [vmem:[#allocation71_spill] sm:$0xff]  ;;  %v5797_v35 = vld [vmem:[#allocation117_spill] sm:$0xff] }
 0x244   :  { %v1081_v56 = vmul.f32 %v5370_v61, %v5775_v42  ;;  %v987_v2 = vadd.f32 %v979_v57, %v970_v3  ;;  %v1055_v4 = vadd.f32 %v1047_v53, %v1038_v33  ;;  %v1098_v58 = vmul.f32 %v5657_v55, %v5779_v20  ;;  %v5798_v61 = vld [vmem:[#allocation149_spill] sm:$0xff] }
 0x245   :  { %v859_v48 = vmax.f32 %v774_v15, %v851_v21  ;;  %v936_v17 = vadd.f32 %v928_v37, %v919_v23  ;;  %v1123_v6 = vmul.f32 %v5654_v7, %v5768_v8  ;;  %v1132_v36 = vmul.f32 %v5796_v12, %v5770_v38  ;;  %v5799_v57 = vld [vmem:[#allocation73_spill] sm:$0xff]  ;;  %v5800_v37 = vld [vmem:[#allocation75_spill] sm:$0xff] }
 0x246   :  { %v1149_v10 = vmul.f32 %v5797_v35, %v5773_v16  ;;  %v1004_v63 = vadd.f32 %v996_v24, %v987_v2  ;;  %v1072_v49 = vadd.f32 %v1064_v26, %v1055_v4  ;;  %v1166_v15 = vmul.f32 %v5798_v61, %v5775_v42 }
 0x247   :  { %v1208_v33 = vmul.f32 %v5799_v57, %v5768_v8  ;;  %v944_v21 = vmax.f32 %v859_v48, %v936_v17  ;;  %v1140_v3 = vadd.f32 %v1132_v36, %v1123_v6  ;;  %v1217_v53 = vmul.f32 %v5800_v37, %v5770_v38 }
 0x248   :  { %v1234_v23 = vmul.f32 %v5589_v34, %v5773_v16  ;;  %v1021_v55 = vadd.f32 %v1013_v62, %v1004_v63  ;;  %v1089_v12 = vadd.f32 %v1081_v56, %v1072_v49  ;;  %v1183_v2 = vmul.f32 %v5730_v18, %v5779_v20  ;;  %v5801_v56 = vld [vmem:[#allocation123_spill] sm:$0xff] }
 0x249   :  { %v1251_v4 = vmul.f32 %v5731_v0, %v5775_v42  ;;  %v1157_v24 = vadd.f32 %v1149_v10, %v1140_v3  ;;  %v1225_v26 = vadd.f32 %v1217_v53, %v1208_v33  ;;  %v1293_v48 = vmul.f32 %v5732_v27, %v5768_v8  ;;  %v5802_v10 = vld [vmem:[#allocation151_spill] sm:$0xff]  ;;  %v5803_v53 = vld [vmem:[#allocation80_spill] sm:$0xff] }
 0x24a   :  { %v1302_v17 = vmul.f32 %v5733_v43, %v5770_v38  ;;  %v1029_v6 = vmax.f32 %v944_v21, %v1021_v55  ;;  %v1106_v36 = vadd.f32 %v1098_v58, %v1089_v12  ;;  %v1268_v62 = vmul.f32 %v5516_v46, %v5779_v20  ;;  %v5804_v43 = vld [vmem:[#allocation81_spill] sm:$0xff]  ;;  %v5805_v58 = vld [vmem:[#allocation124_spill] sm:$0xff] }
 0x24b   :  { %v1319_v49 = vmul.f32 %v5801_v56, %v5773_v16  ;;  %v1174_v63 = vadd.f32 %v1166_v15, %v1157_v24  ;;  %v1242_v18 = vadd.f32 %v1234_v23, %v1225_v26  ;;  %v1336_v33 = vmul.f32 %v5802_v10, %v5775_v42  ;;  %v5806_v15 = vld [vmem:[#allocation25_spill] sm:$0xff]  ;;  %v5807_v26 = vld [vmem:[#allocation152_spill] sm:$0xff] }
 0x24c   :  { %v1310_v34 = vadd.f32 %v1302_v17, %v1293_v48  ;;  %v1114_v3 = vmax.f32 %v1029_v6, %v1106_v36  ;;  %v1378_v27 = vmul.f32 %v5803_v53, %v5768_v8  ;;  %v1387_v55 = vmul.f32 %v5804_v43, %v5770_v38  ;;  %v5808_v17 = vld [vmem:[#allocation83_spill] sm:$0xff]  ;;  %v5809_v36 = vld [vmem:[#allocation84_spill] sm:$0xff] }
 0x24d   :  { %v1404_v12 = vmul.f32 %v5805_v58, %v5773_v16  ;;  %v1191_v21 = vadd.f32 %v1183_v2, %v1174_v63  ;;  %v1259_v46 = vadd.f32 %v1251_v4, %v1242_v18  ;;  %v1353_v23 = vmul.f32 %v5806_v15, %v5779_v20  ;;  %v5810_v2 = vld [vmem:[#allocation128_spill] sm:$0xff]  ;;  %v5811_v4 = vld [vmem:[#allocation26_spill] sm:$0xff]  ;;  %v5812_v63 = vld [vmem:[#allocation153_spill] sm:$0xff] }
 0x24e   :  { %v1327_v0 = vadd.f32 %v1319_v49, %v1310_v34  ;;  %v1395_v24 = vadd.f32 %v1387_v55, %v1378_v27  ;;  %v1421_v48 = vmul.f32 %v5807_v26, %v5775_v42  ;;  %v1463_v6 = vmul.f32 %v5808_v17, %v5768_v8 }
 0x24f   :  { %v1472_v53 = vmul.f32 %v5809_v36, %v5770_v38  ;;  %v1199_v43 = vmax.f32 %v1114_v3, %v1191_v21  ;;  %v1276_v10 = vadd.f32 %v1268_v62, %v1259_v46  ;;  %v1489_v18 = vmul.f32 %v5810_v2, %v5773_v16 }
 0x250   :  { %v1344_v56 = vadd.f32 %v1336_v33, %v1327_v0  ;;  %v1412_v34 = vadd.f32 %v1404_v12, %v1395_v24  ;;  %v1438_v49 = vmul.f32 %v5811_v4, %v5779_v20  ;;  %v1506_v55 = vmul.f32 %v5812_v63, %v5775_v42  ;;  %v5814_v24 = vld [vmem:[#allocation90_spill] sm:$0xff] }
 0x251   :  { %v1480_v27 = vadd.f32 %v1472_v53, %v1463_v6  ;;  %v1284_v15 = vmax.f32 %v1199_v43, %v1276_v10  ;;  %v1548_v17 = vmul.f32 %v5741_v45, %v5768_v8  ;;  %v1557_v46 = vmul.f32 %v5742_v19, %v5770_v38  ;;  %v5815_v6 = vld [vmem:[#allocation130_spill] sm:$0xff] }
 0x252   :  { %v1361_v26 = vadd.f32 %v1353_v23, %v1344_v56  ;;  %v1429_v0 = vadd.f32 %v1421_v48, %v1412_v34  ;;  %v1523_v33 = vmul.f32 %v5744_v44, %v5779_v20  ;;  %v1574_v3 = vmul.f32 %v5743_v11, %v5773_v16  ;;  %v5813_v56 = vld [vmem:[#allocation89_spill] sm:$0xff] }
 0x253   :  { %v1497_v62 = vadd.f32 %v1489_v18, %v1480_v27  ;;  %v1565_v12 = vadd.f32 %v1557_v46, %v1548_v17  ;;  %v1591_v43 = vmul.f32 %v5745_v60, %v5775_v42  ;;  %v1633_v10 = vmul.f32 %v5813_v56, %v5768_v8  ;;  %v5816_v27 = vld [vmem:[#allocation28_spill] sm:$0xff] }
 0x254   :  { %v1369_v53 = vmax.f32 %v1284_v15, %v1361_v26  ;;  %v1446_v21 = vadd.f32 %v1438_v49, %v1429_v0  ;;  %v1642_v48 = vmul.f32 %v5814_v24, %v5770_v38  ;;  %v1659_v18 = vmul.f32 %v5815_v6, %v5773_v16  ;;  %v5817_v15 = vld [vmem:[#allocation155_spill] sm:$0xff]  ;;  %v5818_v17 = vld [vmem:[#allocation92_spill] sm:$0xff]  ;;  %v5820_v24 = vld [vmem:[#allocation29_spill] sm:$0xff] }
 0x255   :  { %v1514_v23 = vadd.f32 %v1506_v55, %v1497_v62  ;;  %v1582_v34 = vadd.f32 %v1574_v3, %v1565_v12  ;;  %v1608_v44 = vmul.f32 %v5816_v27, %v5779_v20  ;;  %v1676_v26 = vmul.f32 %v5817_v15, %v5775_v42  ;;  %v5819_v55 = vld [vmem:[#allocation93_spill] sm:$0xff]  ;;  %v5821_v3 = vld [vmem:[#allocation131_spill] sm:$0xff]  ;;  %v5822_v27 = vld [vmem:[#allocation156_spill] sm:$0xff] }
 0x256   :  { %v1718_v46 = vmul.f32 %v5818_v17, %v5768_v8  ;;  %v1454_v60 = vmax.f32 %v1369_v53, %v1446_v21  ;;  %v1650_v49 = vadd.f32 %v1642_v48, %v1633_v10  ;;  %v1727_v0 = vmul.f32 %v5819_v55, %v5770_v38  ;;  %v5823_v53 = vld [vmem:[#allocation30_spill] sm:$0xff]  ;;  %v5824_v21 = vld [vmem:[#allocation95_spill] sm:$0xff] }
 0x257   :  { %v1531_v56 = vadd.f32 %v1523_v33, %v1514_v23  ;;  %v1599_v62 = vadd.f32 %v1591_v43, %v1582_v34  ;;  %v1693_v6 = vmul.f32 %v5820_v24, %v5779_v20  ;;  %v1744_v12 = vmul.f32 %v5821_v3, %v5773_v16  ;;  %v5825_v43 = vld [vmem:[#allocation96_spill] sm:$0xff]  ;;  %v5826_v34 = vld [vmem:[#allocation13_spill] sm:$0xff] }
 0x258   :  { %v1761_v11 = vmul.f32 %v5822_v27, %v5775_v42  ;;  %v1667_v4 = vadd.f32 %v1659_v18, %v1650_v49  ;;  %v1735_v19 = vadd.f32 %v1727_v0, %v1718_v46  ;;  %v1778_v33 = vmul.f32 %v5823_v53, %v5779_v20  ;;  %v5827_v27 = vld [vmem:[#allocation157_spill] sm:$0xff] }
 0x259   :  { %v1539_v15 = vmax.f32 %v1454_v60, %v1531_v56  ;;  %v1616_v10 = vadd.f32 %v1608_v44, %v1599_v62  ;;  %v1803_v23 = vmul.f32 %v5824_v21, %v5768_v8  ;;  %v1812_v48 = vmul.f32 %v5825_v43, %v5770_v38  ;;  %v5828_v56 = vld [vmem:[#allocation99_spill] sm:$0xff]  ;;  %v5829_v44 = vld [vmem:[#allocation100_spill] sm:$0xff] }
 0x25a   :  { %v1829_v24 = vmul.f32 %v5826_v34, %v5773_v16  ;;  %v1684_v3 = vadd.f32 %v1676_v26, %v1667_v4  ;;  %v1752_v55 = vadd.f32 %v1744_v12, %v1735_v19  ;;  %v1846_v60 = vmul.f32 %v5827_v27, %v5775_v42 }
 0x25b   :  { %v1888_v18 = vmul.f32 %v5828_v56, %v5768_v8  ;;  %v1624_v46 = vmax.f32 %v1539_v15, %v1616_v10  ;;  %v1820_v49 = vadd.f32 %v1812_v48, %v1803_v23  ;;  %v1897_v0 = vmul.f32 %v5829_v44, %v5770_v38  ;;  %v5830_v56 = vld [vmem:[#allocation103_spill] sm:$0xff]  ;;  %v5831_v10 = vld [vmem:[#allocation104_spill] sm:$0xff] }
 0x25c   :  { %v1914_v62 = vmul.f32 %v5758_v25, %v5773_v16  ;;  %v1701_v53 = vadd.f32 %v1693_v6, %v1684_v3  ;;  %v1769_v43 = vadd.f32 %v1761_v11, %v1752_v55  ;;  %v1863_v4 = vmul.f32 %v5759_v14, %v5779_v20  ;;  %v5832_v25 = vld [vmem:[#allocation32_spill] sm:$0xff] }
 0x25d   :  { %v1931_v19 = vmul.f32 %v5760_v41, %v5775_v42  ;;  %v1837_v26 = vadd.f32 %v1829_v24, %v1820_v49  ;;  %v1905_v12 = vadd.f32 %v1897_v0, %v1888_v18  ;;  %v1973_v15 = vmul.f32 %v5830_v56, %v5768_v8  ;;  %v5833_v11 = vld [vmem:[#allocation136_spill] sm:$0xff]  ;;  %v5834_v24 = vld [vmem:[#allocation165_spill] sm:$0xff]  ;;  %v5835_v0 = vld [vmem:[#allocation106_spill] sm:$0xff] }
 0x25e   :  { %v1982_v23 = vmul.f32 %v5831_v10, %v5770_v38  ;;  %v1709_v48 = vmax.f32 %v1624_v46, %v1701_v53  ;;  %v1786_v44 = vadd.f32 %v1778_v33, %v1769_v43  ;;  %v1948_v6 = vmul.f32 %v5832_v25, %v5779_v20  ;;  %v5836_v10 = vld [vmem:[#allocation107_spill] sm:$0xff]  ;;  %v5837_v33 = vld [vmem:[#allocation137_spill] sm:$0xff] }
 0x25f   :  { %v1999_v55 = vmul.f32 %v5833_v11, %v5773_v16  ;;  %v1854_v3 = vadd.f32 %v1846_v60, %v1837_v26  ;;  %v1922_v14 = vadd.f32 %v1914_v62, %v1905_v12  ;;  %v2016_v18 = vmul.f32 %v5834_v24, %v5775_v42  ;;  %v5838_v60 = vld [vmem:[#allocation33_spill] sm:$0xff] }
 0x260   :  { %v1990_v27 = vadd.f32 %v1982_v23, %v1973_v15  ;;  %v1794_v49 = vmax.f32 %v1709_v48, %v1786_v44  ;;  %v2058_v56 = vmul.f32 %v5835_v0, %v5768_v8  ;;  %v2067_v53 = vmul.f32 %v5836_v10, %v5770_v38  ;;  %v5839_v44 = vld [vmem:[#allocation44_spill] sm:$0xff]  ;;  %v5841_v8 = vld [vmem:[#allocation45_spill] sm:$0xff] }
 0x261   :  { %v2084_v43 = vmul.f32 %v5837_v33, %v5773_v16  ;;  %v1871_v46 = vadd.f32 %v1863_v4, %v1854_v3  ;;  %v1939_v25 = vadd.f32 %v1931_v19, %v1922_v14  ;;  %v2033_v62 = vmul.f32 %v5838_v60, %v5779_v20  ;;  %v5840_v15 = vld [vmem:[#allocation60_spill] sm:$0xff]  ;;  %v5842_v48 = vld [vmem:[#allocation65_spill] sm:$0xff] }
 0x262   :  { %v2007_v41 = vadd.f32 %v1999_v55, %v1990_v27  ;;  %v2075_v26 = vadd.f32 %v2067_v53, %v2058_v56  ;;  %v2101_v12 = vmul.f32 %v5766_v50, %v5775_v42  ;;  %v358_v23 = vmul.f32 %v5840_v15, %v5839_v44  ;;  %v5843_v16 = vld [vmem:[#allocation109_spill] sm:$0xff]  ;;  %v5844_v4 = vld [vmem:[#allocation68_spill] sm:$0xff]  ;;  %v5845_v55 = vld [vmem:[#allocation10_spill] sm:$0xff] }
 0x263   :  { %v399_v0 = vmul.f32 %v5842_v48, %v5841_v8  ;;  %v1879_v38 = vmax.f32 %v1794_v49, %v1871_v46  ;;  %v1956_v10 = vadd.f32 %v1948_v6, %v1939_v25  ;;  %v448_v14 = vmul.f32 %v5844_v4, %v5843_v16  ;;  %v5846_v3 = vld [vmem:[#allocation72_spill] sm:$0xff]  ;;  %v5847_v25 = vld [vmem:[#allocation34_spill] sm:$0xff] }
 0x264   :  { %v2024_v24 = vadd.f32 %v2016_v18, %v2007_v41  ;;  %v2092_v27 = vadd.f32 %v2084_v43, %v2075_v26  ;;  %v497_v56 = vmul.f32 %v5846_v3, %v5845_v55  ;;  %v531_v42 = vmul.f32 %v5776_v29, %v5840_v15  ;;  %v5848_v43 = vld [vmem:[#allocation140_spill] sm:$0xff] }
 0x265   :  { %v407_v19 = vadd.f32 %v399_v0, %v358_v23  ;;  %v1964_v53 = vmax.f32 %v1879_v38, %v1956_v10  ;;  %v540_v44 = vmul.f32 %v5777_v1, %v5842_v48  ;;  %v2118_v41 = vmul.f32 %v5847_v25, %v5779_v20  ;;  %v5850_v1 = vld [vmem:[#allocation49_spill] sm:$0xff]  ;;  %v5852_v23 = vld [vmem:[#allocation126_spill] sm:$0xff]  ;;  %v5853_v38 = vld [vmem:[#allocation15_spill] sm:$0xff] }
 0x266   :  { %v2041_v60 = vadd.f32 %v2033_v62, %v2024_v24  ;;  %v2109_v8 = vadd.f32 %v2101_v12, %v2092_v27  ;;  %v557_v18 = vmul.f32 %v5778_v28, %v5844_v4  ;;  %v574_v10 = vmul.f32 %v5848_v43, %v5846_v3  ;;  %v5849_v24 = vld [vmem:[#allocation48_spill] sm:$0xff]  ;;  %v5851_v12 = vld [vmem:[#allocation111_spill] sm:$0xff]  ;;  %v5855_v27 = vld [vmem:[#allocation141_spill] sm:$0xff] }
 0x267   :  { %v456_v6 = vadd.f32 %v448_v14, %v407_v19  ;;  %v548_v0 = vadd.f32 %v540_v44, %v531_v42  ;;  %v616_v46 = vmul.f32 %v5849_v24, %v5840_v15  ;;  %v625_v26 = vmul.f32 %v5850_v1, %v5842_v48  ;;  %v5857_v44 = vld [vmem:[#allocation51_spill] sm:$0xff]  ;;  %v5858_v24 = vld [vmem:[#allocation17_spill] sm:$0xff] }
 0x268   :  { %v2049_v49 = vmax.f32 %v1964_v53, %v2041_v60  ;;  %v2126_v29 = vadd.f32 %v2118_v41, %v2109_v8  ;;  %v642_v20 = vmul.f32 %v5851_v12, %v5844_v4  ;;  %v514_v16 = vmul.f32 %v5853_v38, %v5852_v23  ;;  %v5854_v60 = vld [vmem:[#allocation16_spill] sm:$0xff]  ;;  %v2156_v41 = vpop.permute.xlu1 %2155 }
 0x269   :  { %v505_v62 = vadd.f32 %v497_v56, %v456_v6  ;;  %v565_v28 = vadd.f32 %v557_v18, %v548_v0  ;;  %v591_v14 = vmul.f32 %v5854_v60, %v5852_v23  ;;  %v659_v19 = vmul.f32 %v5855_v27, %v5846_v3  ;;  %v5856_v56 = vld [vmem:[#allocation50_spill] sm:$0xff] }
 0x26a   :  { %v2134_v55 = vmax.f32 %v2049_v49, %v2126_v29  ;;  %v633_v53 = vadd.f32 %v625_v26, %v616_v46  ;;  %v701_v42 = vmul.f32 %v5856_v56, %v5840_v15  ;;  %v710_v8 = vmul.f32 %v5857_v44, %v5842_v48  ;;  %v5859_v27 = vld [vmem:[#allocation114_spill] sm:$0xff] }
 0x26b   :  { %v522_v6 = vadd.f32 %v514_v16, %v505_v62  ;;  %v582_v43 = vadd.f32 %v574_v10, %v565_v28  ;;  %v676_v18 = vmul.f32 %v5858_v24, %v5852_v23  ;;  %v727_v0 = vmul.f32 %v5641_v59, %v5844_v4 }
 0x26c   :  { %v2174_v1 = vadd.f32 %v2156_v41, %v2134_v55  ;;  %v650_v12 = vadd.f32 %v642_v20, %v633_v53  ;;  %v718_v38 = vadd.f32 %v710_v8, %v701_v42  ;;  %v744_v49 = vmul.f32 %v5785_v39, %v5846_v3  ;;  %v5861_v8 = vld [vmem:[#allocation115_spill] sm:$0xff] }
 0x26d   :  { %v599_v46 = vadd.f32 %v591_v14, %v582_v43  ;;  %v786_v29 = vmul.f32 %v5786_v5, %v5840_v15  ;;  %v795_v62 = vmul.f32 %v5787_v51, %v5842_v48  ;;  %v812_v10 = vmul.f32 %v5788_v30, %v5844_v4 }
 0x26e   :  { %v2182_v26 = vmax.f32 %v2174_v1, 0.0  ;;  %v667_v16 = vadd.f32 %v659_v19, %v650_v12  ;;  %v735_v28 = vadd.f32 %v727_v0, %v718_v38  ;;  %v829_v59 = vmul.f32 %v5789_v54, %v5846_v3 }
 0x26f   :  { %v607_v20 = vmax.f32 %v522_v6, %v599_v46  ;;  %v803_v60 = vadd.f32 %v795_v62, %v786_v29  ;;  %v871_v39 = vmul.f32 %v5717_v22, %v5840_v15  ;;  %v880_v5 = vmul.f32 %v5718_v47, %v5842_v48  ;;  %v5860_v47 = vld [vmem:[#allocation57_spill] sm:$0xff]  ;;  %v5862_v6 = vld [vmem:[#allocation19_spill] sm:$0xff]  ;;  %v5864_v46 = vld [vmem:[#allocation20_spill] sm:$0xff] }
 0x270   :  { %2190 = vst [vmem:[#allocation5 + $0x20] sm:$0xff] %v2182_v26  ;;  %v684_v14 = vadd.f32 %v676_v18, %v667_v16  ;;  %v752_v51 = vadd.f32 %v744_v49, %v735_v28  ;;  %v761_v30 = vmul.f32 %v5715_v52, %v5852_v23  ;;  %v897_v19 = vmul.f32 %v5859_v27, %v5844_v4  ;;  %v5863_v18 = vld [vmem:[#allocation145_spill] sm:$0xff]  ;;  %v5865_v16 = vld [vmem:[#allocation148_spill] sm:$0xff] }
 0x271   :  { %v820_v55 = vadd.f32 %v812_v10, %v803_v60  ;;  %v888_v53 = vadd.f32 %v880_v5, %v871_v39  ;;  %v914_v54 = vmul.f32 %v5721_v31, %v5846_v3  ;;  %v956_v22 = vmul.f32 %v5791_v40, %v5840_v15 }
 0x272   :  { %v692_v56 = vmax.f32 %v607_v20, %v684_v14  ;;  %v769_v42 = vadd.f32 %v761_v30, %v752_v51  ;;  %v965_v44 = vmul.f32 %v5860_v47, %v5842_v48  ;;  %v982_v41 = vmul.f32 %v5861_v8, %v5844_v4  ;;  %v5867_v14 = vld [vmem:[#allocation21_spill] sm:$0xff] }
 0x273   :  { %v837_v52 = vadd.f32 %v829_v59, %v820_v55  ;;  %v846_v43 = vmul.f32 %v5862_v6, %v5852_v23  ;;  %v905_v24 = vadd.f32 %v897_v19, %v888_v53  ;;  %v999_v0 = vmul.f32 %v5863_v18, %v5846_v3 }
 0x274   :  { %v777_v31 = vmax.f32 %v692_v56, %v769_v42  ;;  %v973_v1 = vadd.f32 %v965_v44, %v956_v22  ;;  %v1041_v40 = vmul.f32 %v5724_v13, %v5840_v15  ;;  %v1050_v12 = vmul.f32 %v5725_v32, %v5842_v48  ;;  %v5866_v32 = vld [vmem:[#allocation71_spill] sm:$0xff]  ;;  %v5869_v56 = vld [vmem:[#allocation122_spill] sm:$0xff] }
 0x275   :  { %v854_v38 = vadd.f32 %v846_v43, %v837_v52  ;;  %v922_v49 = vadd.f32 %v914_v54, %v905_v24  ;;  %v931_v29 = vmul.f32 %v5864_v46, %v5852_v23  ;;  %v1067_v62 = vmul.f32 %v5795_v9, %v5844_v4  ;;  %v5873_v24 = vld [vmem:[#allocation123_spill] sm:$0xff] }
 0x276   :  { %v990_v10 = vadd.f32 %v982_v41, %v973_v1  ;;  %v1058_v26 = vadd.f32 %v1050_v12, %v1041_v40  ;;  %v1084_v28 = vmul.f32 %v5865_v16, %v5846_v3  ;;  %v1126_v59 = vmul.f32 %v5654_v7, %v5840_v15  ;;  %v5871_v41 = vld [vmem:[#allocation77_spill] sm:$0xff]  ;;  %v5875_v12 = vld [vmem:[#allocation151_spill] sm:$0xff] }
 0x277   :  { %v862_v13 = vmax.f32 %v777_v31, %v854_v38  ;;  %v939_v20 = vadd.f32 %v931_v29, %v922_v49  ;;  %v1135_v60 = vmul.f32 %v5866_v32, %v5842_v48  ;;  %v1152_v39 = vmul.f32 %v5797_v35, %v5844_v4  ;;  %v5868_v35 = vld [vmem:[#allocation22_spill] sm:$0xff]  ;;  %v5874_v31 = vld [vmem:[#allocation23_spill] sm:$0xff]  ;;  %v5876_v29 = vld [vmem:[#allocation80_spill] sm:$0xff] }
 0x278   :  { %v1007_v5 = vadd.f32 %v999_v0, %v990_v10  ;;  %v1016_v9 = vmul.f32 %v5867_v14, %v5852_v23  ;;  %v1075_v51 = vadd.f32 %v1067_v62, %v1058_v26  ;;  %v1169_v30 = vmul.f32 %v5798_v61, %v5846_v3  ;;  %v5870_v61 = vld [vmem:[#allocation150_spill] sm:$0xff]  ;;  %v5877_v10 = vld [vmem:[#allocation81_spill] sm:$0xff]  ;;  %v5880_v14 = vld [vmem:[#allocation83_spill] sm:$0xff] }
 0x279   :  { %v947_v27 = vmax.f32 %v862_v13, %v939_v20  ;;  %v1143_v19 = vadd.f32 %v1135_v60, %v1126_v59  ;;  %v1211_v7 = vmul.f32 %v5799_v57, %v5840_v15  ;;  %v1220_v55 = vmul.f32 %v5800_v37, %v5842_v48  ;;  %v5872_v37 = vld [vmem:[#allocation78_spill] sm:$0xff]  ;;  %v5878_v59 = vld [vmem:[#allocation24_spill] sm:$0xff] }
 0x27a   :  { %v1024_v53 = vadd.f32 %v1016_v9, %v1007_v5  ;;  %v1092_v54 = vadd.f32 %v1084_v28, %v1075_v51  ;;  %v1101_v22 = vmul.f32 %v5868_v35, %v5852_v23  ;;  %v1237_v42 = vmul.f32 %v5869_v56, %v5844_v4 }
 0x27b   :  { %v1160_v47 = vadd.f32 %v1152_v39, %v1143_v19  ;;  %v1228_v44 = vadd.f32 %v1220_v55, %v1211_v7  ;;  %v1254_v8 = vmul.f32 %v5870_v61, %v5846_v3  ;;  %v1296_v52 = vmul.f32 %v5871_v41, %v5840_v15  ;;  %v5879_v39 = vld [vmem:[#allocation152_spill] sm:$0xff]  ;;  %v5881_v55 = vld [vmem:[#allocation25_spill] sm:$0xff] }
 0x27c   :  { %v1032_v57 = vmax.f32 %v947_v27, %v1024_v53  ;;  %v1109_v6 = vadd.f32 %v1101_v22, %v1092_v54  ;;  %v1305_v43 = vmul.f32 %v5872_v37, %v5842_v48  ;;  %v1322_v18 = vmul.f32 %v5873_v24, %v5844_v4  ;;  %v5886_v37 = vld [vmem:[#allocation89_spill] sm:$0xff] }
 0x27d   :  { %v1177_v0 = vadd.f32 %v1169_v30, %v1160_v47  ;;  %v1186_v1 = vmul.f32 %v5874_v31, %v5852_v23  ;;  %v1245_v40 = vadd.f32 %v1237_v42, %v1228_v44  ;;  %v1339_v38 = vmul.f32 %v5875_v12, %v5846_v3  ;;  %v5882_v42 = vld [vmem:[#allocation87_spill] sm:$0xff]  ;;  %v5888_v31 = vld [vmem:[#allocation130_spill] sm:$0xff] }
 0x27e   :  { %v1117_v49 = vmax.f32 %v1032_v57, %v1109_v6  ;;  %v1313_v46 = vadd.f32 %v1305_v43, %v1296_v52  ;;  %v1381_v62 = vmul.f32 %v5876_v29, %v5840_v15  ;;  %v1390_v26 = vmul.f32 %v5877_v10, %v5842_v48  ;;  %v5889_v12 = vld [vmem:[#allocation27_spill] sm:$0xff] }
 0x27f   :  { %v1194_v16 = vadd.f32 %v1186_v1, %v1177_v0  ;;  %v1262_v28 = vadd.f32 %v1254_v8, %v1245_v40  ;;  %v1271_v13 = vmul.f32 %v5878_v59, %v5852_v23  ;;  %v1407_v20 = vmul.f32 %v5805_v58, %v5844_v4  ;;  %v5884_v8 = vld [vmem:[#allocation129_spill] sm:$0xff] }
 0x280   :  { %v1330_v32 = vadd.f32 %v1322_v18, %v1313_v46  ;;  %v1398_v60 = vadd.f32 %v1390_v26, %v1381_v62  ;;  %v1424_v5 = vmul.f32 %v5879_v39, %v5846_v3  ;;  %v1466_v9 = vmul.f32 %v5880_v14, %v5840_v15  ;;  %v5887_v18 = vld [vmem:[#allocation90_spill] sm:$0xff]  ;;  %v5890_v46 = vld [vmem:[#allocation155_spill] sm:$0xff] }
 0x281   :  { %v1202_v51 = vmax.f32 %v1117_v49, %v1194_v16  ;;  %v1279_v30 = vadd.f32 %v1271_v13, %v1262_v28  ;;  %v1475_v27 = vmul.f32 %v5809_v36, %v5842_v48  ;;  %v1492_v19 = vmul.f32 %v5810_v2, %v5844_v4  ;;  %v5883_v2 = vld [vmem:[#allocation26_spill] sm:$0xff]  ;;  %v5891_v16 = vld [vmem:[#allocation93_spill] sm:$0xff] }
 0x282   :  { %v1347_v7 = vadd.f32 %v1339_v38, %v1330_v32  ;;  %v1356_v58 = vmul.f32 %v5881_v55, %v5852_v23  ;;  %v1415_v53 = vadd.f32 %v1407_v20, %v1398_v60  ;;  %v1509_v54 = vmul.f32 %v5812_v63, %v5846_v3  ;;  %v5885_v63 = vld [vmem:[#allocation154_spill] sm:$0xff]  ;;  %v5892_v20 = vld [vmem:[#allocation28_spill] sm:$0xff]  ;;  %v5893_v60 = vld [vmem:[#allocation131_spill] sm:$0xff] }
 0x283   :  { %v1287_v35 = vmax.f32 %v1202_v51, %v1279_v30  ;;  %v1483_v22 = vadd.f32 %v1475_v27, %v1466_v9  ;;  %v1551_v56 = vmul.f32 %v5741_v45, %v5840_v15  ;;  %v1560_v47 = vmul.f32 %v5882_v42, %v5842_v48  ;;  %v5894_v9 = vld [vmem:[#allocation156_spill] sm:$0xff] }
 0x284   :  { %v1364_v36 = vadd.f32 %v1356_v58, %v1347_v7  ;;  %v1432_v44 = vadd.f32 %v1424_v5, %v1415_v53  ;;  %v1441_v61 = vmul.f32 %v5883_v2, %v5852_v23  ;;  %v1577_v41 = vmul.f32 %v5884_v8, %v5844_v4  ;;  %v5896_v53 = vld [vmem:[#allocation29_spill] sm:$0xff] }
 0x285   :  { %v1500_v52 = vadd.f32 %v1492_v19, %v1483_v22  ;;  %v1568_v57 = vadd.f32 %v1560_v47, %v1551_v56  ;;  %v1594_v6 = vmul.f32 %v5885_v63, %v5846_v3  ;;  %v1636_v43 = vmul.f32 %v5886_v37, %v5840_v15  ;;  %v5895_v19 = vld [vmem:[#allocation96_spill] sm:$0xff]  ;;  %v5897_v22 = vld [vmem:[#allocation157_spill] sm:$0xff]  ;;  %v5902_v37 = vld [vmem:[#allocation158_spill] sm:$0xff] }
 0x286   :  { %v1372_v45 = vmax.f32 %v1287_v35, %v1364_v36  ;;  %v1449_v24 = vadd.f32 %v1441_v61, %v1432_v44  ;;  %v1645_v0 = vmul.f32 %v5887_v18, %v5842_v48  ;;  %v1662_v1 = vmul.f32 %v5888_v31, %v5844_v4  ;;  %v5899_v44 = vld [vmem:[#allocation100_spill] sm:$0xff] }
 0x287   :  { %v1517_v40 = vadd.f32 %v1509_v54, %v1500_v52  ;;  %v1526_v38 = vmul.f32 %v5889_v12, %v5852_v23  ;;  %v1585_v49 = vadd.f32 %v1577_v41, %v1568_v57  ;;  %v1679_v29 = vmul.f32 %v5890_v46, %v5846_v3  ;;  %v5901_v52 = vld [vmem:[#allocation135_spill] sm:$0xff]  ;;  %v5904_v31 = vld [vmem:[#allocation104_spill] sm:$0xff] }
 0x288   :  { %v1457_v62 = vmax.f32 %v1372_v45, %v1449_v24  ;;  %v1653_v10 = vadd.f32 %v1645_v0, %v1636_v43  ;;  %v1721_v26 = vmul.f32 %v5818_v17, %v5840_v15  ;;  %v1730_v28 = vmul.f32 %v5891_v16, %v5842_v48  ;;  %v5903_v45 = vld [vmem:[#allocation103_spill] sm:$0xff]  ;;  %v5907_v16 = vld [vmem:[#allocation106_spill] sm:$0xff] }
 0x289   :  { %v1534_v59 = vadd.f32 %v1526_v38, %v1517_v40  ;;  %v1602_v13 = vadd.f32 %v1594_v6, %v1585_v49  ;;  %v1611_v32 = vmul.f32 %v5892_v20, %v5852_v23  ;;  %v1747_v39 = vmul.f32 %v5893_v60, %v5844_v4  ;;  %v5905_v38 = vld [vmem:[#allocation31_spill] sm:$0xff] }
 0x28a   :  { %v1670_v5 = vadd.f32 %v1662_v1, %v1653_v10  ;;  %v1738_v14 = vadd.f32 %v1730_v28, %v1721_v26  ;;  %v1764_v51 = vmul.f32 %v5894_v9, %v5846_v3  ;;  %v1806_v30 = vmul.f32 %v5824_v21, %v5840_v15  ;;  %v5898_v21 = vld [vmem:[#allocation99_spill] sm:$0xff] }
 0x28b   :  { %v1542_v17 = vmax.f32 %v1457_v62, %v1534_v59  ;;  %v1619_v27 = vadd.f32 %v1611_v32, %v1602_v13  ;;  %v1815_v7 = vmul.f32 %v5895_v19, %v5842_v48  ;;  %v1832_v55 = vmul.f32 %v5826_v34, %v5844_v4  ;;  %v5900_v34 = vld [vmem:[#allocation30_spill] sm:$0xff]  ;;  %v5908_v59 = vld [vmem:[#allocation107_spill] sm:$0xff] }
 0x28c   :  { %v1687_v58 = vadd.f32 %v1679_v29, %v1670_v5  ;;  %v1696_v54 = vmul.f32 %v5896_v53, %v5852_v23  ;;  %v1755_v35 = vadd.f32 %v1747_v39, %v1738_v14  ;;  %v1849_v56 = vmul.f32 %v5897_v22, %v5846_v3  ;;  %v5906_v29 = vld [vmem:[#allocation165_spill] sm:$0xff] }
 0x28d   :  { %v1627_v42 = vmax.f32 %v1542_v17, %v1619_v27  ;;  %v1823_v47 = vadd.f32 %v1815_v7, %v1806_v30  ;;  %v1891_v36 = vmul.f32 %v5898_v21, %v5840_v15  ;;  %v1900_v2 = vmul.f32 %v5899_v44, %v5842_v48 }
 0x28e   :  { %v1704_v61 = vadd.f32 %v1696_v54, %v1687_v58  ;;  %v1772_v8 = vadd.f32 %v1764_v51, %v1755_v35  ;;  %v1781_v41 = vmul.f32 %v5900_v34, %v5852_v23  ;;  %v1917_v57 = vmul.f32 %v5901_v52, %v5844_v4  ;;  %v2168_v54 = vpop.permute.xlu1 %2167 }
 0x28f   :  { %v1840_v63 = vadd.f32 %v1832_v55, %v1823_v47  ;;  %v1908_v6 = vadd.f32 %v1900_v2, %v1891_v36  ;;  %v1934_v43 = vmul.f32 %v5902_v37, %v5846_v3  ;;  %v1976_v24 = vmul.f32 %v5903_v45, %v5840_v15 }
 0x290   :  { %v1712_v18 = vmax.f32 %v1627_v42, %v1704_v61  ;;  %v1789_v0 = vadd.f32 %v1781_v41, %v1772_v8  ;;  %v1985_v1 = vmul.f32 %v5904_v31, %v5842_v48  ;;  %v2002_v40 = vmul.f32 %v5833_v11, %v5844_v4  ;;  %v5909_v11 = vld [vmem:[#allocation32_spill] sm:$0xff] }
 0x291   :  { %v1857_v12 = vadd.f32 %v1849_v56, %v1840_v63  ;;  %v1866_v49 = vmul.f32 %v5905_v38, %v5852_v23  ;;  %v1925_v46 = vadd.f32 %v1917_v57, %v1908_v6  ;;  %v2019_v62 = vmul.f32 %v5906_v29, %v5846_v3 }
 0x292   :  { %v1797_v10 = vmax.f32 %v1712_v18, %v1789_v0  ;;  %v1993_v26 = vadd.f32 %v1985_v1, %v1976_v24  ;;  %v2061_v28 = vmul.f32 %v5907_v16, %v5840_v15  ;;  %v2070_v13 = vmul.f32 %v5908_v59, %v5842_v48  ;;  %v5910_v15 = vld [vmem:[#allocation33_spill] sm:$0xff] }
 0x293   :  { %v1874_v20 = vadd.f32 %v1866_v49, %v1857_v12  ;;  %v1942_v32 = vadd.f32 %v1934_v43, %v1925_v46  ;;  %v1951_v60 = vmul.f32 %v5909_v11, %v5852_v23  ;;  %v2087_v39 = vmul.f32 %v5837_v33, %v5844_v4 }
 0x294   :  { %v2010_v5 = vadd.f32 %v2002_v40, %v1993_v26  ;;  %v2078_v14 = vadd.f32 %v2070_v13, %v2061_v28  ;;  %v2104_v9 = vmul.f32 %v5766_v50, %v5846_v3  ;;  %v2036_v27 = vmul.f32 %v5910_v15, %v5852_v23 }
 0x295   :  { %v1882_v51 = vmax.f32 %v1797_v10, %v1874_v20  ;;  %v1959_v30 = vadd.f32 %v1951_v60, %v1942_v32  ;;  %v2121_v58 = vmul.f32 %v5847_v25, %v5852_v23 }
 0x296   :  { %v2027_v17 = vadd.f32 %v2019_v62, %v2010_v5  ;;  %v2095_v48 = vadd.f32 %v2087_v39, %v2078_v14 }
 0x297   :  { %v1967_v19 = vmax.f32 %v1882_v51, %v1959_v30 }
 0x298   :  { %v2044_v7 = vadd.f32 %v2036_v27, %v2027_v17  ;;  %v2112_v55 = vadd.f32 %v2104_v9, %v2095_v48 }
 0x29a   :  { %v2052_v53 = vmax.f32 %v1967_v19, %v2044_v7  ;;  %v2129_v33 = vadd.f32 %v2121_v58, %v2112_v55 }
 0x29c   :  { %v2137_v4 = vmax.f32 %v2052_v53, %v2129_v33 }
 0x29e   :  { %v2177_v50 = vadd.f32 %v2168_v54, %v2137_v4 }
 0x2a0   :  { %v2185_v3 = vmax.f32 %v2177_v50, 0.0 }
 0x2a2   :  { %2193 = vst [vmem:[#allocation5 + $0x38] sm:$0xff] %v2185_v3 }
 0x2a3   :  { %2206 = dma.vmem_to_hbm [thread:$0]  %s2199_s15, 1024, %s2201_s18, [#allocation4], %s2309_s20, %s2309_s20, %s2310_s21  }
 0x2a4   :  { %2306 = dma.done.wait [#allocation4], 1024  }
 0x2a5   :  { %2307 = vsyncadd [#allocation4], 4294966272 }
 0x2a6   :  { %2211 = vsyncpa [#allocation3], 1 }
 0x2a7   :  { %2212 = vsyncpa [#allocation4], 1 }

</bundles_post_ra>
